<compile_context>
chip_gen: v7x
topology: tpu7x:2x2x1
jax: 0.10.0
libtpu: 0.0.40
codegen_flags: <defaults>
</compile_context>

<pallas_src>
import math
import functools

import jax
import jax.numpy as jnp
from jax.experimental import pallas as pl
from jax.experimental.pallas import tpu as pltpu

EPS = 1e-5  # nn.LayerNorm default (ESM1bLayerNorm falls back to nn.LayerNorm)


# ---------------------------------------------------------------------------
# In-kernel helpers (f32 elementwise / reduction math).
# ---------------------------------------------------------------------------
def _layer_norm(x, w, b):
    mu = jnp.mean(x, axis=-1, keepdims=True)
    xc = x - mu
    var = jnp.mean(xc * xc, axis=-1, keepdims=True)
    return xc * jax.lax.rsqrt(var + EPS) * w + b


def _gelu_tanh(x):
    # tanh-approximate GELU: one EUP tanh + a few VALU ops.
    # |gelu_tanh - gelu_erf| < ~3e-3, inside the test tolerance.
    c = math.sqrt(2.0 / math.pi)
    return 0.5 * x * (1.0 + jnp.tanh(c * (x + 0.044715 * (x * x * x))))


# ---------------------------------------------------------------------------
# Pallas kernel: one grid step == one block of `block_b` batch elements.
# ---------------------------------------------------------------------------
def mha_layer_kernel(q_ref, k_ref, v_ref,
                     qln_w, qln_b, kln_w, kln_b, vln_w, vln_b,
                     wq_t, bq, wk_t, bk, wv_t, bv,
                     wo_h, bo,
                     fln_w, fln_b,
                     w1_t, b1, w2_t, b2,
                     x_out_ref, attn_out_ref,
                     *, num_heads):
    block_b, Lq, E = q_ref.shape
    Lk = k_ref.shape[1]
    hd = E // num_heads
    Mq = block_b * Lq
    Mk = block_b * Lk
    f32, bf16 = jnp.float32, jnp.bfloat16

    # Inputs arrive bf16 (halved DMA); upcast once, do LN / residuals in f32.
    # Flatten the batch block into the row dim so every dense matmul sees
    # M = block_b*L rows per MXU push.
    q_in = q_ref[...].reshape(Mq, E).astype(f32)
    k_in = k_ref[...].reshape(Mk, E).astype(f32)
    v_in = v_ref[...].reshape(Mk, E).astype(f32)

    residual = q_in

    # --- pre-attention layer norms (cross_attn=True: separate LN per stream)
    qn = _layer_norm(q_in, qln_w[...], qln_b[...])
    kn = _layer_norm(k_in, kln_w[...], kln_b[...])
    vn = _layer_norm(v_in, vln_w[...], vln_b[...])

    # --- in-projections: bf16 operands on the MXU, f32 accumulation/bias.
    # The 1/sqrt(hd) attention scale is already folded into wq_t / bq.
    qp = (jnp.dot(qn.astype(bf16), wq_t[...], preferred_element_type=f32)
          + bq[...]).astype(bf16)
    kp = (jnp.dot(kn.astype(bf16), wk_t[...], preferred_element_type=f32)
          + bk[...]).astype(bf16)
    vp = (jnp.dot(vn.astype(bf16), wv_t[...], preferred_element_type=f32)
          + bv[...]).astype(bf16)

    # Split the batch back out along the sublane-major axis (no lane movement).
    qb = qp.reshape(block_b, Lq, E)
    kb = kp.reshape(block_b, Lk, E)
    vb = vp.reshape(block_b, Lk, E)

    inv_h = 1.0 / num_heads
    acc = jnp.zeros((Mq, E), f32)                  # attn output, already out-projected
    attn_sum = jnp.zeros((block_b, Lq, Lk), f32)   # head-summed attention weights
    for h in range(num_heads):
        lo = h * hd
        # One hd-wide lane slice per stream per head (3*H total), batched over
        # the whole batch block instead of the old per-(b,h) unrolled loop.
        qh = qb[:, :, lo:lo + hd]
        kh = kb[:, :, lo:lo + hd]
        vh = vb[:, :, lo:lo + hd]
        # scores: batched q @ k^T over the batch block
        s = jnp.einsum('bqd,bkd->bqk', qh, kh, preferred_element_type=f32)
        s = s - jnp.max(s, axis=-1, keepdims=True)
        p = jnp.exp(s)
        p = p * pl.reciprocal(jnp.sum(p, axis=-1, keepdims=True), approx=True)
        attn_sum = attn_sum + p
        oh = jnp.einsum('bqk,bkd->bqd', p.astype(bf16), vh,
                        preferred_element_type=f32)
        # fused output projection: acc += O_h @ Wo_block_h  (no head concat)
        acc = acc + jnp.dot(oh.reshape(Mq, hd).astype(bf16), wo_h[h],
                            preferred_element_type=f32)

    # Averaged attention weights (PyTorch default average_attn_weights=True).
    # Single full-tile store; lane-dense slab layout when the wrapper chose one.
    attn_out_ref[...] = (attn_sum * inv_h).reshape(attn_out_ref.shape)

    x = residual + (acc + bo[...])
    residual2 = x

    # --- final LN + FFN (bf16 matmuls, f32 everything else) + residual
    xn = _layer_norm(x, fln_w[...], fln_b[...])
    # TODO(synk): at production E/FF these two matmuls (and the attention above)
    # should be tiled over an FF grid axis with streamed (single-buffered)
    # weights to fit v7x's 64 MiB VMEM; at the small shapes here full residency
    # is fine.
    h1 = jnp.dot(xn.astype(bf16), w1_t[...], preferred_element_type=f32) + b1[...]
    h1 = _gelu_tanh(h1)
    y = jnp.dot(h1.astype(bf16), w2_t[...], preferred_element_type=f32) + b2[...]

    x_out_ref[...] = (residual2 + y).reshape(x_out_ref.shape)


# ---------------------------------------------------------------------------
# One-time parameter plumbing (done once, outside the per-call path).
# ---------------------------------------------------------------------------
_PARAM_ORDER = ("qln_w", "qln_b", "kln_w", "kln_b", "vln_w", "vln_b",
                "wq_t", "bq", "wk_t", "bk", "wv_t", "bv",
                "wo_h", "bo", "fln_w", "fln_b",
                "w1_t", "b1", "w2_t", "b2")


def prepare_params(params, num_heads):
    """Transpose Linear weights to (in, out), fold the attention scale into the
    Q projection, split the output projection per head, and cast matmul weights
    to bf16 (biases / LN params stay f32)."""
    E = params["wq"].shape[0]
    hd = E // num_heads
    scale = 1.0 / math.sqrt(hd)
    f32, bf16 = jnp.float32, jnp.bfloat16
    return {
        "qln_w": params["qln_w"].astype(f32), "qln_b": params["qln_b"].astype(f32),
        "kln_w": params["kln_w"].astype(f32), "kln_b": params["kln_b"].astype(f32),
        "vln_w": params["vln_w"].astype(f32), "vln_b": params["vln_b"].astype(f32),
        "fln_w": params["fln_w"].astype(f32), "fln_b": params["fln_b"].astype(f32),
        "wq_t": (params["wq"].T * scale).astype(bf16),
        "bq":   (params["bq"] * scale).astype(f32),
        "wk_t": params["wk"].T.astype(bf16), "bk": params["bk"].astype(f32),
        "wv_t": params["wv"].T.astype(bf16), "bv": params["bv"].astype(f32),
        "wo_h": params["wo"].T.reshape(num_heads, hd, E).astype(bf16),
        "bo":   params["bo"].astype(f32),
        "w1_t": params["w1"].T.astype(bf16), "b1": params["b1"].astype(f32),
        "w2_t": params["w2"].T.astype(bf16), "b2": params["b2"].astype(f32),
    }


# ---------------------------------------------------------------------------
# Wrapper: BlockSpecs + pallas_call.
# ---------------------------------------------------------------------------
def _pick_block_b(B, L, target_rows=512, prefer_even_grid=True):
    """Largest batch block with block_b*L <= target_rows rows per step.
    Prefer an even number of grid steps (v7x has 2 TensorCores sharding the
    'parallel' axis); on single-TC v5e/v6e pass prefer_even_grid=False or
    block_b=B explicitly to minimize serial grid steps."""
    cands = [c for c in range(1, B + 1) if B % c == 0 and c * L <= target_rows]
    if not cands:
        cands = [1]
    if prefer_even_grid:
        even = [c for c in cands if (B // c) % 2 == 0]
        if even:
            return max(even)
    return max(cands)


def _build_and_call(query, key, value, prep, num_heads, block_b,
                    lane_dense, single_buffer_weights):
    B, Lq, E = query.shape
    Lk = key.shape[1]
    nblk = B // block_b
    FF = prep["w1_t"].shape[1]
    kernel_params = [prep[name] for name in _PARAM_ORDER]

    def seq_spec(L):
        return pl.BlockSpec((block_b, L, E), lambda i: (i, 0, 0))

    def weight_spec(arr):
        nd = arr.ndim
        idx = lambda i, nd=nd: (0,) * nd
        if single_buffer_weights:
            # Weights never change across grid steps -> single-buffer them
            # (double-buffering constants is pure VMEM waste).
            return pl.BlockSpec(arr.shape, idx, pipeline_mode=pl.Buffered(1))
        return pl.BlockSpec(arr.shape, idx)

    def out_layout(last_dim):
        # Lane-dense slab: last dim 128 -> unmasked vst; reshaped back outside.
        flat = block_b * Lq * last_dim
        if lane_dense and flat % 128 == 0:
            rows = flat // 128
            shape = (nblk, rows, 128)
            spec = pl.BlockSpec((1, rows, 128), lambda i: (i, 0, 0))
        else:
            shape = (B, Lq, last_dim)
            spec = pl.BlockSpec((block_b, Lq, last_dim), lambda i: (i, 0, 0))
        return jax.ShapeDtypeStruct(shape, jnp.float32), spec

    x_shape, x_spec = out_layout(E)
    a_shape, a_spec = out_layout(Lk)

    # Advisory cost model so XLA can schedule/overlap the custom call.
    flops = 2 * B * ((Lq + 2 * Lk) * E * E      # q/k/v in-projections
                     + 2 * Lq * Lk * E          # scores + attn @ v (all heads)
                     + Lq * E * E               # fused output projection
                     + 2 * Lq * E * FF)         # fc1 + fc2
    transcendentals = B * (num_heads * Lq * Lk + Lq * FF)
    param_bytes = sum(int(p.size) * p.dtype.itemsize for p in kernel_params)
    bytes_accessed = (2 * B * (Lq + 2 * Lk) * E        # bf16 activation inputs
                      + 4 * B * Lq * (E + Lk)          # f32 outputs
                      + param_bytes)

    fn = pl.pallas_call(
        functools.partial(mha_layer_kernel, num_heads=num_heads),
        grid=(nblk,),
        in_specs=[seq_spec(Lq), seq_spec(Lk), seq_spec(Lk)]
                 + [weight_spec(p) for p in kernel_params],
        out_specs=[x_spec, a_spec],
        out_shape=(x_shape, a_shape),
        compiler_params=pltpu.CompilerParams(
            dimension_semantics=("parallel",),
            vmem_limit_bytes=48 * 1024 * 1024,   # fits v7x's 64 MiB physical VMEM
        ),
        cost_estimate=pl.CostEstimate(flops=flops,
                                      transcendentals=transcendentals,
                                      bytes_accessed=bytes_accessed),
    )
    x_flat, attn_flat = fn(query, key, value, *kernel_params)
    # Force compilation/execution here so a failure surfaces inside the
    # caller's fallback handling.
    jax.block_until_ready((x_flat, attn_flat))
    return x_flat.reshape(B, Lq, E), attn_flat.reshape(B, Lq, Lk)


def multihead_attention_layer(query, key, value, prep, num_heads, block_b=None,
                              lane_dense=True, single_buffer_weights=True):
    B, Lq, E = query.shape
    if block_b is None:
        block_b = _pick_block_b(B, Lq)
    assert B % block_b == 0, "batch must be divisible by block_b"

    # bf16 at the pallas_call boundary: halves input HBM->VMEM DMA and the
    # double-buffered activation VMEM; the kernel upcasts to f32 before LN.
    qb = query.astype(jnp.bfloat16)
    kb = key.astype(jnp.bfloat16)
    vb = value.astype(jnp.bfloat16)

    try:
        return _build_and_call(qb, kb, vb, prep, num_heads, block_b,
                               lane_dense, single_buffer_weights)
    except Exception:
        if not (lane_dense or single_buffer_weights):
            raise
        # Conservative fallback (natural-layout outputs, default double
        # buffering) in case this JAX/Mosaic build rejects pl.Buffered(1)
        # or the in-kernel lane-dense output reshape. Semantics identical.
        return _build_and_call(qb, kb, vb, prep, num_heads, block_b,
                               False, False)


# ---------------------------------------------------------------------------
# Pure-JAX reference (mirrors the PyTorch forward, exact erf GELU, f32).
# ---------------------------------------------------------------------------
def reference(query, key, value, p, num_heads):
    def ln(x, w, b):
        mu = x.mean(-1, keepdims=True)
        var = ((x - mu) ** 2).mean(-1, keepdims=True)
        return (x - mu) / jnp.sqrt(var + EPS) * w + b

    B, Lq, E = query.shape
    Lk = key.shape[1]
    hd = E // num_heads
    residual = query
    q = ln(query, p["qln_w"], p["qln_b"])
    k = ln(key, p["kln_w"], p["kln_b"])
    v = ln(value, p["vln_w"], p["vln_b"])
    qp = q @ p["wq"].T + p["bq"]
    kp = k @ p["wk"].T + p["bk"]
    vp = v @ p["wv"].T + p["bv"]
    qh = qp.reshape(B, Lq, num_heads, hd).transpose(0, 2, 1, 3)
    kh = kp.reshape(B, Lk, num_heads, hd).transpose(0, 2, 1, 3)
    vh = vp.reshape(B, Lk, num_heads, hd).transpose(0, 2, 1, 3)
    s = (qh / math.sqrt(hd)) @ kh.transpose(0, 1, 3, 2)
    a = jax.nn.softmax(s, axis=-1)
    o = (a @ vh).transpose(0, 2, 1, 3).reshape(B, Lq, E)
    x = o @ p["wo"].T + p["bo"]
    attn = a.mean(axis=1)
    x = residual + x
    residual = x
    x = ln(x, p["fln_w"], p["fln_b"])
    x = jax.nn.gelu(x @ p["w1"].T + p["b1"], approximate=False)
    x = x @ p["w2"].T + p["b2"]
    return residual + x, attn


# ---------------------------------------------------------------------------
if __name__ == "__main__":
    B, L, E, H = 4, 8, 32, 4        # batch, seq, embed_dim, attention_heads
    FF = 4 * E                      # ffn_embed_dim (default: 4 * embed_dim)

    root = jax.random.PRNGKey(0)
    ks = jax.random.split(root, 16)

    def nrm(k, shape, scale):
        return (scale * jax.random.normal(k, shape)).astype(jnp.float32)

    params = {
        # LayerNorms: PyTorch default init (weight=1, bias=0), stored as (1, E)
        "qln_w": jnp.ones((1, E), jnp.float32), "qln_b": jnp.zeros((1, E), jnp.float32),
        "kln_w": jnp.ones((1, E), jnp.float32), "kln_b": jnp.zeros((1, E), jnp.float32),
        "vln_w": jnp.ones((1, E), jnp.float32), "vln_b": jnp.zeros((1, E), jnp.float32),
        "fln_w": jnp.ones((1, E), jnp.float32), "fln_b": jnp.zeros((1, E), jnp.float32),
        # MultiheadAttention in/out projections (PyTorch (out,in) convention)
        "wq": nrm(ks[0], (E, E), 0.1), "bq": nrm(ks[1], (1, E), 0.01),
        "wk": nrm(ks[2], (E, E), 0.1), "bk": nrm(ks[3], (1, E), 0.01),
        "wv": nrm(ks[4], (E, E), 0.1), "bv": nrm(ks[5], (1, E), 0.01),
        "wo": nrm(ks[6], (E, E), 0.1), "bo": nrm(ks[7], (1, E), 0.01),
        # FFN
        "w1": nrm(ks[8], (FF, E), 0.1), "b1": nrm(ks[9], (1, FF), 0.01),
        "w2": nrm(ks[10], (E, FF), 0.1), "b2": nrm(ks[11], (1, E), 0.01),
    }

    query = jax.random.normal(ks[12], (B, L, E), jnp.float32)
    key = jax.random.normal(ks[13], (B, L, E), jnp.float32)
    value = jax.random.normal(ks[14], (B, L, E), jnp.float32)

    # one-time weight plumbing (transpose / scale-fold / head-split / bf16 cast)
    prep = prepare_params(params, H)

    x_out, attn_out = multihead_attention_layer(query, key, value, prep, H)
    jax.block_until_ready((x_out, attn_out))

    x_ref, attn_ref = reference(query, key, value, params, H)
    assert x_out.shape == (B, L, E) and attn_out.shape == (B, L, L)
    assert jnp.allclose(x_out, x_ref, atol=2e-2, rtol=2e-2)
    assert jnp.allclose(attn_out, attn_ref, atol=2e-2, rtol=2e-2)

    print("KERNEL_OK")
</pallas_src>

<mosaic_0001>
module attributes {stable_mosaic.version = 11 : i64} {
  func.func @mha_layer_kernel(%arg0: i32, %arg1: memref<2x8x32xbf16, #tpu.memory_space<vmem>>, %arg2: memref<2x8x32xbf16, #tpu.memory_space<vmem>>, %arg3: memref<2x8x32xbf16, #tpu.memory_space<vmem>>, %arg4: memref<1x32xf32, #tpu.memory_space<vmem>>, %arg5: memref<1x32xf32, #tpu.memory_space<vmem>>, %arg6: memref<1x32xf32, #tpu.memory_space<vmem>>, %arg7: memref<1x32xf32, #tpu.memory_space<vmem>>, %arg8: memref<1x32xf32, #tpu.memory_space<vmem>>, %arg9: memref<1x32xf32, #tpu.memory_space<vmem>>, %arg10: memref<32x32xbf16, #tpu.memory_space<vmem>>, %arg11: memref<1x32xf32, #tpu.memory_space<vmem>>, %arg12: memref<32x32xbf16, #tpu.memory_space<vmem>>, %arg13: memref<1x32xf32, #tpu.memory_space<vmem>>, %arg14: memref<32x32xbf16, #tpu.memory_space<vmem>>, %arg15: memref<1x32xf32, #tpu.memory_space<vmem>>, %arg16: memref<4x8x32xbf16, #tpu.memory_space<vmem>>, %arg17: memref<1x32xf32, #tpu.memory_space<vmem>>, %arg18: memref<1x32xf32, #tpu.memory_space<vmem>>, %arg19: memref<1x32xf32, #tpu.memory_space<vmem>>, %arg20: memref<32x128xbf16, #tpu.memory_space<vmem>>, %arg21: memref<1x128xf32, #tpu.memory_space<vmem>>, %arg22: memref<128x32xbf16, #tpu.memory_space<vmem>>, %arg23: memref<1x32xf32, #tpu.memory_space<vmem>>, %arg24: memref<1x4x128xf32, #tpu.memory_space<vmem>>, %arg25: memref<1x1x128xf32, #tpu.memory_space<vmem>>) attributes {dimension_semantics = [#tpu.dimension_semantics<parallel>], iteration_bounds = array<i64: 2>, scalar_prefetch = 0 : i64, scratch_operands = 0 : i64, tpu.core_type = #tpu.core_type<tc>, window_params = [{transform_indices = @transform_0, window_bounds = array<i64: 2, 8, 32>}, {transform_indices = @transform_1, window_bounds = array<i64: 2, 8, 32>}, {transform_indices = @transform_2, window_bounds = array<i64: 2, 8, 32>}, {pipeline_mode = #tpu.pipeline_mode<synchronous>, transform_indices = @transform_3, window_bounds = array<i64: 1, 32>}, {pipeline_mode = #tpu.pipeline_mode<synchronous>, transform_indices = @transform_4, window_bounds = array<i64: 1, 32>}, {pipeline_mode = #tpu.pipeline_mode<synchronous>, transform_indices = @transform_5, window_bounds = array<i64: 1, 32>}, {pipeline_mode = #tpu.pipeline_mode<synchronous>, transform_indices = @transform_6, window_bounds = array<i64: 1, 32>}, {pipeline_mode = #tpu.pipeline_mode<synchronous>, transform_indices = @transform_7, window_bounds = array<i64: 1, 32>}, {pipeline_mode = #tpu.pipeline_mode<synchronous>, transform_indices = @transform_8, window_bounds = array<i64: 1, 32>}, {pipeline_mode = #tpu.pipeline_mode<synchronous>, transform_indices = @transform_9, window_bounds = array<i64: 32, 32>}, {pipeline_mode = #tpu.pipeline_mode<synchronous>, transform_indices = @transform_10, window_bounds = array<i64: 1, 32>}, {pipeline_mode = #tpu.pipeline_mode<synchronous>, transform_indices = @transform_11, window_bounds = array<i64: 32, 32>}, {pipeline_mode = #tpu.pipeline_mode<synchronous>, transform_indices = @transform_12, window_bounds = array<i64: 1, 32>}, {pipeline_mode = #tpu.pipeline_mode<synchronous>, transform_indices = @transform_13, window_bounds = array<i64: 32, 32>}, {pipeline_mode = #tpu.pipeline_mode<synchronous>, transform_indices = @transform_14, window_bounds = array<i64: 1, 32>}, {pipeline_mode = #tpu.pipeline_mode<synchronous>, transform_indices = @transform_15, window_bounds = array<i64: 4, 8, 32>}, {pipeline_mode = #tpu.pipeline_mode<synchronous>, transform_indices = @transform_16, window_bounds = array<i64: 1, 32>}, {pipeline_mode = #tpu.pipeline_mode<synchronous>, transform_indices = @transform_17, window_bounds = array<i64: 1, 32>}, {pipeline_mode = #tpu.pipeline_mode<synchronous>, transform_indices = @transform_18, window_bounds = array<i64: 1, 32>}, {pipeline_mode = #tpu.pipeline_mode<synchronous>, transform_indices = @transform_19, window_bounds = array<i64: 32, 128>}, {pipeline_mode = #tpu.pipeline_mode<synchronous>, transform_indices = @transform_20, window_bounds = array<i64: 1, 128>}, {pipeline_mode = #tpu.pipeline_mode<synchronous>, transform_indices = @transform_21, window_bounds = array<i64: 128, 32>}, {pipeline_mode = #tpu.pipeline_mode<synchronous>, transform_indices = @transform_22, window_bounds = array<i64: 1, 32>}, {transform_indices = @transform_23, window_bounds = array<i64: 1, 4, 128>}, {transform_indices = @transform_24, window_bounds = array<i64: 1, 1, 128>}]} {
    %c0 = arith.constant 0 : index
    %c0_0 = arith.constant 0 : index
    %c0_1 = arith.constant 0 : index
    %0 = vector.load %arg1[%c0, %c0_0, %c0_1] : memref<2x8x32xbf16, #tpu.memory_space<vmem>>, vector<2x8x32xbf16>
    %1 = vector.shape_cast %0 : vector<2x8x32xbf16> to vector<16x32xbf16>
    %2 = arith.extf %1 : vector<16x32xbf16> to vector<16x32xf32>
    %c0_2 = arith.constant 0 : index
    %c0_3 = arith.constant 0 : index
    %c0_4 = arith.constant 0 : index
    %3 = vector.load %arg2[%c0_2, %c0_3, %c0_4] : memref<2x8x32xbf16, #tpu.memory_space<vmem>>, vector<2x8x32xbf16>
    %4 = vector.shape_cast %3 : vector<2x8x32xbf16> to vector<16x32xbf16>
    %5 = arith.extf %4 : vector<16x32xbf16> to vector<16x32xf32>
    %c0_5 = arith.constant 0 : index
    %c0_6 = arith.constant 0 : index
    %c0_7 = arith.constant 0 : index
    %6 = vector.load %arg3[%c0_5, %c0_6, %c0_7] : memref<2x8x32xbf16, #tpu.memory_space<vmem>>, vector<2x8x32xbf16>
    %7 = vector.shape_cast %6 : vector<2x8x32xbf16> to vector<16x32xbf16>
    %8 = arith.extf %7 : vector<16x32xbf16> to vector<16x32xf32>
    %c0_8 = arith.constant 0 : index
    %c0_9 = arith.constant 0 : index
    %9 = vector.load %arg4[%c0_8, %c0_9] : memref<1x32xf32, #tpu.memory_space<vmem>>, vector<1x32xf32>
    %c0_10 = arith.constant 0 : index
    %c0_11 = arith.constant 0 : index
    %10 = vector.load %arg5[%c0_10, %c0_11] : memref<1x32xf32, #tpu.memory_space<vmem>>, vector<1x32xf32>
    %cst = arith.constant dense<0.000000e+00> : vector<16xf32>
    %11 = vector.multi_reduction <add>, %2, %cst [1] : vector<16x32xf32> to vector<16xf32>
    %12 = vector.shape_cast %11 : vector<16xf32> to vector<16x1xf32>
    %cst_12 = arith.constant 3.200000e+01 : f32
    %13 = vector.broadcast %cst_12 : f32 to vector<16x1xf32>
    %14 = arith.divf %12, %13 : vector<16x1xf32>
    %15 = vector.broadcast %14 : vector<16x1xf32> to vector<16x32xf32>
    %16 = arith.subf %2, %15 : vector<16x32xf32>
    %17 = arith.mulf %16, %16 : vector<16x32xf32>
    %cst_13 = arith.constant dense<0.000000e+00> : vector<16xf32>
    %18 = vector.multi_reduction <add>, %17, %cst_13 [1] : vector<16x32xf32> to vector<16xf32>
    %19 = vector.shape_cast %18 : vector<16xf32> to vector<16x1xf32>
    %cst_14 = arith.constant 3.200000e+01 : f32
    %20 = vector.broadcast %cst_14 : f32 to vector<16x1xf32>
    %21 = arith.divf %19, %20 : vector<16x1xf32>
    %cst_15 = arith.constant 9.99999974E-6 : f32
    %22 = vector.broadcast %cst_15 : f32 to vector<16x1xf32>
    %23 = arith.addf %21, %22 : vector<16x1xf32>
    %24 = math.rsqrt %23 : vector<16x1xf32>
    %25 = vector.broadcast %24 : vector<16x1xf32> to vector<16x32xf32>
    %26 = arith.mulf %16, %25 : vector<16x32xf32>
    %27 = vector.broadcast %9 : vector<1x32xf32> to vector<16x32xf32>
    %28 = arith.mulf %26, %27 : vector<16x32xf32>
    %29 = vector.broadcast %10 : vector<1x32xf32> to vector<16x32xf32>
    %30 = arith.addf %28, %29 : vector<16x32xf32>
    %c0_16 = arith.constant 0 : index
    %c0_17 = arith.constant 0 : index
    %31 = vector.load %arg6[%c0_16, %c0_17] : memref<1x32xf32, #tpu.memory_space<vmem>>, vector<1x32xf32>
    %c0_18 = arith.constant 0 : index
    %c0_19 = arith.constant 0 : index
    %32 = vector.load %arg7[%c0_18, %c0_19] : memref<1x32xf32, #tpu.memory_space<vmem>>, vector<1x32xf32>
    %cst_20 = arith.constant dense<0.000000e+00> : vector<16xf32>
    %33 = vector.multi_reduction <add>, %5, %cst_20 [1] : vector<16x32xf32> to vector<16xf32>
    %34 = vector.shape_cast %33 : vector<16xf32> to vector<16x1xf32>
    %cst_21 = arith.constant 3.200000e+01 : f32
    %35 = vector.broadcast %cst_21 : f32 to vector<16x1xf32>
    %36 = arith.divf %34, %35 : vector<16x1xf32>
    %37 = vector.broadcast %36 : vector<16x1xf32> to vector<16x32xf32>
    %38 = arith.subf %5, %37 : vector<16x32xf32>
    %39 = arith.mulf %38, %38 : vector<16x32xf32>
    %cst_22 = arith.constant dense<0.000000e+00> : vector<16xf32>
    %40 = vector.multi_reduction <add>, %39, %cst_22 [1] : vector<16x32xf32> to vector<16xf32>
    %41 = vector.shape_cast %40 : vector<16xf32> to vector<16x1xf32>
    %cst_23 = arith.constant 3.200000e+01 : f32
    %42 = vector.broadcast %cst_23 : f32 to vector<16x1xf32>
    %43 = arith.divf %41, %42 : vector<16x1xf32>
    %cst_24 = arith.constant 9.99999974E-6 : f32
    %44 = vector.broadcast %cst_24 : f32 to vector<16x1xf32>
    %45 = arith.addf %43, %44 : vector<16x1xf32>
    %46 = math.rsqrt %45 : vector<16x1xf32>
    %47 = vector.broadcast %46 : vector<16x1xf32> to vector<16x32xf32>
    %48 = arith.mulf %38, %47 : vector<16x32xf32>
    %49 = vector.broadcast %31 : vector<1x32xf32> to vector<16x32xf32>
    %50 = arith.mulf %48, %49 : vector<16x32xf32>
    %51 = vector.broadcast %32 : vector<1x32xf32> to vector<16x32xf32>
    %52 = arith.addf %50, %51 : vector<16x32xf32>
    %c0_25 = arith.constant 0 : index
    %c0_26 = arith.constant 0 : index
    %53 = vector.load %arg8[%c0_25, %c0_26] : memref<1x32xf32, #tpu.memory_space<vmem>>, vector<1x32xf32>
    %c0_27 = arith.constant 0 : index
    %c0_28 = arith.constant 0 : index
    %54 = vector.load %arg9[%c0_27, %c0_28] : memref<1x32xf32, #tpu.memory_space<vmem>>, vector<1x32xf32>
    %cst_29 = arith.constant dense<0.000000e+00> : vector<16xf32>
    %55 = vector.multi_reduction <add>, %8, %cst_29 [1] : vector<16x32xf32> to vector<16xf32>
    %56 = vector.shape_cast %55 : vector<16xf32> to vector<16x1xf32>
    %cst_30 = arith.constant 3.200000e+01 : f32
    %57 = vector.broadcast %cst_30 : f32 to vector<16x1xf32>
    %58 = arith.divf %56, %57 : vector<16x1xf32>
    %59 = vector.broadcast %58 : vector<16x1xf32> to vector<16x32xf32>
    %60 = arith.subf %8, %59 : vector<16x32xf32>
    %61 = arith.mulf %60, %60 : vector<16x32xf32>
    %cst_31 = arith.constant dense<0.000000e+00> : vector<16xf32>
    %62 = vector.multi_reduction <add>, %61, %cst_31 [1] : vector<16x32xf32> to vector<16xf32>
    %63 = vector.shape_cast %62 : vector<16xf32> to vector<16x1xf32>
    %cst_32 = arith.constant 3.200000e+01 : f32
    %64 = vector.broadcast %cst_32 : f32 to vector<16x1xf32>
    %65 = arith.divf %63, %64 : vector<16x1xf32>
    %cst_33 = arith.constant 9.99999974E-6 : f32
    %66 = vector.broadcast %cst_33 : f32 to vector<16x1xf32>
    %67 = arith.addf %65, %66 : vector<16x1xf32>
    %68 = math.rsqrt %67 : vector<16x1xf32>
    %69 = vector.broadcast %68 : vector<16x1xf32> to vector<16x32xf32>
    %70 = arith.mulf %60, %69 : vector<16x32xf32>
    %71 = vector.broadcast %53 : vector<1x32xf32> to vector<16x32xf32>
    %72 = arith.mulf %70, %71 : vector<16x32xf32>
    %73 = vector.broadcast %54 : vector<1x32xf32> to vector<16x32xf32>
    %74 = arith.addf %72, %73 : vector<16x32xf32>
    %75 = arith.truncf %30 : vector<16x32xf32> to vector<16x32xbf16>
    %c0_34 = arith.constant 0 : index
    %c0_35 = arith.constant 0 : index
    %76 = vector.load %arg10[%c0_34, %c0_35] : memref<32x32xbf16, #tpu.memory_space<vmem>>, vector<32x32xbf16>
    %cst_36 = arith.constant dense<0.000000e+00> : vector<16x32xf32>
    %77 = tpu.matmul %75, %76, %cst_36 {dimension_numbers = #tpu.dot_dimension_numbers<[1], [0], [0], [1], [0, 0, 1, 1], [], []>} : vector<16x32xbf16>, vector<32x32xbf16>, vector<16x32xf32> -> vector<16x32xf32>
    %c0_37 = arith.constant 0 : index
    %c0_38 = arith.constant 0 : index
    %78 = vector.load %arg11[%c0_37, %c0_38] : memref<1x32xf32, #tpu.memory_space<vmem>>, vector<1x32xf32>
    %79 = vector.broadcast %78 : vector<1x32xf32> to vector<16x32xf32>
    %80 = arith.addf %77, %79 : vector<16x32xf32>
    %81 = arith.truncf %80 : vector<16x32xf32> to vector<16x32xbf16>
    %82 = arith.truncf %52 : vector<16x32xf32> to vector<16x32xbf16>
    %c0_39 = arith.constant 0 : index
    %c0_40 = arith.constant 0 : index
    %83 = vector.load %arg12[%c0_39, %c0_40] : memref<32x32xbf16, #tpu.memory_space<vmem>>, vector<32x32xbf16>
    %cst_41 = arith.constant dense<0.000000e+00> : vector<16x32xf32>
    %84 = tpu.matmul %82, %83, %cst_41 {dimension_numbers = #tpu.dot_dimension_numbers<[1], [0], [0], [1], [0, 0, 1, 1], [], []>} : vector<16x32xbf16>, vector<32x32xbf16>, vector<16x32xf32> -> vector<16x32xf32>
    %c0_42 = arith.constant 0 : index
    %c0_43 = arith.constant 0 : index
    %85 = vector.load %arg13[%c0_42, %c0_43] : memref<1x32xf32, #tpu.memory_space<vmem>>, vector<1x32xf32>
    %86 = vector.broadcast %85 : vector<1x32xf32> to vector<16x32xf32>
    %87 = arith.addf %84, %86 : vector<16x32xf32>
    %88 = arith.truncf %87 : vector<16x32xf32> to vector<16x32xbf16>
    %89 = arith.truncf %74 : vector<16x32xf32> to vector<16x32xbf16>
    %c0_44 = arith.constant 0 : index
    %c0_45 = arith.constant 0 : index
    %90 = vector.load %arg14[%c0_44, %c0_45] : memref<32x32xbf16, #tpu.memory_space<vmem>>, vector<32x32xbf16>
    %cst_46 = arith.constant dense<0.000000e+00> : vector<16x32xf32>
    %91 = tpu.matmul %89, %90, %cst_46 {dimension_numbers = #tpu.dot_dimension_numbers<[1], [0], [0], [1], [0, 0, 1, 1], [], []>} : vector<16x32xbf16>, vector<32x32xbf16>, vector<16x32xf32> -> vector<16x32xf32>
    %c0_47 = arith.constant 0 : index
    %c0_48 = arith.constant 0 : index
    %92 = vector.load %arg15[%c0_47, %c0_48] : memref<1x32xf32, #tpu.memory_space<vmem>>, vector<1x32xf32>
    %93 = vector.broadcast %92 : vector<1x32xf32> to vector<16x32xf32>
    %94 = arith.addf %91, %93 : vector<16x32xf32>
    %95 = arith.truncf %94 : vector<16x32xf32> to vector<16x32xbf16>
    %96 = vector.shape_cast %81 : vector<16x32xbf16> to vector<2x8x32xbf16>
    %97 = vector.shape_cast %88 : vector<16x32xbf16> to vector<2x8x32xbf16>
    %98 = vector.shape_cast %95 : vector<16x32xbf16> to vector<2x8x32xbf16>
    %cst_49 = arith.constant 0.000000e+00 : f32
    %99 = vector.broadcast %cst_49 : f32 to vector<16x32xf32>
    %cst_50 = arith.constant 0.000000e+00 : f32
    %100 = vector.broadcast %cst_50 : f32 to vector<2x8x8xf32>
    %101 = vector.extract_strided_slice %96 {offsets = [0, 0, 0], sizes = [2, 8, 8], strides = [1, 1, 1]} : vector<2x8x32xbf16> to vector<2x8x8xbf16>
    %102 = vector.extract_strided_slice %97 {offsets = [0, 0, 0], sizes = [2, 8, 8], strides = [1, 1, 1]} : vector<2x8x32xbf16> to vector<2x8x8xbf16>
    %103 = vector.extract_strided_slice %98 {offsets = [0, 0, 0], sizes = [2, 8, 8], strides = [1, 1, 1]} : vector<2x8x32xbf16> to vector<2x8x8xbf16>
    "tpu.trace_start"() <{level = 10 : i32, message = "bqd,bkd->bqk"}> : () -> ()
    %cst_51 = arith.constant dense<0.000000e+00> : vector<2x8x8xf32>
    %104 = tpu.matmul %101, %102, %cst_51 {dimension_numbers = #tpu.dot_dimension_numbers<[2], [2], [1], [1], [0, 0, 0, 1, 1, 1], [0], [0]>} : vector<2x8x8xbf16>, vector<2x8x8xbf16>, vector<2x8x8xf32> -> vector<2x8x8xf32>
    "tpu.trace_stop"() : () -> ()
    %cst_52 = arith.constant dense<0xFF800000> : vector<2x8xf32>
    %105 = vector.multi_reduction <maximumf>, %104, %cst_52 [2] : vector<2x8x8xf32> to vector<2x8xf32>
    %106 = vector.shape_cast %105 : vector<2x8xf32> to vector<2x8x1xf32>
    %107 = vector.broadcast %106 : vector<2x8x1xf32> to vector<2x8x8xf32>
    %108 = arith.subf %104, %107 : vector<2x8x8xf32>
    %109 = math.exp %108 : vector<2x8x8xf32>
    %cst_53 = arith.constant dense<0.000000e+00> : vector<2x8xf32>
    %110 = vector.multi_reduction <add>, %109, %cst_53 [2] : vector<2x8x8xf32> to vector<2x8xf32>
    %111 = vector.shape_cast %110 : vector<2x8xf32> to vector<2x8x1xf32>
    %112 = tpu.reciprocal %111 {approx = true} : vector<2x8x1xf32> -> vector<2x8x1xf32>
    %113 = vector.broadcast %112 : vector<2x8x1xf32> to vector<2x8x8xf32>
    %114 = arith.mulf %109, %113 : vector<2x8x8xf32>
    %115 = arith.addf %100, %114 : vector<2x8x8xf32>
    %116 = arith.truncf %114 : vector<2x8x8xf32> to vector<2x8x8xbf16>
    "tpu.trace_start"() <{level = 10 : i32, message = "bqk,bkd->bqd"}> : () -> ()
    %cst_54 = arith.constant dense<0.000000e+00> : vector<2x8x8xf32>
    %117 = tpu.matmul %116, %103, %cst_54 {dimension_numbers = #tpu.dot_dimension_numbers<[2], [1], [1], [2], [0, 0, 0, 1, 1, 2], [0], [0]>} : vector<2x8x8xbf16>, vector<2x8x8xbf16>, vector<2x8x8xf32> -> vector<2x8x8xf32>
    "tpu.trace_stop"() : () -> ()
    %118 = vector.shape_cast %117 : vector<2x8x8xf32> to vector<16x8xf32>
    %119 = arith.truncf %118 : vector<16x8xf32> to vector<16x8xbf16>
    %c0_55 = arith.constant 0 : index
    %c0_56 = arith.constant 0 : index
    %c0_57 = arith.constant 0 : index
    %120 = vector.load %arg16[%c0_55, %c0_56, %c0_57] : memref<4x8x32xbf16, #tpu.memory_space<vmem>>, vector<1x8x32xbf16>
    %121 = vector.shape_cast %120 : vector<1x8x32xbf16> to vector<8x32xbf16>
    %cst_58 = arith.constant dense<0.000000e+00> : vector<16x32xf32>
    %122 = tpu.matmul %119, %121, %cst_58 {dimension_numbers = #tpu.dot_dimension_numbers<[1], [0], [0], [1], [0, 0, 1, 1], [], []>} : vector<16x8xbf16>, vector<8x32xbf16>, vector<16x32xf32> -> vector<16x32xf32>
    %123 = arith.addf %99, %122 : vector<16x32xf32>
    %124 = vector.extract_strided_slice %96 {offsets = [0, 0, 8], sizes = [2, 8, 8], strides = [1, 1, 1]} : vector<2x8x32xbf16> to vector<2x8x8xbf16>
    %125 = vector.extract_strided_slice %97 {offsets = [0, 0, 8], sizes = [2, 8, 8], strides = [1, 1, 1]} : vector<2x8x32xbf16> to vector<2x8x8xbf16>
    %126 = vector.extract_strided_slice %98 {offsets = [0, 0, 8], sizes = [2, 8, 8], strides = [1, 1, 1]} : vector<2x8x32xbf16> to vector<2x8x8xbf16>
    "tpu.trace_start"() <{level = 10 : i32, message = "bqd,bkd->bqk"}> : () -> ()
    %cst_59 = arith.constant dense<0.000000e+00> : vector<2x8x8xf32>
    %127 = tpu.matmul %124, %125, %cst_59 {dimension_numbers = #tpu.dot_dimension_numbers<[2], [2], [1], [1], [0, 0, 0, 1, 1, 1], [0], [0]>} : vector<2x8x8xbf16>, vector<2x8x8xbf16>, vector<2x8x8xf32> -> vector<2x8x8xf32>
    "tpu.trace_stop"() : () -> ()
    %cst_60 = arith.constant dense<0xFF800000> : vector<2x8xf32>
    %128 = vector.multi_reduction <maximumf>, %127, %cst_60 [2] : vector<2x8x8xf32> to vector<2x8xf32>
    %129 = vector.shape_cast %128 : vector<2x8xf32> to vector<2x8x1xf32>
    %130 = vector.broadcast %129 : vector<2x8x1xf32> to vector<2x8x8xf32>
    %131 = arith.subf %127, %130 : vector<2x8x8xf32>
    %132 = math.exp %131 : vector<2x8x8xf32>
    %cst_61 = arith.constant dense<0.000000e+00> : vector<2x8xf32>
    %133 = vector.multi_reduction <add>, %132, %cst_61 [2] : vector<2x8x8xf32> to vector<2x8xf32>
    %134 = vector.shape_cast %133 : vector<2x8xf32> to vector<2x8x1xf32>
    %135 = tpu.reciprocal %134 {approx = true} : vector<2x8x1xf32> -> vector<2x8x1xf32>
    %136 = vector.broadcast %135 : vector<2x8x1xf32> to vector<2x8x8xf32>
    %137 = arith.mulf %132, %136 : vector<2x8x8xf32>
    %138 = arith.addf %115, %137 : vector<2x8x8xf32>
    %139 = arith.truncf %137 : vector<2x8x8xf32> to vector<2x8x8xbf16>
    "tpu.trace_start"() <{level = 10 : i32, message = "bqk,bkd->bqd"}> : () -> ()
    %cst_62 = arith.constant dense<0.000000e+00> : vector<2x8x8xf32>
    %140 = tpu.matmul %139, %126, %cst_62 {dimension_numbers = #tpu.dot_dimension_numbers<[2], [1], [1], [2], [0, 0, 0, 1, 1, 2], [0], [0]>} : vector<2x8x8xbf16>, vector<2x8x8xbf16>, vector<2x8x8xf32> -> vector<2x8x8xf32>
    "tpu.trace_stop"() : () -> ()
    %141 = vector.shape_cast %140 : vector<2x8x8xf32> to vector<16x8xf32>
    %142 = arith.truncf %141 : vector<16x8xf32> to vector<16x8xbf16>
    %c1 = arith.constant 1 : index
    %c0_63 = arith.constant 0 : index
    %c0_64 = arith.constant 0 : index
    %143 = vector.load %arg16[%c1, %c0_63, %c0_64] : memref<4x8x32xbf16, #tpu.memory_space<vmem>>, vector<1x8x32xbf16>
    %144 = vector.shape_cast %143 : vector<1x8x32xbf16> to vector<8x32xbf16>
    %cst_65 = arith.constant dense<0.000000e+00> : vector<16x32xf32>
    %145 = tpu.matmul %142, %144, %cst_65 {dimension_numbers = #tpu.dot_dimension_numbers<[1], [0], [0], [1], [0, 0, 1, 1], [], []>} : vector<16x8xbf16>, vector<8x32xbf16>, vector<16x32xf32> -> vector<16x32xf32>
    %146 = arith.addf %123, %145 : vector<16x32xf32>
    %147 = vector.extract_strided_slice %96 {offsets = [0, 0, 16], sizes = [2, 8, 8], strides = [1, 1, 1]} : vector<2x8x32xbf16> to vector<2x8x8xbf16>
    %148 = vector.extract_strided_slice %97 {offsets = [0, 0, 16], sizes = [2, 8, 8], strides = [1, 1, 1]} : vector<2x8x32xbf16> to vector<2x8x8xbf16>
    %149 = vector.extract_strided_slice %98 {offsets = [0, 0, 16], sizes = [2, 8, 8], strides = [1, 1, 1]} : vector<2x8x32xbf16> to vector<2x8x8xbf16>
    "tpu.trace_start"() <{level = 10 : i32, message = "bqd,bkd->bqk"}> : () -> ()
    %cst_66 = arith.constant dense<0.000000e+00> : vector<2x8x8xf32>
    %150 = tpu.matmul %147, %148, %cst_66 {dimension_numbers = #tpu.dot_dimension_numbers<[2], [2], [1], [1], [0, 0, 0, 1, 1, 1], [0], [0]>} : vector<2x8x8xbf16>, vector<2x8x8xbf16>, vector<2x8x8xf32> -> vector<2x8x8xf32>
    "tpu.trace_stop"() : () -> ()
    %cst_67 = arith.constant dense<0xFF800000> : vector<2x8xf32>
    %151 = vector.multi_reduction <maximumf>, %150, %cst_67 [2] : vector<2x8x8xf32> to vector<2x8xf32>
    %152 = vector.shape_cast %151 : vector<2x8xf32> to vector<2x8x1xf32>
    %153 = vector.broadcast %152 : vector<2x8x1xf32> to vector<2x8x8xf32>
    %154 = arith.subf %150, %153 : vector<2x8x8xf32>
    %155 = math.exp %154 : vector<2x8x8xf32>
    %cst_68 = arith.constant dense<0.000000e+00> : vector<2x8xf32>
    %156 = vector.multi_reduction <add>, %155, %cst_68 [2] : vector<2x8x8xf32> to vector<2x8xf32>
    %157 = vector.shape_cast %156 : vector<2x8xf32> to vector<2x8x1xf32>
    %158 = tpu.reciprocal %157 {approx = true} : vector<2x8x1xf32> -> vector<2x8x1xf32>
    %159 = vector.broadcast %158 : vector<2x8x1xf32> to vector<2x8x8xf32>
    %160 = arith.mulf %155, %159 : vector<2x8x8xf32>
    %161 = arith.addf %138, %160 : vector<2x8x8xf32>
    %162 = arith.truncf %160 : vector<2x8x8xf32> to vector<2x8x8xbf16>
    "tpu.trace_start"() <{level = 10 : i32, message = "bqk,bkd->bqd"}> : () -> ()
    %cst_69 = arith.constant dense<0.000000e+00> : vector<2x8x8xf32>
    %163 = tpu.matmul %162, %149, %cst_69 {dimension_numbers = #tpu.dot_dimension_numbers<[2], [1], [1], [2], [0, 0, 0, 1, 1, 2], [0], [0]>} : vector<2x8x8xbf16>, vector<2x8x8xbf16>, vector<2x8x8xf32> -> vector<2x8x8xf32>
    "tpu.trace_stop"() : () -> ()
    %164 = vector.shape_cast %163 : vector<2x8x8xf32> to vector<16x8xf32>
    %165 = arith.truncf %164 : vector<16x8xf32> to vector<16x8xbf16>
    %c2 = arith.constant 2 : index
    %c0_70 = arith.constant 0 : index
    %c0_71 = arith.constant 0 : index
    %166 = vector.load %arg16[%c2, %c0_70, %c0_71] : memref<4x8x32xbf16, #tpu.memory_space<vmem>>, vector<1x8x32xbf16>
    %167 = vector.shape_cast %166 : vector<1x8x32xbf16> to vector<8x32xbf16>
    %cst_72 = arith.constant dense<0.000000e+00> : vector<16x32xf32>
    %168 = tpu.matmul %165, %167, %cst_72 {dimension_numbers = #tpu.dot_dimension_numbers<[1], [0], [0], [1], [0, 0, 1, 1], [], []>} : vector<16x8xbf16>, vector<8x32xbf16>, vector<16x32xf32> -> vector<16x32xf32>
    %169 = arith.addf %146, %168 : vector<16x32xf32>
    %170 = vector.extract_strided_slice %96 {offsets = [0, 0, 24], sizes = [2, 8, 8], strides = [1, 1, 1]} : vector<2x8x32xbf16> to vector<2x8x8xbf16>
    %171 = vector.extract_strided_slice %97 {offsets = [0, 0, 24], sizes = [2, 8, 8], strides = [1, 1, 1]} : vector<2x8x32xbf16> to vector<2x8x8xbf16>
    %172 = vector.extract_strided_slice %98 {offsets = [0, 0, 24], sizes = [2, 8, 8], strides = [1, 1, 1]} : vector<2x8x32xbf16> to vector<2x8x8xbf16>
    "tpu.trace_start"() <{level = 10 : i32, message = "bqd,bkd->bqk"}> : () -> ()
    %cst_73 = arith.constant dense<0.000000e+00> : vector<2x8x8xf32>
    %173 = tpu.matmul %170, %171, %cst_73 {dimension_numbers = #tpu.dot_dimension_numbers<[2], [2], [1], [1], [0, 0, 0, 1, 1, 1], [0], [0]>} : vector<2x8x8xbf16>, vector<2x8x8xbf16>, vector<2x8x8xf32> -> vector<2x8x8xf32>
    "tpu.trace_stop"() : () -> ()
    %cst_74 = arith.constant dense<0xFF800000> : vector<2x8xf32>
    %174 = vector.multi_reduction <maximumf>, %173, %cst_74 [2] : vector<2x8x8xf32> to vector<2x8xf32>
    %175 = vector.shape_cast %174 : vector<2x8xf32> to vector<2x8x1xf32>
    %176 = vector.broadcast %175 : vector<2x8x1xf32> to vector<2x8x8xf32>
    %177 = arith.subf %173, %176 : vector<2x8x8xf32>
    %178 = math.exp %177 : vector<2x8x8xf32>
    %cst_75 = arith.constant dense<0.000000e+00> : vector<2x8xf32>
    %179 = vector.multi_reduction <add>, %178, %cst_75 [2] : vector<2x8x8xf32> to vector<2x8xf32>
    %180 = vector.shape_cast %179 : vector<2x8xf32> to vector<2x8x1xf32>
    %181 = tpu.reciprocal %180 {approx = true} : vector<2x8x1xf32> -> vector<2x8x1xf32>
    %182 = vector.broadcast %181 : vector<2x8x1xf32> to vector<2x8x8xf32>
    %183 = arith.mulf %178, %182 : vector<2x8x8xf32>
    %184 = arith.addf %161, %183 : vector<2x8x8xf32>
    %185 = arith.truncf %183 : vector<2x8x8xf32> to vector<2x8x8xbf16>
    "tpu.trace_start"() <{level = 10 : i32, message = "bqk,bkd->bqd"}> : () -> ()
    %cst_76 = arith.constant dense<0.000000e+00> : vector<2x8x8xf32>
    %186 = tpu.matmul %185, %172, %cst_76 {dimension_numbers = #tpu.dot_dimension_numbers<[2], [1], [1], [2], [0, 0, 0, 1, 1, 2], [0], [0]>} : vector<2x8x8xbf16>, vector<2x8x8xbf16>, vector<2x8x8xf32> -> vector<2x8x8xf32>
    "tpu.trace_stop"() : () -> ()
    %187 = vector.shape_cast %186 : vector<2x8x8xf32> to vector<16x8xf32>
    %188 = arith.truncf %187 : vector<16x8xf32> to vector<16x8xbf16>
    %c3 = arith.constant 3 : index
    %c0_77 = arith.constant 0 : index
    %c0_78 = arith.constant 0 : index
    %189 = vector.load %arg16[%c3, %c0_77, %c0_78] : memref<4x8x32xbf16, #tpu.memory_space<vmem>>, vector<1x8x32xbf16>
    %190 = vector.shape_cast %189 : vector<1x8x32xbf16> to vector<8x32xbf16>
    %cst_79 = arith.constant dense<0.000000e+00> : vector<16x32xf32>
    %191 = tpu.matmul %188, %190, %cst_79 {dimension_numbers = #tpu.dot_dimension_numbers<[1], [0], [0], [1], [0, 0, 1, 1], [], []>} : vector<16x8xbf16>, vector<8x32xbf16>, vector<16x32xf32> -> vector<16x32xf32>
    %192 = arith.addf %169, %191 : vector<16x32xf32>
    %cst_80 = arith.constant 2.500000e-01 : f32
    %193 = vector.broadcast %cst_80 : f32 to vector<2x8x8xf32>
    %194 = arith.mulf %184, %193 : vector<2x8x8xf32>
    %195 = vector.shape_cast %194 : vector<2x8x8xf32> to vector<1x1x128xf32>
    %c0_81 = arith.constant 0 : index
    %c0_82 = arith.constant 0 : index
    %c0_83 = arith.constant 0 : index
    %196 = vector.load %arg25[%c0_81, %c0_82, %c0_83] : memref<1x1x128xf32, #tpu.memory_space<vmem>>, vector<1x1x128xf32>
    tpu.vector_store %arg25[%c0_81, %c0_82, %c0_83], %195 {strides = array<i32>} : memref<1x1x128xf32, #tpu.memory_space<vmem>>, vector<1x1x128xf32>,
    %c0_84 = arith.constant 0 : index
    %c0_85 = arith.constant 0 : index
    %197 = vector.load %arg17[%c0_84, %c0_85] : memref<1x32xf32, #tpu.memory_space<vmem>>, vector<1x32xf32>
    %198 = vector.broadcast %197 : vector<1x32xf32> to vector<16x32xf32>
    %199 = arith.addf %192, %198 : vector<16x32xf32>
    %200 = arith.addf %2, %199 : vector<16x32xf32>
    %c0_86 = arith.constant 0 : index
    %c0_87 = arith.constant 0 : index
    %201 = vector.load %arg18[%c0_86, %c0_87] : memref<1x32xf32, #tpu.memory_space<vmem>>, vector<1x32xf32>
    %c0_88 = arith.constant 0 : index
    %c0_89 = arith.constant 0 : index
    %202 = vector.load %arg19[%c0_88, %c0_89] : memref<1x32xf32, #tpu.memory_space<vmem>>, vector<1x32xf32>
    %cst_90 = arith.constant dense<0.000000e+00> : vector<16xf32>
    %203 = vector.multi_reduction <add>, %200, %cst_90 [1] : vector<16x32xf32> to vector<16xf32>
    %204 = vector.shape_cast %203 : vector<16xf32> to vector<16x1xf32>
    %cst_91 = arith.constant 3.200000e+01 : f32
    %205 = vector.broadcast %cst_91 : f32 to vector<16x1xf32>
    %206 = arith.divf %204, %205 : vector<16x1xf32>
    %207 = vector.broadcast %206 : vector<16x1xf32> to vector<16x32xf32>
    %208 = arith.subf %200, %207 : vector<16x32xf32>
    %209 = arith.mulf %208, %208 : vector<16x32xf32>
    %cst_92 = arith.constant dense<0.000000e+00> : vector<16xf32>
    %210 = vector.multi_reduction <add>, %209, %cst_92 [1] : vector<16x32xf32> to vector<16xf32>
    %211 = vector.shape_cast %210 : vector<16xf32> to vector<16x1xf32>
    %cst_93 = arith.constant 3.200000e+01 : f32
    %212 = vector.broadcast %cst_93 : f32 to vector<16x1xf32>
    %213 = arith.divf %211, %212 : vector<16x1xf32>
    %cst_94 = arith.constant 9.99999974E-6 : f32
    %214 = vector.broadcast %cst_94 : f32 to vector<16x1xf32>
    %215 = arith.addf %213, %214 : vector<16x1xf32>
    %216 = math.rsqrt %215 : vector<16x1xf32>
    %217 = vector.broadcast %216 : vector<16x1xf32> to vector<16x32xf32>
    %218 = arith.mulf %208, %217 : vector<16x32xf32>
    %219 = vector.broadcast %201 : vector<1x32xf32> to vector<16x32xf32>
    %220 = arith.mulf %218, %219 : vector<16x32xf32>
    %221 = vector.broadcast %202 : vector<1x32xf32> to vector<16x32xf32>
    %222 = arith.addf %220, %221 : vector<16x32xf32>
    %223 = arith.truncf %222 : vector<16x32xf32> to vector<16x32xbf16>
    %c0_95 = arith.constant 0 : index
    %c0_96 = arith.constant 0 : index
    %224 = vector.load %arg20[%c0_95, %c0_96] : memref<32x128xbf16, #tpu.memory_space<vmem>>, vector<32x128xbf16>
    %cst_97 = arith.constant dense<0.000000e+00> : vector<16x128xf32>
    %225 = tpu.matmul %223, %224, %cst_97 {dimension_numbers = #tpu.dot_dimension_numbers<[1], [0], [0], [1], [0, 0, 1, 1], [], []>} : vector<16x32xbf16>, vector<32x128xbf16>, vector<16x128xf32> -> vector<16x128xf32>
    %c0_98 = arith.constant 0 : index
    %c0_99 = arith.constant 0 : index
    %226 = vector.load %arg21[%c0_98, %c0_99] : memref<1x128xf32, #tpu.memory_space<vmem>>, vector<1x128xf32>
    %227 = vector.broadcast %226 : vector<1x128xf32> to vector<16x128xf32>
    %228 = arith.addf %225, %227 : vector<16x128xf32>
    %cst_100 = arith.constant 5.000000e-01 : f32
    %229 = vector.broadcast %cst_100 : f32 to vector<16x128xf32>
    %230 = arith.mulf %229, %228 : vector<16x128xf32>
    %231 = arith.mulf %228, %228 : vector<16x128xf32>
    %232 = arith.mulf %231, %228 : vector<16x128xf32>
    %cst_101 = arith.constant 4.471500e-02 : f32
    %233 = vector.broadcast %cst_101 : f32 to vector<16x128xf32>
    %234 = arith.mulf %233, %232 : vector<16x128xf32>
    %235 = arith.addf %228, %234 : vector<16x128xf32>
    %cst_102 = arith.constant 0.797884583 : f32
    %236 = vector.broadcast %cst_102 : f32 to vector<16x128xf32>
    %237 = arith.mulf %236, %235 : vector<16x128xf32>
    %238 = math.tanh %237 : vector<16x128xf32>
    %cst_103 = arith.constant 1.000000e+00 : f32
    %239 = vector.broadcast %cst_103 : f32 to vector<16x128xf32>
    %240 = arith.addf %239, %238 : vector<16x128xf32>
    %241 = arith.mulf %230, %240 : vector<16x128xf32>
    %242 = arith.truncf %241 : vector<16x128xf32> to vector<16x128xbf16>
    %c0_104 = arith.constant 0 : index
    %c0_105 = arith.constant 0 : index
    %243 = vector.load %arg22[%c0_104, %c0_105] : memref<128x32xbf16, #tpu.memory_space<vmem>>, vector<128x32xbf16>
    %cst_106 = arith.constant dense<0.000000e+00> : vector<16x32xf32>
    %244 = tpu.matmul %242, %243, %cst_106 {dimension_numbers = #tpu.dot_dimension_numbers<[1], [0], [0], [1], [0, 0, 1, 1], [], []>} : vector<16x128xbf16>, vector<128x32xbf16>, vector<16x32xf32> -> vector<16x32xf32>
    %c0_107 = arith.constant 0 : index
    %c0_108 = arith.constant 0 : index
    %245 = vector.load %arg23[%c0_107, %c0_108] : memref<1x32xf32, #tpu.memory_space<vmem>>, vector<1x32xf32>
    %246 = vector.broadcast %245 : vector<1x32xf32> to vector<16x32xf32>
    %247 = arith.addf %244, %246 : vector<16x32xf32>
    %248 = arith.addf %200, %247 : vector<16x32xf32>
    %249 = vector.shape_cast %248 : vector<16x32xf32> to vector<1x4x128xf32>
    %c0_109 = arith.constant 0 : index
    %c0_110 = arith.constant 0 : index
    %c0_111 = arith.constant 0 : index
    %250 = vector.load %arg24[%c0_109, %c0_110, %c0_111] : memref<1x4x128xf32, #tpu.memory_space<vmem>>, vector<1x4x128xf32>
    tpu.vector_store %arg24[%c0_109, %c0_110, %c0_111], %249 {strides = array<i32>} : memref<1x4x128xf32, #tpu.memory_space<vmem>>, vector<1x4x128xf32>,
    return
  }
  func.func @transform_0(%arg0: i32) -> (i32, i32, i32) {
    %c0_i32 = arith.constant 0 : i32
    %c0_i32_0 = arith.constant 0 : i32
    %c0_i32_1 = arith.constant 0 : i32
    return %arg0, %c0_i32, %c0_i32_0 : i32, i32, i32
  }
  func.func @transform_1(%arg0: i32) -> (i32, i32, i32) {
    %c0_i32 = arith.constant 0 : i32
    %c0_i32_0 = arith.constant 0 : i32
    %c0_i32_1 = arith.constant 0 : i32
    return %arg0, %c0_i32, %c0_i32_0 : i32, i32, i32
  }
  func.func @transform_2(%arg0: i32) -> (i32, i32, i32) {
    %c0_i32 = arith.constant 0 : i32
    %c0_i32_0 = arith.constant 0 : i32
    %c0_i32_1 = arith.constant 0 : i32
    return %arg0, %c0_i32, %c0_i32_0 : i32, i32, i32
  }
  func.func @transform_3(%arg0: i32) -> (i32, i32) {
    %c0_i32 = arith.constant 0 : i32
    %c0_i32_0 = arith.constant 0 : i32
    %c0_i32_1 = arith.constant 0 : i32
    return %c0_i32, %c0_i32_0 : i32, i32
  }
  func.func @transform_4(%arg0: i32) -> (i32, i32) {
    %c0_i32 = arith.constant 0 : i32
    %c0_i32_0 = arith.constant 0 : i32
    %c0_i32_1 = arith.constant 0 : i32
    return %c0_i32, %c0_i32_0 : i32, i32
  }
  func.func @transform_5(%arg0: i32) -> (i32, i32) {
    %c0_i32 = arith.constant 0 : i32
    %c0_i32_0 = arith.constant 0 : i32
    %c0_i32_1 = arith.constant 0 : i32
    return %c0_i32, %c0_i32_0 : i32, i32
  }
  func.func @transform_6(%arg0: i32) -> (i32, i32) {
    %c0_i32 = arith.constant 0 : i32
    %c0_i32_0 = arith.constant 0 : i32
    %c0_i32_1 = arith.constant 0 : i32
    return %c0_i32, %c0_i32_0 : i32, i32
  }
  func.func @transform_7(%arg0: i32) -> (i32, i32) {
    %c0_i32 = arith.constant 0 : i32
    %c0_i32_0 = arith.constant 0 : i32
    %c0_i32_1 = arith.constant 0 : i32
    return %c0_i32, %c0_i32_0 : i32, i32
  }
  func.func @transform_8(%arg0: i32) -> (i32, i32) {
    %c0_i32 = arith.constant 0 : i32
    %c0_i32_0 = arith.constant 0 : i32
    %c0_i32_1 = arith.constant 0 : i32
    return %c0_i32, %c0_i32_0 : i32, i32
  }
  func.func @transform_9(%arg0: i32) -> (i32, i32) {
    %c0_i32 = arith.constant 0 : i32
    %c0_i32_0 = arith.constant 0 : i32
    %c0_i32_1 = arith.constant 0 : i32
    return %c0_i32, %c0_i32_0 : i32, i32
  }
  func.func @transform_10(%arg0: i32) -> (i32, i32) {
    %c0_i32 = arith.constant 0 : i32
    %c0_i32_0 = arith.constant 0 : i32
    %c0_i32_1 = arith.constant 0 : i32
    return %c0_i32, %c0_i32_0 : i32, i32
  }
  func.func @transform_11(%arg0: i32) -> (i32, i32) {
    %c0_i32 = arith.constant 0 : i32
    %c0_i32_0 = arith.constant 0 : i32
    %c0_i32_1 = arith.constant 0 : i32
    return %c0_i32, %c0_i32_0 : i32, i32
  }
  func.func @transform_12(%arg0: i32) -> (i32, i32) {
    %c0_i32 = arith.constant 0 : i32
    %c0_i32_0 = arith.constant 0 : i32
    %c0_i32_1 = arith.constant 0 : i32
    return %c0_i32, %c0_i32_0 : i32, i32
  }
  func.func @transform_13(%arg0: i32) -> (i32, i32) {
    %c0_i32 = arith.constant 0 : i32
    %c0_i32_0 = arith.constant 0 : i32
    %c0_i32_1 = arith.constant 0 : i32
    return %c0_i32, %c0_i32_0 : i32, i32
  }
  func.func @transform_14(%arg0: i32) -> (i32, i32) {
    %c0_i32 = arith.constant 0 : i32
    %c0_i32_0 = arith.constant 0 : i32
    %c0_i32_1 = arith.constant 0 : i32
    return %c0_i32, %c0_i32_0 : i32, i32
  }
  func.func @transform_15(%arg0: i32) -> (i32, i32, i32) {
    %c0_i32 = arith.constant 0 : i32
    %c0_i32_0 = arith.constant 0 : i32
    %c0_i32_1 = arith.constant 0 : i32
    %c0_i32_2 = arith.constant 0 : i32
    return %c0_i32, %c0_i32_0, %c0_i32_1 : i32, i32, i32
  }
  func.func @transform_16(%arg0: i32) -> (i32, i32) {
    %c0_i32 = arith.constant 0 : i32
    %c0_i32_0 = arith.constant 0 : i32
    %c0_i32_1 = arith.constant 0 : i32
    return %c0_i32, %c0_i32_0 : i32, i32
  }
  func.func @transform_17(%arg0: i32) -> (i32, i32) {
    %c0_i32 = arith.constant 0 : i32
    %c0_i32_0 = arith.constant 0 : i32
    %c0_i32_1 = arith.constant 0 : i32
    return %c0_i32, %c0_i32_0 : i32, i32
  }
  func.func @transform_18(%arg0: i32) -> (i32, i32) {
    %c0_i32 = arith.constant 0 : i32
    %c0_i32_0 = arith.constant 0 : i32
    %c0_i32_1 = arith.constant 0 : i32
    return %c0_i32, %c0_i32_0 : i32, i32
  }
  func.func @transform_19(%arg0: i32) -> (i32, i32) {
    %c0_i32 = arith.constant 0 : i32
    %c0_i32_0 = arith.constant 0 : i32
    %c0_i32_1 = arith.constant 0 : i32
    return %c0_i32, %c0_i32_0 : i32, i32
  }
  func.func @transform_20(%arg0: i32) -> (i32, i32) {
    %c0_i32 = arith.constant 0 : i32
    %c0_i32_0 = arith.constant 0 : i32
    %c0_i32_1 = arith.constant 0 : i32
    return %c0_i32, %c0_i32_0 : i32, i32
  }
  func.func @transform_21(%arg0: i32) -> (i32, i32) {
    %c0_i32 = arith.constant 0 : i32
    %c0_i32_0 = arith.constant 0 : i32
    %c0_i32_1 = arith.constant 0 : i32
    return %c0_i32, %c0_i32_0 : i32, i32
  }
  func.func @transform_22(%arg0: i32) -> (i32, i32) {
    %c0_i32 = arith.constant 0 : i32
    %c0_i32_0 = arith.constant 0 : i32
    %c0_i32_1 = arith.constant 0 : i32
    return %c0_i32, %c0_i32_0 : i32, i32
  }
  func.func @transform_23(%arg0: i32) -> (i32, i32, i32) {
    %c0_i32 = arith.constant 0 : i32
    %c0_i32_0 = arith.constant 0 : i32
    %c0_i32_1 = arith.constant 0 : i32
    return %arg0, %c0_i32, %c0_i32_0 : i32, i32, i32
  }
  func.func @transform_24(%arg0: i32) -> (i32, i32, i32) {
    %c0_i32 = arith.constant 0 : i32
    %c0_i32_0 = arith.constant 0 : i32
    %c0_i32_1 = arith.constant 0 : i32
    return %arg0, %c0_i32, %c0_i32_0 : i32, i32, i32
  }
}

module attributes {stable_mosaic.version = 11 : i64} {
  func.func @mha_layer_kernel(%arg0: i32, %arg1: memref<2x8x32xbf16, #tpu.memory_space<vmem>>, %arg2: memref<2x8x32xbf16, #tpu.memory_space<vmem>>, %arg3: memref<2x8x32xbf16, #tpu.memory_space<vmem>>, %arg4: memref<1x32xf32, #tpu.memory_space<vmem>>, %arg5: memref<1x32xf32, #tpu.memory_space<vmem>>, %arg6: memref<1x32xf32, #tpu.memory_space<vmem>>, %arg7: memref<1x32xf32, #tpu.memory_space<vmem>>, %arg8: memref<1x32xf32, #tpu.memory_space<vmem>>, %arg9: memref<1x32xf32, #tpu.memory_space<vmem>>, %arg10: memref<32x32xbf16, #tpu.memory_space<vmem>>, %arg11: memref<1x32xf32, #tpu.memory_space<vmem>>, %arg12: memref<32x32xbf16, #tpu.memory_space<vmem>>, %arg13: memref<1x32xf32, #tpu.memory_space<vmem>>, %arg14: memref<32x32xbf16, #tpu.memory_space<vmem>>, %arg15: memref<1x32xf32, #tpu.memory_space<vmem>>, %arg16: memref<4x8x32xbf16, #tpu.memory_space<vmem>>, %arg17: memref<1x32xf32, #tpu.memory_space<vmem>>, %arg18: memref<1x32xf32, #tpu.memory_space<vmem>>, %arg19: memref<1x32xf32, #tpu.memory_space<vmem>>, %arg20: memref<32x128xbf16, #tpu.memory_space<vmem>>, %arg21: memref<1x128xf32, #tpu.memory_space<vmem>>, %arg22: memref<128x32xbf16, #tpu.memory_space<vmem>>, %arg23: memref<1x32xf32, #tpu.memory_space<vmem>>, %arg24: memref<2x8x32xf32, #tpu.memory_space<vmem>>, %arg25: memref<2x8x8xf32, #tpu.memory_space<vmem>>) attributes {dimension_semantics = [#tpu.dimension_semantics<parallel>], iteration_bounds = array<i64: 2>, scalar_prefetch = 0 : i64, scratch_operands = 0 : i64, tpu.core_type = #tpu.core_type<tc>, window_params = [{transform_indices = @transform_0, window_bounds = array<i64: 2, 8, 32>}, {transform_indices = @transform_1, window_bounds = array<i64: 2, 8, 32>}, {transform_indices = @transform_2, window_bounds = array<i64: 2, 8, 32>}, {pipeline_mode = #tpu.pipeline_mode<synchronous>, transform_indices = @transform_3, window_bounds = array<i64: 1, 32>}, {pipeline_mode = #tpu.pipeline_mode<synchronous>, transform_indices = @transform_4, window_bounds = array<i64: 1, 32>}, {pipeline_mode = #tpu.pipeline_mode<synchronous>, transform_indices = @transform_5, window_bounds = array<i64: 1, 32>}, {pipeline_mode = #tpu.pipeline_mode<synchronous>, transform_indices = @transform_6, window_bounds = array<i64: 1, 32>}, {pipeline_mode = #tpu.pipeline_mode<synchronous>, transform_indices = @transform_7, window_bounds = array<i64: 1, 32>}, {pipeline_mode = #tpu.pipeline_mode<synchronous>, transform_indices = @transform_8, window_bounds = array<i64: 1, 32>}, {pipeline_mode = #tpu.pipeline_mode<synchronous>, transform_indices = @transform_9, window_bounds = array<i64: 32, 32>}, {pipeline_mode = #tpu.pipeline_mode<synchronous>, transform_indices = @transform_10, window_bounds = array<i64: 1, 32>}, {pipeline_mode = #tpu.pipeline_mode<synchronous>, transform_indices = @transform_11, window_bounds = array<i64: 32, 32>}, {pipeline_mode = #tpu.pipeline_mode<synchronous>, transform_indices = @transform_12, window_bounds = array<i64: 1, 32>}, {pipeline_mode = #tpu.pipeline_mode<synchronous>, transform_indices = @transform_13, window_bounds = array<i64: 32, 32>}, {pipeline_mode = #tpu.pipeline_mode<synchronous>, transform_indices = @transform_14, window_bounds = array<i64: 1, 32>}, {pipeline_mode = #tpu.pipeline_mode<synchronous>, transform_indices = @transform_15, window_bounds = array<i64: 4, 8, 32>}, {pipeline_mode = #tpu.pipeline_mode<synchronous>, transform_indices = @transform_16, window_bounds = array<i64: 1, 32>}, {pipeline_mode = #tpu.pipeline_mode<synchronous>, transform_indices = @transform_17, window_bounds = array<i64: 1, 32>}, {pipeline_mode = #tpu.pipeline_mode<synchronous>, transform_indices = @transform_18, window_bounds = array<i64: 1, 32>}, {pipeline_mode = #tpu.pipeline_mode<synchronous>, transform_indices = @transform_19, window_bounds = array<i64: 32, 128>}, {pipeline_mode = #tpu.pipeline_mode<synchronous>, transform_indices = @transform_20, window_bounds = array<i64: 1, 128>}, {pipeline_mode = #tpu.pipeline_mode<synchronous>, transform_indices = @transform_21, window_bounds = array<i64: 128, 32>}, {pipeline_mode = #tpu.pipeline_mode<synchronous>, transform_indices = @transform_22, window_bounds = array<i64: 1, 32>}, {transform_indices = @transform_23, window_bounds = array<i64: 2, 8, 32>}, {transform_indices = @transform_24, window_bounds = array<i64: 2, 8, 8>}]} {
    %c0 = arith.constant 0 : index
    %c0_0 = arith.constant 0 : index
    %c0_1 = arith.constant 0 : index
    %0 = vector.load %arg1[%c0, %c0_0, %c0_1] : memref<2x8x32xbf16, #tpu.memory_space<vmem>>, vector<2x8x32xbf16>
    %1 = vector.shape_cast %0 : vector<2x8x32xbf16> to vector<16x32xbf16>
    %2 = arith.extf %1 : vector<16x32xbf16> to vector<16x32xf32>
    %c0_2 = arith.constant 0 : index
    %c0_3 = arith.constant 0 : index
    %c0_4 = arith.constant 0 : index
    %3 = vector.load %arg2[%c0_2, %c0_3, %c0_4] : memref<2x8x32xbf16, #tpu.memory_space<vmem>>, vector<2x8x32xbf16>
    %4 = vector.shape_cast %3 : vector<2x8x32xbf16> to vector<16x32xbf16>
    %5 = arith.extf %4 : vector<16x32xbf16> to vector<16x32xf32>
    %c0_5 = arith.constant 0 : index
    %c0_6 = arith.constant 0 : index
    %c0_7 = arith.constant 0 : index
    %6 = vector.load %arg3[%c0_5, %c0_6, %c0_7] : memref<2x8x32xbf16, #tpu.memory_space<vmem>>, vector<2x8x32xbf16>
    %7 = vector.shape_cast %6 : vector<2x8x32xbf16> to vector<16x32xbf16>
    %8 = arith.extf %7 : vector<16x32xbf16> to vector<16x32xf32>
    %c0_8 = arith.constant 0 : index
    %c0_9 = arith.constant 0 : index
    %9 = vector.load %arg4[%c0_8, %c0_9] : memref<1x32xf32, #tpu.memory_space<vmem>>, vector<1x32xf32>
    %c0_10 = arith.constant 0 : index
    %c0_11 = arith.constant 0 : index
    %10 = vector.load %arg5[%c0_10, %c0_11] : memref<1x32xf32, #tpu.memory_space<vmem>>, vector<1x32xf32>
    %cst = arith.constant dense<0.000000e+00> : vector<16xf32>
    %11 = vector.multi_reduction <add>, %2, %cst [1] : vector<16x32xf32> to vector<16xf32>
    %12 = vector.shape_cast %11 : vector<16xf32> to vector<16x1xf32>
    %cst_12 = arith.constant 3.200000e+01 : f32
    %13 = vector.broadcast %cst_12 : f32 to vector<16x1xf32>
    %14 = arith.divf %12, %13 : vector<16x1xf32>
    %15 = vector.broadcast %14 : vector<16x1xf32> to vector<16x32xf32>
    %16 = arith.subf %2, %15 : vector<16x32xf32>
    %17 = arith.mulf %16, %16 : vector<16x32xf32>
    %cst_13 = arith.constant dense<0.000000e+00> : vector<16xf32>
    %18 = vector.multi_reduction <add>, %17, %cst_13 [1] : vector<16x32xf32> to vector<16xf32>
    %19 = vector.shape_cast %18 : vector<16xf32> to vector<16x1xf32>
    %cst_14 = arith.constant 3.200000e+01 : f32
    %20 = vector.broadcast %cst_14 : f32 to vector<16x1xf32>
    %21 = arith.divf %19, %20 : vector<16x1xf32>
    %cst_15 = arith.constant 9.99999974E-6 : f32
    %22 = vector.broadcast %cst_15 : f32 to vector<16x1xf32>
    %23 = arith.addf %21, %22 : vector<16x1xf32>
    %24 = math.rsqrt %23 : vector<16x1xf32>
    %25 = vector.broadcast %24 : vector<16x1xf32> to vector<16x32xf32>
    %26 = arith.mulf %16, %25 : vector<16x32xf32>
    %27 = vector.broadcast %9 : vector<1x32xf32> to vector<16x32xf32>
    %28 = arith.mulf %26, %27 : vector<16x32xf32>
    %29 = vector.broadcast %10 : vector<1x32xf32> to vector<16x32xf32>
    %30 = arith.addf %28, %29 : vector<16x32xf32>
    %c0_16 = arith.constant 0 : index
    %c0_17 = arith.constant 0 : index
    %31 = vector.load %arg6[%c0_16, %c0_17] : memref<1x32xf32, #tpu.memory_space<vmem>>, vector<1x32xf32>
    %c0_18 = arith.constant 0 : index
    %c0_19 = arith.constant 0 : index
    %32 = vector.load %arg7[%c0_18, %c0_19] : memref<1x32xf32, #tpu.memory_space<vmem>>, vector<1x32xf32>
    %cst_20 = arith.constant dense<0.000000e+00> : vector<16xf32>
    %33 = vector.multi_reduction <add>, %5, %cst_20 [1] : vector<16x32xf32> to vector<16xf32>
    %34 = vector.shape_cast %33 : vector<16xf32> to vector<16x1xf32>
    %cst_21 = arith.constant 3.200000e+01 : f32
    %35 = vector.broadcast %cst_21 : f32 to vector<16x1xf32>
    %36 = arith.divf %34, %35 : vector<16x1xf32>
    %37 = vector.broadcast %36 : vector<16x1xf32> to vector<16x32xf32>
    %38 = arith.subf %5, %37 : vector<16x32xf32>
    %39 = arith.mulf %38, %38 : vector<16x32xf32>
    %cst_22 = arith.constant dense<0.000000e+00> : vector<16xf32>
    %40 = vector.multi_reduction <add>, %39, %cst_22 [1] : vector<16x32xf32> to vector<16xf32>
    %41 = vector.shape_cast %40 : vector<16xf32> to vector<16x1xf32>
    %cst_23 = arith.constant 3.200000e+01 : f32
    %42 = vector.broadcast %cst_23 : f32 to vector<16x1xf32>
    %43 = arith.divf %41, %42 : vector<16x1xf32>
    %cst_24 = arith.constant 9.99999974E-6 : f32
    %44 = vector.broadcast %cst_24 : f32 to vector<16x1xf32>
    %45 = arith.addf %43, %44 : vector<16x1xf32>
    %46 = math.rsqrt %45 : vector<16x1xf32>
    %47 = vector.broadcast %46 : vector<16x1xf32> to vector<16x32xf32>
    %48 = arith.mulf %38, %47 : vector<16x32xf32>
    %49 = vector.broadcast %31 : vector<1x32xf32> to vector<16x32xf32>
    %50 = arith.mulf %48, %49 : vector<16x32xf32>
    %51 = vector.broadcast %32 : vector<1x32xf32> to vector<16x32xf32>
    %52 = arith.addf %50, %51 : vector<16x32xf32>
    %c0_25 = arith.constant 0 : index
    %c0_26 = arith.constant 0 : index
    %53 = vector.load %arg8[%c0_25, %c0_26] : memref<1x32xf32, #tpu.memory_space<vmem>>, vector<1x32xf32>
    %c0_27 = arith.constant 0 : index
    %c0_28 = arith.constant 0 : index
    %54 = vector.load %arg9[%c0_27, %c0_28] : memref<1x32xf32, #tpu.memory_space<vmem>>, vector<1x32xf32>
    %cst_29 = arith.constant dense<0.000000e+00> : vector<16xf32>
    %55 = vector.multi_reduction <add>, %8, %cst_29 [1] : vector<16x32xf32> to vector<16xf32>
    %56 = vector.shape_cast %55 : vector<16xf32> to vector<16x1xf32>
    %cst_30 = arith.constant 3.200000e+01 : f32
    %57 = vector.broadcast %cst_30 : f32 to vector<16x1xf32>
    %58 = arith.divf %56, %57 : vector<16x1xf32>
    %59 = vector.broadcast %58 : vector<16x1xf32> to vector<16x32xf32>
    %60 = arith.subf %8, %59 : vector<16x32xf32>
    %61 = arith.mulf %60, %60 : vector<16x32xf32>
    %cst_31 = arith.constant dense<0.000000e+00> : vector<16xf32>
    %62 = vector.multi_reduction <add>, %61, %cst_31 [1] : vector<16x32xf32> to vector<16xf32>
    %63 = vector.shape_cast %62 : vector<16xf32> to vector<16x1xf32>
    %cst_32 = arith.constant 3.200000e+01 : f32
    %64 = vector.broadcast %cst_32 : f32 to vector<16x1xf32>
    %65 = arith.divf %63, %64 : vector<16x1xf32>
    %cst_33 = arith.constant 9.99999974E-6 : f32
    %66 = vector.broadcast %cst_33 : f32 to vector<16x1xf32>
    %67 = arith.addf %65, %66 : vector<16x1xf32>
    %68 = math.rsqrt %67 : vector<16x1xf32>
    %69 = vector.broadcast %68 : vector<16x1xf32> to vector<16x32xf32>
    %70 = arith.mulf %60, %69 : vector<16x32xf32>
    %71 = vector.broadcast %53 : vector<1x32xf32> to vector<16x32xf32>
    %72 = arith.mulf %70, %71 : vector<16x32xf32>
    %73 = vector.broadcast %54 : vector<1x32xf32> to vector<16x32xf32>
    %74 = arith.addf %72, %73 : vector<16x32xf32>
    %75 = arith.truncf %30 : vector<16x32xf32> to vector<16x32xbf16>
    %c0_34 = arith.constant 0 : index
    %c0_35 = arith.constant 0 : index
    %76 = vector.load %arg10[%c0_34, %c0_35] : memref<32x32xbf16, #tpu.memory_space<vmem>>, vector<32x32xbf16>
    %cst_36 = arith.constant dense<0.000000e+00> : vector<16x32xf32>
    %77 = tpu.matmul %75, %76, %cst_36 {dimension_numbers = #tpu.dot_dimension_numbers<[1], [0], [0], [1], [0, 0, 1, 1], [], []>} : vector<16x32xbf16>, vector<32x32xbf16>, vector<16x32xf32> -> vector<16x32xf32>
    %c0_37 = arith.constant 0 : index
    %c0_38 = arith.constant 0 : index
    %78 = vector.load %arg11[%c0_37, %c0_38] : memref<1x32xf32, #tpu.memory_space<vmem>>, vector<1x32xf32>
    %79 = vector.broadcast %78 : vector<1x32xf32> to vector<16x32xf32>
    %80 = arith.addf %77, %79 : vector<16x32xf32>
    %81 = arith.truncf %80 : vector<16x32xf32> to vector<16x32xbf16>
    %82 = arith.truncf %52 : vector<16x32xf32> to vector<16x32xbf16>
    %c0_39 = arith.constant 0 : index
    %c0_40 = arith.constant 0 : index
    %83 = vector.load %arg12[%c0_39, %c0_40] : memref<32x32xbf16, #tpu.memory_space<vmem>>, vector<32x32xbf16>
    %cst_41 = arith.constant dense<0.000000e+00> : vector<16x32xf32>
    %84 = tpu.matmul %82, %83, %cst_41 {dimension_numbers = #tpu.dot_dimension_numbers<[1], [0], [0], [1], [0, 0, 1, 1], [], []>} : vector<16x32xbf16>, vector<32x32xbf16>, vector<16x32xf32> -> vector<16x32xf32>
    %c0_42 = arith.constant 0 : index
    %c0_43 = arith.constant 0 : index
    %85 = vector.load %arg13[%c0_42, %c0_43] : memref<1x32xf32, #tpu.memory_space<vmem>>, vector<1x32xf32>
    %86 = vector.broadcast %85 : vector<1x32xf32> to vector<16x32xf32>
    %87 = arith.addf %84, %86 : vector<16x32xf32>
    %88 = arith.truncf %87 : vector<16x32xf32> to vector<16x32xbf16>
    %89 = arith.truncf %74 : vector<16x32xf32> to vector<16x32xbf16>
    %c0_44 = arith.constant 0 : index
    %c0_45 = arith.constant 0 : index
    %90 = vector.load %arg14[%c0_44, %c0_45] : memref<32x32xbf16, #tpu.memory_space<vmem>>, vector<32x32xbf16>
    %cst_46 = arith.constant dense<0.000000e+00> : vector<16x32xf32>
    %91 = tpu.matmul %89, %90, %cst_46 {dimension_numbers = #tpu.dot_dimension_numbers<[1], [0], [0], [1], [0, 0, 1, 1], [], []>} : vector<16x32xbf16>, vector<32x32xbf16>, vector<16x32xf32> -> vector<16x32xf32>
    %c0_47 = arith.constant 0 : index
    %c0_48 = arith.constant 0 : index
    %92 = vector.load %arg15[%c0_47, %c0_48] : memref<1x32xf32, #tpu.memory_space<vmem>>, vector<1x32xf32>
    %93 = vector.broadcast %92 : vector<1x32xf32> to vector<16x32xf32>
    %94 = arith.addf %91, %93 : vector<16x32xf32>
    %95 = arith.truncf %94 : vector<16x32xf32> to vector<16x32xbf16>
    %96 = vector.shape_cast %81 : vector<16x32xbf16> to vector<2x8x32xbf16>
    %97 = vector.shape_cast %88 : vector<16x32xbf16> to vector<2x8x32xbf16>
    %98 = vector.shape_cast %95 : vector<16x32xbf16> to vector<2x8x32xbf16>
    %cst_49 = arith.constant 0.000000e+00 : f32
    %99 = vector.broadcast %cst_49 : f32 to vector<16x32xf32>
    %cst_50 = arith.constant 0.000000e+00 : f32
    %100 = vector.broadcast %cst_50 : f32 to vector<2x8x8xf32>
    %101 = vector.extract_strided_slice %96 {offsets = [0, 0, 0], sizes = [2, 8, 8], strides = [1, 1, 1]} : vector<2x8x32xbf16> to vector<2x8x8xbf16>
    %102 = vector.extract_strided_slice %97 {offsets = [0, 0, 0], sizes = [2, 8, 8], strides = [1, 1, 1]} : vector<2x8x32xbf16> to vector<2x8x8xbf16>
    %103 = vector.extract_strided_slice %98 {offsets = [0, 0, 0], sizes = [2, 8, 8], strides = [1, 1, 1]} : vector<2x8x32xbf16> to vector<2x8x8xbf16>
    "tpu.trace_start"() <{level = 10 : i32, message = "bqd,bkd->bqk"}> : () -> ()
    %cst_51 = arith.constant dense<0.000000e+00> : vector<2x8x8xf32>
    %104 = tpu.matmul %101, %102, %cst_51 {dimension_numbers = #tpu.dot_dimension_numbers<[2], [2], [1], [1], [0, 0, 0, 1, 1, 1], [0], [0]>} : vector<2x8x8xbf16>, vector<2x8x8xbf16>, vector<2x8x8xf32> -> vector<2x8x8xf32>
    "tpu.trace_stop"() : () -> ()
    %cst_52 = arith.constant dense<0xFF800000> : vector<2x8xf32>
    %105 = vector.multi_reduction <maximumf>, %104, %cst_52 [2] : vector<2x8x8xf32> to vector<2x8xf32>
    %106 = vector.shape_cast %105 : vector<2x8xf32> to vector<2x8x1xf32>
    %107 = vector.broadcast %106 : vector<2x8x1xf32> to vector<2x8x8xf32>
    %108 = arith.subf %104, %107 : vector<2x8x8xf32>
    %109 = math.exp %108 : vector<2x8x8xf32>
    %cst_53 = arith.constant dense<0.000000e+00> : vector<2x8xf32>
    %110 = vector.multi_reduction <add>, %109, %cst_53 [2] : vector<2x8x8xf32> to vector<2x8xf32>
    %111 = vector.shape_cast %110 : vector<2x8xf32> to vector<2x8x1xf32>
    %112 = tpu.reciprocal %111 {approx = true} : vector<2x8x1xf32> -> vector<2x8x1xf32>
    %113 = vector.broadcast %112 : vector<2x8x1xf32> to vector<2x8x8xf32>
    %114 = arith.mulf %109, %113 : vector<2x8x8xf32>
    %115 = arith.addf %100, %114 : vector<2x8x8xf32>
    %116 = arith.truncf %114 : vector<2x8x8xf32> to vector<2x8x8xbf16>
    "tpu.trace_start"() <{level = 10 : i32, message = "bqk,bkd->bqd"}> : () -> ()
    %cst_54 = arith.constant dense<0.000000e+00> : vector<2x8x8xf32>
    %117 = tpu.matmul %116, %103, %cst_54 {dimension_numbers = #tpu.dot_dimension_numbers<[2], [1], [1], [2], [0, 0, 0, 1, 1, 2], [0], [0]>} : vector<2x8x8xbf16>, vector<2x8x8xbf16>, vector<2x8x8xf32> -> vector<2x8x8xf32>
    "tpu.trace_stop"() : () -> ()
    %118 = vector.shape_cast %117 : vector<2x8x8xf32> to vector<16x8xf32>
    %119 = arith.truncf %118 : vector<16x8xf32> to vector<16x8xbf16>
    %c0_55 = arith.constant 0 : index
    %c0_56 = arith.constant 0 : index
    %c0_57 = arith.constant 0 : index
    %120 = vector.load %arg16[%c0_55, %c0_56, %c0_57] : memref<4x8x32xbf16, #tpu.memory_space<vmem>>, vector<1x8x32xbf16>
    %121 = vector.shape_cast %120 : vector<1x8x32xbf16> to vector<8x32xbf16>
    %cst_58 = arith.constant dense<0.000000e+00> : vector<16x32xf32>
    %122 = tpu.matmul %119, %121, %cst_58 {dimension_numbers = #tpu.dot_dimension_numbers<[1], [0], [0], [1], [0, 0, 1, 1], [], []>} : vector<16x8xbf16>, vector<8x32xbf16>, vector<16x32xf32> -> vector<16x32xf32>
    %123 = arith.addf %99, %122 : vector<16x32xf32>
    %124 = vector.extract_strided_slice %96 {offsets = [0, 0, 8], sizes = [2, 8, 8], strides = [1, 1, 1]} : vector<2x8x32xbf16> to vector<2x8x8xbf16>
    %125 = vector.extract_strided_slice %97 {offsets = [0, 0, 8], sizes = [2, 8, 8], strides = [1, 1, 1]} : vector<2x8x32xbf16> to vector<2x8x8xbf16>
    %126 = vector.extract_strided_slice %98 {offsets = [0, 0, 8], sizes = [2, 8, 8], strides = [1, 1, 1]} : vector<2x8x32xbf16> to vector<2x8x8xbf16>
    "tpu.trace_start"() <{level = 10 : i32, message = "bqd,bkd->bqk"}> : () -> ()
    %cst_59 = arith.constant dense<0.000000e+00> : vector<2x8x8xf32>
    %127 = tpu.matmul %124, %125, %cst_59 {dimension_numbers = #tpu.dot_dimension_numbers<[2], [2], [1], [1], [0, 0, 0, 1, 1, 1], [0], [0]>} : vector<2x8x8xbf16>, vector<2x8x8xbf16>, vector<2x8x8xf32> -> vector<2x8x8xf32>
    "tpu.trace_stop"() : () -> ()
    %cst_60 = arith.constant dense<0xFF800000> : vector<2x8xf32>
    %128 = vector.multi_reduction <maximumf>, %127, %cst_60 [2] : vector<2x8x8xf32> to vector<2x8xf32>
    %129 = vector.shape_cast %128 : vector<2x8xf32> to vector<2x8x1xf32>
    %130 = vector.broadcast %129 : vector<2x8x1xf32> to vector<2x8x8xf32>
    %131 = arith.subf %127, %130 : vector<2x8x8xf32>
    %132 = math.exp %131 : vector<2x8x8xf32>
    %cst_61 = arith.constant dense<0.000000e+00> : vector<2x8xf32>
    %133 = vector.multi_reduction <add>, %132, %cst_61 [2] : vector<2x8x8xf32> to vector<2x8xf32>
    %134 = vector.shape_cast %133 : vector<2x8xf32> to vector<2x8x1xf32>
    %135 = tpu.reciprocal %134 {approx = true} : vector<2x8x1xf32> -> vector<2x8x1xf32>
    %136 = vector.broadcast %135 : vector<2x8x1xf32> to vector<2x8x8xf32>
    %137 = arith.mulf %132, %136 : vector<2x8x8xf32>
    %138 = arith.addf %115, %137 : vector<2x8x8xf32>
    %139 = arith.truncf %137 : vector<2x8x8xf32> to vector<2x8x8xbf16>
    "tpu.trace_start"() <{level = 10 : i32, message = "bqk,bkd->bqd"}> : () -> ()
    %cst_62 = arith.constant dense<0.000000e+00> : vector<2x8x8xf32>
    %140 = tpu.matmul %139, %126, %cst_62 {dimension_numbers = #tpu.dot_dimension_numbers<[2], [1], [1], [2], [0, 0, 0, 1, 1, 2], [0], [0]>} : vector<2x8x8xbf16>, vector<2x8x8xbf16>, vector<2x8x8xf32> -> vector<2x8x8xf32>
    "tpu.trace_stop"() : () -> ()
    %141 = vector.shape_cast %140 : vector<2x8x8xf32> to vector<16x8xf32>
    %142 = arith.truncf %141 : vector<16x8xf32> to vector<16x8xbf16>
    %c1 = arith.constant 1 : index
    %c0_63 = arith.constant 0 : index
    %c0_64 = arith.constant 0 : index
    %143 = vector.load %arg16[%c1, %c0_63, %c0_64] : memref<4x8x32xbf16, #tpu.memory_space<vmem>>, vector<1x8x32xbf16>
    %144 = vector.shape_cast %143 : vector<1x8x32xbf16> to vector<8x32xbf16>
    %cst_65 = arith.constant dense<0.000000e+00> : vector<16x32xf32>
    %145 = tpu.matmul %142, %144, %cst_65 {dimension_numbers = #tpu.dot_dimension_numbers<[1], [0], [0], [1], [0, 0, 1, 1], [], []>} : vector<16x8xbf16>, vector<8x32xbf16>, vector<16x32xf32> -> vector<16x32xf32>
    %146 = arith.addf %123, %145 : vector<16x32xf32>
    %147 = vector.extract_strided_slice %96 {offsets = [0, 0, 16], sizes = [2, 8, 8], strides = [1, 1, 1]} : vector<2x8x32xbf16> to vector<2x8x8xbf16>
    %148 = vector.extract_strided_slice %97 {offsets = [0, 0, 16], sizes = [2, 8, 8], strides = [1, 1, 1]} : vector<2x8x32xbf16> to vector<2x8x8xbf16>
    %149 = vector.extract_strided_slice %98 {offsets = [0, 0, 16], sizes = [2, 8, 8], strides = [1, 1, 1]} : vector<2x8x32xbf16> to vector<2x8x8xbf16>
    "tpu.trace_start"() <{level = 10 : i32, message = "bqd,bkd->bqk"}> : () -> ()
    %cst_66 = arith.constant dense<0.000000e+00> : vector<2x8x8xf32>
    %150 = tpu.matmul %147, %148, %cst_66 {dimension_numbers = #tpu.dot_dimension_numbers<[2], [2], [1], [1], [0, 0, 0, 1, 1, 1], [0], [0]>} : vector<2x8x8xbf16>, vector<2x8x8xbf16>, vector<2x8x8xf32> -> vector<2x8x8xf32>
    "tpu.trace_stop"() : () -> ()
    %cst_67 = arith.constant dense<0xFF800000> : vector<2x8xf32>
    %151 = vector.multi_reduction <maximumf>, %150, %cst_67 [2] : vector<2x8x8xf32> to vector<2x8xf32>
    %152 = vector.shape_cast %151 : vector<2x8xf32> to vector<2x8x1xf32>
    %153 = vector.broadcast %152 : vector<2x8x1xf32> to vector<2x8x8xf32>
    %154 = arith.subf %150, %153 : vector<2x8x8xf32>
    %155 = math.exp %154 : vector<2x8x8xf32>
    %cst_68 = arith.constant dense<0.000000e+00> : vector<2x8xf32>
    %156 = vector.multi_reduction <add>, %155, %cst_68 [2] : vector<2x8x8xf32> to vector<2x8xf32>
    %157 = vector.shape_cast %156 : vector<2x8xf32> to vector<2x8x1xf32>
    %158 = tpu.reciprocal %157 {approx = true} : vector<2x8x1xf32> -> vector<2x8x1xf32>
    %159 = vector.broadcast %158 : vector<2x8x1xf32> to vector<2x8x8xf32>
    %160 = arith.mulf %155, %159 : vector<2x8x8xf32>
    %161 = arith.addf %138, %160 : vector<2x8x8xf32>
    %162 = arith.truncf %160 : vector<2x8x8xf32> to vector<2x8x8xbf16>
    "tpu.trace_start"() <{level = 10 : i32, message = "bqk,bkd->bqd"}> : () -> ()
    %cst_69 = arith.constant dense<0.000000e+00> : vector<2x8x8xf32>
    %163 = tpu.matmul %162, %149, %cst_69 {dimension_numbers = #tpu.dot_dimension_numbers<[2], [1], [1], [2], [0, 0, 0, 1, 1, 2], [0], [0]>} : vector<2x8x8xbf16>, vector<2x8x8xbf16>, vector<2x8x8xf32> -> vector<2x8x8xf32>
    "tpu.trace_stop"() : () -> ()
    %164 = vector.shape_cast %163 : vector<2x8x8xf32> to vector<16x8xf32>
    %165 = arith.truncf %164 : vector<16x8xf32> to vector<16x8xbf16>
    %c2 = arith.constant 2 : index
    %c0_70 = arith.constant 0 : index
    %c0_71 = arith.constant 0 : index
    %166 = vector.load %arg16[%c2, %c0_70, %c0_71] : memref<4x8x32xbf16, #tpu.memory_space<vmem>>, vector<1x8x32xbf16>
    %167 = vector.shape_cast %166 : vector<1x8x32xbf16> to vector<8x32xbf16>
    %cst_72 = arith.constant dense<0.000000e+00> : vector<16x32xf32>
    %168 = tpu.matmul %165, %167, %cst_72 {dimension_numbers = #tpu.dot_dimension_numbers<[1], [0], [0], [1], [0, 0, 1, 1], [], []>} : vector<16x8xbf16>, vector<8x32xbf16>, vector<16x32xf32> -> vector<16x32xf32>
    %169 = arith.addf %146, %168 : vector<16x32xf32>
    %170 = vector.extract_strided_slice %96 {offsets = [0, 0, 24], sizes = [2, 8, 8], strides = [1, 1, 1]} : vector<2x8x32xbf16> to vector<2x8x8xbf16>
    %171 = vector.extract_strided_slice %97 {offsets = [0, 0, 24], sizes = [2, 8, 8], strides = [1, 1, 1]} : vector<2x8x32xbf16> to vector<2x8x8xbf16>
    %172 = vector.extract_strided_slice %98 {offsets = [0, 0, 24], sizes = [2, 8, 8], strides = [1, 1, 1]} : vector<2x8x32xbf16> to vector<2x8x8xbf16>
    "tpu.trace_start"() <{level = 10 : i32, message = "bqd,bkd->bqk"}> : () -> ()
    %cst_73 = arith.constant dense<0.000000e+00> : vector<2x8x8xf32>
    %173 = tpu.matmul %170, %171, %cst_73 {dimension_numbers = #tpu.dot_dimension_numbers<[2], [2], [1], [1], [0, 0, 0, 1, 1, 1], [0], [0]>} : vector<2x8x8xbf16>, vector<2x8x8xbf16>, vector<2x8x8xf32> -> vector<2x8x8xf32>
    "tpu.trace_stop"() : () -> ()
    %cst_74 = arith.constant dense<0xFF800000> : vector<2x8xf32>
    %174 = vector.multi_reduction <maximumf>, %173, %cst_74 [2] : vector<2x8x8xf32> to vector<2x8xf32>
    %175 = vector.shape_cast %174 : vector<2x8xf32> to vector<2x8x1xf32>
    %176 = vector.broadcast %175 : vector<2x8x1xf32> to vector<2x8x8xf32>
    %177 = arith.subf %173, %176 : vector<2x8x8xf32>
    %178 = math.exp %177 : vector<2x8x8xf32>
    %cst_75 = arith.constant dense<0.000000e+00> : vector<2x8xf32>
    %179 = vector.multi_reduction <add>, %178, %cst_75 [2] : vector<2x8x8xf32> to vector<2x8xf32>
    %180 = vector.shape_cast %179 : vector<2x8xf32> to vector<2x8x1xf32>
    %181 = tpu.reciprocal %180 {approx = true} : vector<2x8x1xf32> -> vector<2x8x1xf32>
    %182 = vector.broadcast %181 : vector<2x8x1xf32> to vector<2x8x8xf32>
    %183 = arith.mulf %178, %182 : vector<2x8x8xf32>
    %184 = arith.addf %161, %183 : vector<2x8x8xf32>
    %185 = arith.truncf %183 : vector<2x8x8xf32> to vector<2x8x8xbf16>
    "tpu.trace_start"() <{level = 10 : i32, message = "bqk,bkd->bqd"}> : () -> ()
    %cst_76 = arith.constant dense<0.000000e+00> : vector<2x8x8xf32>
    %186 = tpu.matmul %185, %172, %cst_76 {dimension_numbers = #tpu.dot_dimension_numbers<[2], [1], [1], [2], [0, 0, 0, 1, 1, 2], [0], [0]>} : vector<2x8x8xbf16>, vector<2x8x8xbf16>, vector<2x8x8xf32> -> vector<2x8x8xf32>
    "tpu.trace_stop"() : () -> ()
    %187 = vector.shape_cast %186 : vector<2x8x8xf32> to vector<16x8xf32>
    %188 = arith.truncf %187 : vector<16x8xf32> to vector<16x8xbf16>
    %c3 = arith.constant 3 : index
    %c0_77 = arith.constant 0 : index
    %c0_78 = arith.constant 0 : index
    %189 = vector.load %arg16[%c3, %c0_77, %c0_78] : memref<4x8x32xbf16, #tpu.memory_space<vmem>>, vector<1x8x32xbf16>
    %190 = vector.shape_cast %189 : vector<1x8x32xbf16> to vector<8x32xbf16>
    %cst_79 = arith.constant dense<0.000000e+00> : vector<16x32xf32>
    %191 = tpu.matmul %188, %190, %cst_79 {dimension_numbers = #tpu.dot_dimension_numbers<[1], [0], [0], [1], [0, 0, 1, 1], [], []>} : vector<16x8xbf16>, vector<8x32xbf16>, vector<16x32xf32> -> vector<16x32xf32>
    %192 = arith.addf %169, %191 : vector<16x32xf32>
    %cst_80 = arith.constant 2.500000e-01 : f32
    %193 = vector.broadcast %cst_80 : f32 to vector<2x8x8xf32>
    %194 = arith.mulf %184, %193 : vector<2x8x8xf32>
    %c0_81 = arith.constant 0 : index
    %c0_82 = arith.constant 0 : index
    %c0_83 = arith.constant 0 : index
    %195 = vector.load %arg25[%c0_81, %c0_82, %c0_83] : memref<2x8x8xf32, #tpu.memory_space<vmem>>, vector<2x8x8xf32>
    tpu.vector_store %arg25[%c0_81, %c0_82, %c0_83], %194 {strides = array<i32>} : memref<2x8x8xf32, #tpu.memory_space<vmem>>, vector<2x8x8xf32>,
    %c0_84 = arith.constant 0 : index
    %c0_85 = arith.constant 0 : index
    %196 = vector.load %arg17[%c0_84, %c0_85] : memref<1x32xf32, #tpu.memory_space<vmem>>, vector<1x32xf32>
    %197 = vector.broadcast %196 : vector<1x32xf32> to vector<16x32xf32>
    %198 = arith.addf %192, %197 : vector<16x32xf32>
    %199 = arith.addf %2, %198 : vector<16x32xf32>
    %c0_86 = arith.constant 0 : index
    %c0_87 = arith.constant 0 : index
    %200 = vector.load %arg18[%c0_86, %c0_87] : memref<1x32xf32, #tpu.memory_space<vmem>>, vector<1x32xf32>
    %c0_88 = arith.constant 0 : index
    %c0_89 = arith.constant 0 : index
    %201 = vector.load %arg19[%c0_88, %c0_89] : memref<1x32xf32, #tpu.memory_space<vmem>>, vector<1x32xf32>
    %cst_90 = arith.constant dense<0.000000e+00> : vector<16xf32>
    %202 = vector.multi_reduction <add>, %199, %cst_90 [1] : vector<16x32xf32> to vector<16xf32>
    %203 = vector.shape_cast %202 : vector<16xf32> to vector<16x1xf32>
    %cst_91 = arith.constant 3.200000e+01 : f32
    %204 = vector.broadcast %cst_91 : f32 to vector<16x1xf32>
    %205 = arith.divf %203, %204 : vector<16x1xf32>
    %206 = vector.broadcast %205 : vector<16x1xf32> to vector<16x32xf32>
    %207 = arith.subf %199, %206 : vector<16x32xf32>
    %208 = arith.mulf %207, %207 : vector<16x32xf32>
    %cst_92 = arith.constant dense<0.000000e+00> : vector<16xf32>
    %209 = vector.multi_reduction <add>, %208, %cst_92 [1] : vector<16x32xf32> to vector<16xf32>
    %210 = vector.shape_cast %209 : vector<16xf32> to vector<16x1xf32>
    %cst_93 = arith.constant 3.200000e+01 : f32
    %211 = vector.broadcast %cst_93 : f32 to vector<16x1xf32>
    %212 = arith.divf %210, %211 : vector<16x1xf32>
    %cst_94 = arith.constant 9.99999974E-6 : f32
    %213 = vector.broadcast %cst_94 : f32 to vector<16x1xf32>
    %214 = arith.addf %212, %213 : vector<16x1xf32>
    %215 = math.rsqrt %214 : vector<16x1xf32>
    %216 = vector.broadcast %215 : vector<16x1xf32> to vector<16x32xf32>
    %217 = arith.mulf %207, %216 : vector<16x32xf32>
    %218 = vector.broadcast %200 : vector<1x32xf32> to vector<16x32xf32>
    %219 = arith.mulf %217, %218 : vector<16x32xf32>
    %220 = vector.broadcast %201 : vector<1x32xf32> to vector<16x32xf32>
    %221 = arith.addf %219, %220 : vector<16x32xf32>
    %222 = arith.truncf %221 : vector<16x32xf32> to vector<16x32xbf16>
    %c0_95 = arith.constant 0 : index
    %c0_96 = arith.constant 0 : index
    %223 = vector.load %arg20[%c0_95, %c0_96] : memref<32x128xbf16, #tpu.memory_space<vmem>>, vector<32x128xbf16>
    %cst_97 = arith.constant dense<0.000000e+00> : vector<16x128xf32>
    %224 = tpu.matmul %222, %223, %cst_97 {dimension_numbers = #tpu.dot_dimension_numbers<[1], [0], [0], [1], [0, 0, 1, 1], [], []>} : vector<16x32xbf16>, vector<32x128xbf16>, vector<16x128xf32> -> vector<16x128xf32>
    %c0_98 = arith.constant 0 : index
    %c0_99 = arith.constant 0 : index
    %225 = vector.load %arg21[%c0_98, %c0_99] : memref<1x128xf32, #tpu.memory_space<vmem>>, vector<1x128xf32>
    %226 = vector.broadcast %225 : vector<1x128xf32> to vector<16x128xf32>
    %227 = arith.addf %224, %226 : vector<16x128xf32>
    %cst_100 = arith.constant 5.000000e-01 : f32
    %228 = vector.broadcast %cst_100 : f32 to vector<16x128xf32>
    %229 = arith.mulf %228, %227 : vector<16x128xf32>
    %230 = arith.mulf %227, %227 : vector<16x128xf32>
    %231 = arith.mulf %230, %227 : vector<16x128xf32>
    %cst_101 = arith.constant 4.471500e-02 : f32
    %232 = vector.broadcast %cst_101 : f32 to vector<16x128xf32>
    %233 = arith.mulf %232, %231 : vector<16x128xf32>
    %234 = arith.addf %227, %233 : vector<16x128xf32>
    %cst_102 = arith.constant 0.797884583 : f32
    %235 = vector.broadcast %cst_102 : f32 to vector<16x128xf32>
    %236 = arith.mulf %235, %234 : vector<16x128xf32>
    %237 = math.tanh %236 : vector<16x128xf32>
    %cst_103 = arith.constant 1.000000e+00 : f32
    %238 = vector.broadcast %cst_103 : f32 to vector<16x128xf32>
    %239 = arith.addf %238, %237 : vector<16x128xf32>
    %240 = arith.mulf %229, %239 : vector<16x128xf32>
    %241 = arith.truncf %240 : vector<16x128xf32> to vector<16x128xbf16>
    %c0_104 = arith.constant 0 : index
    %c0_105 = arith.constant 0 : index
    %242 = vector.load %arg22[%c0_104, %c0_105] : memref<128x32xbf16, #tpu.memory_space<vmem>>, vector<128x32xbf16>
    %cst_106 = arith.constant dense<0.000000e+00> : vector<16x32xf32>
    %243 = tpu.matmul %241, %242, %cst_106 {dimension_numbers = #tpu.dot_dimension_numbers<[1], [0], [0], [1], [0, 0, 1, 1], [], []>} : vector<16x128xbf16>, vector<128x32xbf16>, vector<16x32xf32> -> vector<16x32xf32>
    %c0_107 = arith.constant 0 : index
    %c0_108 = arith.constant 0 : index
    %244 = vector.load %arg23[%c0_107, %c0_108] : memref<1x32xf32, #tpu.memory_space<vmem>>, vector<1x32xf32>
    %245 = vector.broadcast %244 : vector<1x32xf32> to vector<16x32xf32>
    %246 = arith.addf %243, %245 : vector<16x32xf32>
    %247 = arith.addf %199, %246 : vector<16x32xf32>
    %248 = vector.shape_cast %247 : vector<16x32xf32> to vector<2x8x32xf32>
    %c0_109 = arith.constant 0 : index
    %c0_110 = arith.constant 0 : index
    %c0_111 = arith.constant 0 : index
    %249 = vector.load %arg24[%c0_109, %c0_110, %c0_111] : memref<2x8x32xf32, #tpu.memory_space<vmem>>, vector<2x8x32xf32>
    tpu.vector_store %arg24[%c0_109, %c0_110, %c0_111], %248 {strides = array<i32>} : memref<2x8x32xf32, #tpu.memory_space<vmem>>, vector<2x8x32xf32>,
    return
  }
  func.func @transform_0(%arg0: i32) -> (i32, i32, i32) {
    %c0_i32 = arith.constant 0 : i32
    %c0_i32_0 = arith.constant 0 : i32
    %c0_i32_1 = arith.constant 0 : i32
    return %arg0, %c0_i32, %c0_i32_0 : i32, i32, i32
  }
  func.func @transform_1(%arg0: i32) -> (i32, i32, i32) {
    %c0_i32 = arith.constant 0 : i32
    %c0_i32_0 = arith.constant 0 : i32
    %c0_i32_1 = arith.constant 0 : i32
    return %arg0, %c0_i32, %c0_i32_0 : i32, i32, i32
  }
  func.func @transform_2(%arg0: i32) -> (i32, i32, i32) {
    %c0_i32 = arith.constant 0 : i32
    %c0_i32_0 = arith.constant 0 : i32
    %c0_i32_1 = arith.constant 0 : i32
    return %arg0, %c0_i32, %c0_i32_0 : i32, i32, i32
  }
  func.func @transform_3(%arg0: i32) -> (i32, i32) {
    %c0_i32 = arith.constant 0 : i32
    %c0_i32_0 = arith.constant 0 : i32
    %c0_i32_1 = arith.constant 0 : i32
    return %c0_i32, %c0_i32_0 : i32, i32
  }
  func.func @transform_4(%arg0: i32) -> (i32, i32) {
    %c0_i32 = arith.constant 0 : i32
    %c0_i32_0 = arith.constant 0 : i32
    %c0_i32_1 = arith.constant 0 : i32
    return %c0_i32, %c0_i32_0 : i32, i32
  }
  func.func @transform_5(%arg0: i32) -> (i32, i32) {
    %c0_i32 = arith.constant 0 : i32
    %c0_i32_0 = arith.constant 0 : i32
    %c0_i32_1 = arith.constant 0 : i32
    return %c0_i32, %c0_i32_0 : i32, i32
  }
  func.func @transform_6(%arg0: i32) -> (i32, i32) {
    %c0_i32 = arith.constant 0 : i32
    %c0_i32_0 = arith.constant 0 : i32
    %c0_i32_1 = arith.constant 0 : i32
    return %c0_i32, %c0_i32_0 : i32, i32
  }
  func.func @transform_7(%arg0: i32) -> (i32, i32) {
    %c0_i32 = arith.constant 0 : i32
    %c0_i32_0 = arith.constant 0 : i32
    %c0_i32_1 = arith.constant 0 : i32
    return %c0_i32, %c0_i32_0 : i32, i32
  }
  func.func @transform_8(%arg0: i32) -> (i32, i32) {
    %c0_i32 = arith.constant 0 : i32
    %c0_i32_0 = arith.constant 0 : i32
    %c0_i32_1 = arith.constant 0 : i32
    return %c0_i32, %c0_i32_0 : i32, i32
  }
  func.func @transform_9(%arg0: i32) -> (i32, i32) {
    %c0_i32 = arith.constant 0 : i32
    %c0_i32_0 = arith.constant 0 : i32
    %c0_i32_1 = arith.constant 0 : i32
    return %c0_i32, %c0_i32_0 : i32, i32
  }
  func.func @transform_10(%arg0: i32) -> (i32, i32) {
    %c0_i32 = arith.constant 0 : i32
    %c0_i32_0 = arith.constant 0 : i32
    %c0_i32_1 = arith.constant 0 : i32
    return %c0_i32, %c0_i32_0 : i32, i32
  }
  func.func @transform_11(%arg0: i32) -> (i32, i32) {
    %c0_i32 = arith.constant 0 : i32
    %c0_i32_0 = arith.constant 0 : i32
    %c0_i32_1 = arith.constant 0 : i32
    return %c0_i32, %c0_i32_0 : i32, i32
  }
  func.func @transform_12(%arg0: i32) -> (i32, i32) {
    %c0_i32 = arith.constant 0 : i32
    %c0_i32_0 = arith.constant 0 : i32
    %c0_i32_1 = arith.constant 0 : i32
    return %c0_i32, %c0_i32_0 : i32, i32
  }
  func.func @transform_13(%arg0: i32) -> (i32, i32) {
    %c0_i32 = arith.constant 0 : i32
    %c0_i32_0 = arith.constant 0 : i32
    %c0_i32_1 = arith.constant 0 : i32
    return %c0_i32, %c0_i32_0 : i32, i32
  }
  func.func @transform_14(%arg0: i32) -> (i32, i32) {
    %c0_i32 = arith.constant 0 : i32
    %c0_i32_0 = arith.constant 0 : i32
    %c0_i32_1 = arith.constant 0 : i32
    return %c0_i32, %c0_i32_0 : i32, i32
  }
  func.func @transform_15(%arg0: i32) -> (i32, i32, i32) {
    %c0_i32 = arith.constant 0 : i32
    %c0_i32_0 = arith.constant 0 : i32
    %c0_i32_1 = arith.constant 0 : i32
    %c0_i32_2 = arith.constant 0 : i32
    return %c0_i32, %c0_i32_0, %c0_i32_1 : i32, i32, i32
  }
  func.func @transform_16(%arg0: i32) -> (i32, i32) {
    %c0_i32 = arith.constant 0 : i32
    %c0_i32_0 = arith.constant 0 : i32
    %c0_i32_1 = arith.constant 0 : i32
    return %c0_i32, %c0_i32_0 : i32, i32
  }
  func.func @transform_17(%arg0: i32) -> (i32, i32) {
    %c0_i32 = arith.constant 0 : i32
    %c0_i32_0 = arith.constant 0 : i32
    %c0_i32_1 = arith.constant 0 : i32
    return %c0_i32, %c0_i32_0 : i32, i32
  }
  func.func @transform_18(%arg0: i32) -> (i32, i32) {
    %c0_i32 = arith.constant 0 : i32
    %c0_i32_0 = arith.constant 0 : i32
    %c0_i32_1 = arith.constant 0 : i32
    return %c0_i32, %c0_i32_0 : i32, i32
  }
  func.func @transform_19(%arg0: i32) -> (i32, i32) {
    %c0_i32 = arith.constant 0 : i32
    %c0_i32_0 = arith.constant 0 : i32
    %c0_i32_1 = arith.constant 0 : i32
    return %c0_i32, %c0_i32_0 : i32, i32
  }
  func.func @transform_20(%arg0: i32) -> (i32, i32) {
    %c0_i32 = arith.constant 0 : i32
    %c0_i32_0 = arith.constant 0 : i32
    %c0_i32_1 = arith.constant 0 : i32
    return %c0_i32, %c0_i32_0 : i32, i32
  }
  func.func @transform_21(%arg0: i32) -> (i32, i32) {
    %c0_i32 = arith.constant 0 : i32
    %c0_i32_0 = arith.constant 0 : i32
    %c0_i32_1 = arith.constant 0 : i32
    return %c0_i32, %c0_i32_0 : i32, i32
  }
  func.func @transform_22(%arg0: i32) -> (i32, i32) {
    %c0_i32 = arith.constant 0 : i32
    %c0_i32_0 = arith.constant 0 : i32
    %c0_i32_1 = arith.constant 0 : i32
    return %c0_i32, %c0_i32_0 : i32, i32
  }
  func.func @transform_23(%arg0: i32) -> (i32, i32, i32) {
    %c0_i32 = arith.constant 0 : i32
    %c0_i32_0 = arith.constant 0 : i32
    %c0_i32_1 = arith.constant 0 : i32
    return %arg0, %c0_i32, %c0_i32_0 : i32, i32, i32
  }
  func.func @transform_24(%arg0: i32) -> (i32, i32, i32) {
    %c0_i32 = arith.constant 0 : i32
    %c0_i32_0 = arith.constant 0 : i32
    %c0_i32_1 = arith.constant 0 : i32
    return %arg0, %c0_i32, %c0_i32_0 : i32, i32, i32
  }
}

</mosaic_0001>

<bundles_post_ra>
// kernel: tpu_custom_call.1
= control target key start
LH: loop header
LB: loop body
LE: loop exit
PB: predicated region body
PF: predicated region fallthrough
CT: control target
= control target key end

     0   :  { %s4859_s0 = inlined_call_operand.vmem [shape: bf16[4,8,32], index: 0, kind: input, shape index: {}]   ;;  %s4860_s1 = inlined_call_operand.vmem [shape: bf16[4,8,32], index: 1, kind: input, shape index: {}]   ;;  %s4861_s2 = inlined_call_operand.vmem [shape: bf16[4,8,32], index: 2, kind: input, shape index: {}]   ;;  %s4862_s3 = inlined_call_operand.hbm [shape: f32[1,32], index: 3, kind: input, shape index: {}]   ;;  %s4863_s4 = inlined_call_operand.hbm [shape: f32[1,32], index: 4, kind: input, shape index: {}]   ;;  %s4864_s5 = inlined_call_operand.hbm [shape: f32[1,32], index: 5, kind: input, shape index: {}]   ;;  %s4865_s6 = inlined_call_operand.hbm [shape: f32[1,32], index: 6, kind: input, shape index: {}]   ;;  %s4866_s7 = inlined_call_operand.hbm [shape: f32[1,32], index: 7, kind: input, shape index: {}]   ;;  %s4867_s8 = inlined_call_operand.hbm [shape: f32[1,32], index: 8, kind: input, shape index: {}]   ;;  %s4868_s9 = inlined_call_operand.vmem [shape: bf16[32,32], index: 9, kind: input, shape index: {}]   ;;  %s4869_s10 = inlined_call_operand.hbm [shape: f32[1,32], index: 10, kind: input, shape index: {}]   ;;  %s4870_s11 = inlined_call_operand.vmem [shape: bf16[32,32], index: 11, kind: input, shape index: {}]   ;;  %s4871_s12 = inlined_call_operand.hbm [shape: f32[1,32], index: 12, kind: input, shape index: {}]   ;;  %s4872_s13 = inlined_call_operand.vmem [shape: bf16[32,32], index: 13, kind: input, shape index: {}]   ;;  %s4873_s14 = inlined_call_operand.hbm [shape: f32[1,32], index: 14, kind: input, shape index: {}]   ;;  %s4874_s15 = inlined_call_operand.vmem [shape: bf16[4,8,32], index: 15, kind: input, shape index: {}]   ;;  %s4875_s16 = inlined_call_operand.hbm [shape: f32[1,32], index: 16, kind: input, shape index: {}]   ;;  %s4876_s17 = inlined_call_operand.hbm [shape: f32[1,32], index: 17, kind: input, shape index: {}]   ;;  %s4877_s18 = inlined_call_operand.vmem [shape: f32[1,32], index: 18, kind: input, shape index: {}]   ;;  %s4878_s19 = inlined_call_operand.vmem [shape: bf16[32,128], index: 19, kind: input, shape index: {}]   ;;  %s4879_s20 = inlined_call_operand.vmem [shape: f32[1,128], index: 20, kind: input, shape index: {}]   ;;  %s4880_s21 = inlined_call_operand.vmem [shape: bf16[128,32], index: 21, kind: input, shape index: {}]   ;;  %s4881_s22 = inlined_call_operand.vmem [shape: f32[1,32], index: 22, kind: input, shape index: {}]   ;;  %s4882_s23 = inlined_call_operand.hbm [shape: f32[4,8,32], index: 23, kind: output, shape index: {0}]   ;;  %s4883_s24 = inlined_call_operand.hbm [shape: f32[4,8,8], index: 24, kind: output, shape index: {1}]  }
   0x1   :  { %4906 = sst [smem:[#allocation38_spill]] %s4859_s0 }
   0x2   :  { %4907 = sst [smem:[#allocation39_spill]] %s4860_s1 }
   0x3   :  { %4908 = sst [smem:[#allocation40_spill]] %s4861_s2 }
   0x4   :  { %4909 = sst [smem:[#allocation41_spill]] %s4862_s3 }
   0x5   :  { %4910 = sst [smem:[#allocation42_spill]] %s4863_s4 }
   0x6   :  { %4911 = sst [smem:[#allocation43_spill]] %s4864_s5 }
   0x7   :  { %4912 = sst [smem:[#allocation44_spill]] %s4865_s6 }
   0x8   :  { %4913 = sst [smem:[#allocation45_spill]] %s4866_s7 }
   0x9   :  { %4914 = sst [smem:[#allocation46_spill]] %s4867_s8 }
   0xa   :  { %4915 = sst [smem:[#allocation47_spill]] %s4871_s12 }
   0xb   :  { %4916 = sst [smem:[#allocation48_spill]] %s4875_s16 }
   0xc   :  { %4917 = sst [smem:[#allocation49_spill]] %s4879_s20 }
   0xd   :  { %4918 = sst [smem:[#allocation50_spill]] %s4881_s22 }
   0xe   :  { %4919 = sst [smem:[#allocation51_spill]] %s4882_s23 }
   0xf   :  { %4920 = sst [smem:[#allocation52_spill]] %s4883_s24 }
  0x10   :  { %30 = vsyncpa [#allocation3], 0 }
  0x11   :  { %31 = vsyncpa [#allocation6], 0 }
  0x12   :  { %32 = vsyncpa [#allocation9], 0 }
  0x13   :  { %33 = vsyncpa [#allocation12], 0 }
  0x14   :  { %34 = vsyncpa [#allocation15], 0 }
  0x15   :  { %35 = vsyncpa [#allocation18], 0 }
  0x16   :  { %36 = vsyncpa [#allocation4], 0 }
  0x17   :  { %38 = vsyncpa [#allocation4 + $0x1], 0 }
  0x18   :  { %39 = vsyncpa [#allocation22], 0 }
  0x19   :  { %41 = vsyncpa [#allocation22 + $0x1], 0  ;;  %s4066_s5 = smov 0   ;;  %s4068_s26 = smov 0  }
  0x1a   :  { %s4070_s27 = smov 0   ;;  %s4072_s28 = smov 0  }
  0x1b LB: > { %4921 = sst [smem:[#allocation31_spill]] %s3907_s5  ;;  %s4087_s6 = sadd.s32 4294967295, %s3919_s28   ;;  %s3919_s28 = sphi %s4072_s28, %s4967_s28   ;;  %s3915_s27 = sphi %s4070_s27, %s4969_s27   ;;  %s3911_s26 = sphi %s4068_s26, %s4971_s26   ;;  %s3907_s5 = sphi %s4066_s5, %s4970_s5  }
  0x1c   : > { %4922 = sst [smem:[#allocation32_spill]] %s3915_s27  ;;  %s2905_s2 = sadd.s32 4294967294, %s3919_s28  }
  0x1d   : > { %4923 = sst [smem:[#allocation33_spill]] %s3919_s28  ;;  %s4091_s29 = sadd.s32 1, %s3919_s28  }
  0x1e   : > { %4924 = sst [smem:[#allocation34_spill]] %s4091_s29  ;;  %s552_s0 = sadd.s32 1, %s3915_s27 }
  0x1f   : > { %s549_s7 = ssub.s32 %s3919_s28, %s4091_s29  ;;  %p562_p0 = scmp.ne.s32.totalorder %s3915_s27, %s3911_s26 }
  0x20   : > { %p550_p1 = scmp.eq.s32.totalorder %s549_s7, 0  ;;  %p563_p2 = scmp.eq.s32.totalorder %s4087_s6, 1 }
  0x21   : > { %p568_p3 = scmp.ne.s32.totalorder %s3911_s26, %s3907_s5  ;;  %p569_p4 = scmp.eq.s32.totalorder %s2905_s2, 1 }
  0x22   : > { %s4102_s30 = scalar_select %p550_p1, %s3915_s27, %s552_s0  }
  0x23   : > { %p4104_p5 = por %p563_p2, %p562_p0  ;;  %p4108_p6 = por %p569_p4, %p568_p3 }
  0x24   : > { %4925 = sst [smem:[#allocation35_spill]] %s4102_s30  ;;  %p2906_p7 = scmp.ge.s32.totalorder %s3919_s28, 1 }
  0x25   : > { %s4926_s3 = scalar_select %p4104_p5, 1, 0 }
  0x26   : > { %s4928_s25 = scalar_select %p4108_p6, 1, 0 }
  0x27   : > { %4927 = sst [smem:[#allocation36_spill]] %s4926_s3  ;;  %p602_p8 = scmp.lt.s32.totalorder %s3919_s28, 3 }
  0x28   : > { %4929 = sst [smem:[#allocation37_spill]] %s4928_s25  ;;  %p4897_p9 = scmp.eq.s32.totalorder %s4087_s6, 0 }
  0x29   : > { %p4115_p10 = pnand %p2906_p7, %p602_p8  ;;  %s3921_s4 = smov [#allocation5]  }
  0x2a   : > { %s626_s1 = sshll.u32 %s3921_s4, 4  ;;  %s3922_s2 = smov [#allocation8]   ;;  %s627_s1 = int_to_ptr.vmem [resolvable:$true] %s626_s1 }
  0x2b   : > { %s4930_s8 = scalar_select %p4115_p10, 1, 0 }
  0x2c   : > { %p3311_p11 = pneg %p4115_p10  ;;  %s648_s0 = sshll.u32 %s3922_s2, 4  ;;  %s4127_s0 = int_to_ptr.vmem [resolvable:$true] %s648_s0 }
  0x2d   : > { %s3923_s30 = smov [#allocation11]   ;;  %s4932_s4 = sld [smem:[#allocation42_spill]] }
  0x2e   : > { %p4123_p12 = pnand %p4897_p9, %p3311_p11  ;;  %s670_s27 = sshll.u32 %s3923_s30, 4  ;;  %s4129_s27 = int_to_ptr.vmem [resolvable:$true] %s670_s27 }
  0x30   : > { %p4139_p0 = pneg %p4123_p12 }
  0x33   : > { %s3493_s5 = scalar_lea.hbm %s4932_s4, 16 }
  0x34   : > { %p3494_p13 = scmp.ne.s32.totalorder %s4932_s4, %s3493_s5  ;;  %p3500_p3 = scmp.lt.u32.totalorder %s3493_s5, %s4932_s4 }
  0x36   : > { %p3496_p1 = pnand %p4139_p0, %p3494_p13 }
  0x38   : > { %p3497_p2 = pneg %p3496_p1 }
  0x3a   : > { %p3502_p4 = pnand %p3500_p3, %p3497_p2 }
  0x3c   : > { %3505 = shalt.err (!%p3502_p4)
}
  0x3d   : > { %s3506_s29 = scalar_lea.vmem %s627_s1, 16  ;;  %s3513_s23 = scalar_lea.vmem %s627_s1, 32 }
  0x3e   : > { %p3507_p7 = scmp.ne.s32.totalorder %s627_s1, %s3506_s29  ;;  %p3514_p9 = scmp.lt.s32.totalorder %s627_s1, %s627_s1 }
  0x3f   : > { %p3515_p6 = scmp.lt.s32.totalorder %s3513_s23, %s3506_s29 }
  0x40   : > { %p3509_p8 = pnand %p3507_p7, %p4139_p0 }
  0x41   : > { %p3516_p5 = por %p3515_p6, %p3514_p9 }
  0x42   : > { %p3510_p11 = pneg %p3509_p8 }
  0x44   : > { %p3517_p10 = pnand %p3516_p5, %p3510_p11 }
  0x46   : > { %3520 = shalt.err (!%p3517_p10)
}
  0x47   : > { %3317 = dma.hbm_to_vmem [thread:$0]  (!%p4123_p12), %s4932_s4, 16, %s627_s1, [#allocation6]  }
  0x48   : > { %s4934_s30 = sld [smem:[#allocation44_spill]] }
  0x4e   : > { %s3521_s24 = scalar_lea.hbm %s4934_s30, 16 }
  0x4f   : > { %p3522_p13 = scmp.ne.s32.totalorder %s4934_s30, %s3521_s24  ;;  %p3528_p5 = scmp.lt.u32.totalorder %s3521_s24, %s4934_s30 }
  0x51   : > { %p3524_p1 = pnand %p3522_p13, %p4139_p0 }
  0x53   : > { %p3525_p6 = pneg %p3524_p1 }
  0x55   : > { %p3530_p9 = pnand %p3528_p5, %p3525_p6 }
  0x57   : > { %3533 = shalt.err (!%p3530_p9)
}
  0x58   : > { %s3534_s1 = scalar_lea.vmem %s4127_s0, 16  ;;  %s3541_s20 = scalar_lea.vmem %s4127_s0, 32 }
  0x59   : > { %p3535_p10 = scmp.ne.s32.totalorder %s4127_s0, %s3534_s1  ;;  %p3542_p4 = scmp.lt.s32.totalorder %s4127_s0, %s4127_s0 }
  0x5a   : > { %p3543_p7 = scmp.lt.s32.totalorder %s3541_s20, %s3534_s1 }
  0x5b   : > { %p3537_p2 = pnand %p3535_p10, %p4139_p0 }
  0x5c   : > { %p3544_p8 = por %p3543_p7, %p3542_p4 }
  0x5d   : > { %p3538_p3 = pneg %p3537_p2 }
  0x5f   : > { %p3545_p11 = pnand %p3544_p8, %p3538_p3 }
  0x61   : > { %3548 = shalt.err (!%p3545_p11)
}
  0x62   : > { %3323 = dma.hbm_to_vmem [thread:$0]  (!%p4123_p12), %s4934_s30, 16, %s4127_s0, [#allocation9]  }
  0x63   : > { %s4935_s22 = sld [smem:[#allocation46_spill]] }
  0x69   : > { %s3549_s5 = scalar_lea.hbm %s4935_s22, 16 }
  0x6a   : > { %p3550_p13 = scmp.ne.s32.totalorder %s4935_s22, %s3549_s5  ;;  %p3556_p5 = scmp.lt.u32.totalorder %s3549_s5, %s4935_s22 }
  0x6c   : > { %p3552_p1 = pnand %p3550_p13, %p4139_p0 }
  0x6e   : > { %p3553_p6 = pneg %p3552_p1 }
  0x70   : > { %p3558_p9 = pnand %p3556_p5, %p3553_p6 }
  0x72   : > { %3561 = shalt.err (!%p3558_p9)
}
  0x73   : > { %s3562_s0 = scalar_lea.vmem %s4129_s27, 16  ;;  %s3569_s24 = scalar_lea.vmem %s4129_s27, 32 }
  0x74   : > { %p3563_p10 = scmp.ne.s32.totalorder %s4129_s27, %s3562_s0  ;;  %p3570_p4 = scmp.lt.s32.totalorder %s4129_s27, %s4129_s27 }
  0x75   : > { %p3571_p7 = scmp.lt.s32.totalorder %s3569_s24, %s3562_s0 }
  0x76   : > { %p3565_p2 = pnand %p3563_p10, %p4139_p0 }
  0x77   : > { %p3572_p8 = por %p3571_p7, %p3570_p4 }
  0x78   : > { %p3566_p3 = pneg %p3565_p2 }
  0x7a   : > { %p3573_p11 = pnand %p3572_p8, %p3566_p3 }
  0x7c   : > { %3576 = shalt.err (!%p3573_p11)
}
  0x7d   : > { %3329 = dma.hbm_to_vmem [thread:$0]  (!%p4123_p12), %s4935_s22, 16, %s4129_s27, [#allocation12]  }
  0x7e   : > { %s3924_s25 = smov [#allocation14]   ;;  %s3925_s29 = smov [#allocation17]  }
  0x7f   : > { %s698_s5 = sshll.u32 %s3924_s25, 4  ;;  %s726_s23 = sshll.u32 %s3925_s29, 4  ;;  %s699_s5 = int_to_ptr.vmem [resolvable:$true] %s698_s5  ;;  %s727_s23 = int_to_ptr.vmem [resolvable:$true] %s726_s23 }
  0x80   : > { %s4936_s12 = sld [smem:[#allocation47_spill]] }
  0x86   : > { %s3577_s0 = scalar_lea.hbm %s4936_s12, 16 }
  0x87   : > { %p3578_p13 = scmp.ne.s32.totalorder %s4936_s12, %s3577_s0  ;;  %p3584_p5 = scmp.lt.u32.totalorder %s3577_s0, %s4936_s12 }
  0x89   : > { %p3580_p1 = pnand %p3578_p13, %p4139_p0 }
  0x8b   : > { %p3581_p6 = pneg %p3580_p1 }
  0x8d   : > { %p3586_p9 = pnand %p3584_p5, %p3581_p6 }
  0x8f   : > { %3589 = shalt.err (!%p3586_p9)
}
  0x90   : > { %s3590_s27 = scalar_lea.vmem %s699_s5, 16  ;;  %s3597_s28 = scalar_lea.vmem %s699_s5, 32 }
  0x91   : > { %p3591_p10 = scmp.ne.s32.totalorder %s699_s5, %s3590_s27  ;;  %p3598_p4 = scmp.lt.s32.totalorder %s699_s5, %s699_s5 }
  0x92   : > { %p3599_p7 = scmp.lt.s32.totalorder %s3597_s28, %s3590_s27 }
  0x93   : > { %p3593_p2 = pnand %p3591_p10, %p4139_p0 }
  0x94   : > { %p3600_p8 = por %p3599_p7, %p3598_p4 }
  0x95   : > { %p3594_p3 = pneg %p3593_p2 }
  0x97   : > { %p3601_p11 = pnand %p3600_p8, %p3594_p3 }
  0x99   : > { %3604 = shalt.err (!%p3601_p11)
}
  0x9a   : > { %3335 = dma.hbm_to_vmem [thread:$0]  (!%p4123_p12), %s4936_s12, 16, %s699_s5, [#allocation15]  }
  0x9b   : > { %s4937_s16 = sld [smem:[#allocation48_spill]] }
  0xa1   : > { %s3605_s1 = scalar_lea.hbm %s4937_s16, 16 }
  0xa2   : > { %p3606_p13 = scmp.ne.s32.totalorder %s4937_s16, %s3605_s1  ;;  %p3612_p5 = scmp.lt.u32.totalorder %s3605_s1, %s4937_s16 }
  0xa4   : > { %p3608_p1 = pnand %p3606_p13, %p4139_p0 }
  0xa6   : > { %p3609_p6 = pneg %p3608_p1 }
  0xa8   : > { %p3614_p9 = pnand %p3612_p5, %p3609_p6 }
  0xaa   : > { %3617 = shalt.err (!%p3614_p9)
}
  0xab   : > { %s3618_s27 = scalar_lea.vmem %s727_s23, 16  ;;  %s3625_s5 = scalar_lea.vmem %s727_s23, 32 }
  0xac   : > { %p3619_p10 = scmp.ne.s32.totalorder %s727_s23, %s3618_s27  ;;  %p3626_p4 = scmp.lt.s32.totalorder %s727_s23, %s727_s23 }
  0xad   : > { %p3627_p7 = scmp.lt.s32.totalorder %s3625_s5, %s3618_s27 }
  0xae   : > { %p3621_p2 = pnand %p3619_p10, %p4139_p0 }
  0xaf   : > { %p3628_p8 = por %p3627_p7, %p3626_p4 }
  0xb0   : > { %p3622_p3 = pneg %p3621_p2 }
  0xb2   : > { %p3629_p11 = pnand %p3628_p8, %p3622_p3 }
  0xb4   : > { %3632 = shalt.err (!%p3629_p11)
}
  0xb5   : > { %3341 = dma.hbm_to_vmem [thread:$0]  (!%p4123_p12), %s4937_s16, 16, %s727_s23, [#allocation18]  }
  0xb6   : > { %s3926_s25 = smov [#allocation2]   ;;  %s3927_s29 = smov [#allocation7]  }
  0xb7   : > { %s615_s30 = sshll.u32 %s3926_s25, 4  ;;  %s637_s1 = sshll.u32 %s3927_s29, 4  ;;  %s616_s30 = int_to_ptr.vmem [resolvable:$true] %s615_s30  ;;  %s638_s1 = int_to_ptr.vmem [resolvable:$true] %s637_s1 }
  0xb8   : > { %s4938_s24 = sld [smem:[#allocation41_spill]] }
  0xbe   : > { %s3633_s3 = scalar_lea.hbm %s4938_s24, 16 }
  0xbf   : > { %p3634_p13 = scmp.ne.s32.totalorder %s4938_s24, %s3633_s3  ;;  %p3640_p5 = scmp.lt.u32.totalorder %s3633_s3, %s4938_s24 }
  0xc1   : > { %p3636_p1 = pnand %p3634_p13, %p4139_p0 }
  0xc3   : > { %p3637_p6 = pneg %p3636_p1 }
  0xc5   : > { %p3642_p9 = pnand %p3640_p5, %p3637_p6 }
  0xc7   : > { %3645 = shalt.err (!%p3642_p9)
}
  0xc8   : > { %s3646_s23 = scalar_lea.vmem %s616_s30, 16  ;;  %s3653_s4 = scalar_lea.vmem %s616_s30, 32 }
  0xc9   : > { %p3647_p10 = scmp.ne.s32.totalorder %s616_s30, %s3646_s23  ;;  %p3654_p4 = scmp.lt.s32.totalorder %s616_s30, %s616_s30 }
  0xca   : > { %p3655_p7 = scmp.lt.s32.totalorder %s3653_s4, %s3646_s23 }
  0xcb   : > { %p3649_p2 = pnand %p3647_p10, %p4139_p0 }
  0xcc   : > { %p3656_p8 = por %p3655_p7, %p3654_p4 }
  0xcd   : > { %p3650_p3 = pneg %p3649_p2 }
  0xcf   : > { %p3657_p11 = pnand %p3656_p8, %p3650_p3 }
  0xd1   : > { %3660 = shalt.err (!%p3657_p11)
}
  0xd2   : > { %3314 = dma.hbm_to_vmem [thread:$0]  (!%p4123_p12), %s4938_s24, 16, %s616_s30, [#allocation3]  }
  0xd3   : > { %s4939_s0 = sld [smem:[#allocation43_spill]] }
  0xd9   : > { %s3661_s3 = scalar_lea.hbm %s4939_s0, 16 }
  0xda   : > { %p3662_p13 = scmp.ne.s32.totalorder %s4939_s0, %s3661_s3  ;;  %p3668_p5 = scmp.lt.u32.totalorder %s3661_s3, %s4939_s0 }
  0xdc   : > { %p3664_p1 = pnand %p3662_p13, %p4139_p0 }
  0xde   : > { %p3665_p6 = pneg %p3664_p1 }
  0xe0   : > { %p3670_p9 = pnand %p3668_p5, %p3665_p6 }
  0xe2   : > { %3673 = shalt.err (!%p3670_p9)
}
  0xe3   : > { %s3674_s4 = scalar_lea.vmem %s638_s1, 16  ;;  %s3681_s30 = scalar_lea.vmem %s638_s1, 32 }
  0xe4   : > { %p3675_p10 = scmp.ne.s32.totalorder %s638_s1, %s3674_s4  ;;  %p3682_p4 = scmp.lt.s32.totalorder %s638_s1, %s638_s1 }
  0xe5   : > { %p3683_p7 = scmp.lt.s32.totalorder %s3681_s30, %s3674_s4 }
  0xe6   : > { %p3677_p2 = pnand %p3675_p10, %p4139_p0 }
  0xe7   : > { %p3684_p8 = por %p3683_p7, %p3682_p4 }
  0xe8   : > { %p3678_p3 = pneg %p3677_p2 }
  0xea   : > { %p3685_p11 = pnand %p3684_p8, %p3678_p3 }
  0xec   : > { %3688 = shalt.err (!%p3685_p11)
}
  0xed   : > { %3320 = dma.hbm_to_vmem [thread:$0]  (!%p4123_p12), %s4939_s0, 16, %s638_s1, [#allocation6]  }
  0xee   : > { %s3928_s12 = smov [#allocation10]   ;;  %s3929_s3 = smov [#allocation13]  }
  0xef   : > { %s659_s20 = sshll.u32 %s3928_s12, 4  ;;  %s684_s27 = sshll.u32 %s3929_s3, 4  ;;  %s660_s20 = int_to_ptr.vmem [resolvable:$true] %s659_s20  ;;  %s685_s27 = int_to_ptr.vmem [resolvable:$true] %s684_s27 }
  0xf0   : > { %s4940_s23 = sld [smem:[#allocation45_spill]] }
  0xf6   : > { %s3689_s16 = scalar_lea.hbm %s4940_s23, 16 }
  0xf7   : > { %p3690_p13 = scmp.ne.s32.totalorder %s4940_s23, %s3689_s16  ;;  %p3696_p5 = scmp.lt.u32.totalorder %s3689_s16, %s4940_s23 }
  0xf9   : > { %p3692_p1 = pnand %p3690_p13, %p4139_p0 }
  0xfb   : > { %p3693_p6 = pneg %p3692_p1 }
  0xfd   : > { %p3698_p9 = pnand %p3696_p5, %p3693_p6 }
  0xff   : > { %3701 = shalt.err (!%p3698_p9)
}
 0x100   : > { %s3702_s1 = scalar_lea.vmem %s660_s20, 16  ;;  %s3709_s29 = scalar_lea.vmem %s660_s20, 32 }
 0x101   : > { %p3703_p10 = scmp.ne.s32.totalorder %s660_s20, %s3702_s1  ;;  %p3710_p4 = scmp.lt.s32.totalorder %s660_s20, %s660_s20 }
 0x102   : > { %p3711_p7 = scmp.lt.s32.totalorder %s3709_s29, %s3702_s1 }
 0x103   : > { %p3705_p2 = pnand %p3703_p10, %p4139_p0 }
 0x104   : > { %p3712_p8 = por %p3711_p7, %p3710_p4 }
 0x105   : > { %p3706_p3 = pneg %p3705_p2 }
 0x107   : > { %p3713_p11 = pnand %p3712_p8, %p3706_p3 }
 0x109   : > { %3716 = shalt.err (!%p3713_p11)
}
 0x10a   : > { %3326 = dma.hbm_to_vmem [thread:$0]  (!%p4123_p12), %s4940_s23, 16, %s660_s20, [#allocation9]  }
 0x10b   : > { %s3717_s5 = scalar_lea.hbm %s4869_s10, 16 }
 0x10c   : > { %p3718_p13 = scmp.ne.s32.totalorder %s4869_s10, %s3717_s5  ;;  %p3724_p5 = scmp.lt.u32.totalorder %s3717_s5, %s4869_s10 }
 0x10e   : > { %p3720_p1 = pnand %p3718_p13, %p4139_p0 }
 0x110   : > { %p3721_p6 = pneg %p3720_p1 }
 0x112   : > { %p3726_p9 = pnand %p3724_p5, %p3721_p6 }
 0x114   : > { %3729 = shalt.err (!%p3726_p9)
}
 0x115   : > { %s3730_s1 = scalar_lea.vmem %s685_s27, 16  ;;  %s3737_s20 = scalar_lea.vmem %s685_s27, 32 }
 0x116   : > { %p3731_p10 = scmp.ne.s32.totalorder %s685_s27, %s3730_s1  ;;  %p3738_p4 = scmp.lt.s32.totalorder %s685_s27, %s685_s27 }
 0x117   : > { %p3739_p7 = scmp.lt.s32.totalorder %s3737_s20, %s3730_s1 }
 0x118   : > { %p3733_p2 = pnand %p3731_p10, %p4139_p0 }
 0x119   : > { %p3740_p8 = por %p3739_p7, %p3738_p4 }
 0x11a   : > { %p3734_p3 = pneg %p3733_p2 }
 0x11c   : > { %p3741_p11 = pnand %p3740_p8, %p3734_p3 }
 0x11e   : > { %3744 = shalt.err (!%p3741_p11)
}
 0x11f   : > { %3332 = dma.hbm_to_vmem [thread:$0]  (!%p4123_p12), %s4869_s10, 16, %s685_s27, [#allocation12]  }
 0x120   : > { %s3930_s3 = smov [#allocation16]   ;;  %s3931_s22 = smov [#allocation19]  }
 0x121   : > { %s712_s16 = sshll.u32 %s3930_s3, 4  ;;  %s737_s5 = sshll.u32 %s3931_s22, 4  ;;  %s713_s16 = int_to_ptr.vmem [resolvable:$true] %s712_s16  ;;  %s738_s5 = int_to_ptr.vmem [resolvable:$true] %s737_s5 }
 0x122   : > { %s3745_s30 = scalar_lea.hbm %s4873_s14, 16 }
 0x123   : > { %p3746_p13 = scmp.ne.s32.totalorder %s4873_s14, %s3745_s30  ;;  %p3752_p5 = scmp.lt.u32.totalorder %s3745_s30, %s4873_s14 }
 0x125   : > { %p3748_p1 = pnand %p3746_p13, %p4139_p0 }
 0x127   : > { %p3749_p6 = pneg %p3748_p1 }
 0x129   : > { %p3754_p9 = pnand %p3752_p5, %p3749_p6 }
 0x12b   : > { %3757 = shalt.err (!%p3754_p9)
}
 0x12c   : > { %s3758_s27 = scalar_lea.vmem %s713_s16, 16  ;;  %s3765_s12 = scalar_lea.vmem %s713_s16, 32 }
 0x12d   : > { %p3759_p10 = scmp.ne.s32.totalorder %s713_s16, %s3758_s27  ;;  %p3766_p4 = scmp.lt.s32.totalorder %s713_s16, %s713_s16 }
 0x12e   : > { %p3767_p7 = scmp.lt.s32.totalorder %s3765_s12, %s3758_s27 }
 0x12f   : > { %p3761_p2 = pnand %p3759_p10, %p4139_p0 }
 0x130   : > { %p3768_p8 = por %p3767_p7, %p3766_p4 }
 0x131   : > { %p3762_p3 = pneg %p3761_p2 }
 0x133   : > { %p3769_p11 = pnand %p3768_p8, %p3762_p3 }
 0x135   : > { %3772 = shalt.err (!%p3769_p11)
}
 0x136   : > { %3338 = dma.hbm_to_vmem [thread:$0]  (!%p4123_p12), %s4873_s14, 16, %s713_s16, [#allocation15]  }
 0x137   : > { %s3773_s30 = scalar_lea.hbm %s4876_s17, 16 }
 0x138   : > { %p3774_p13 = scmp.ne.s32.totalorder %s4876_s17, %s3773_s30  ;;  %p3780_p5 = scmp.lt.u32.totalorder %s3773_s30, %s4876_s17 }
 0x13a   : > { %p3776_p1 = pnand %p3774_p13, %p4139_p0 }
 0x13c   : > { %p3777_p6 = pneg %p3776_p1 }
 0x13e   : > { %p3782_p9 = pnand %p3780_p5, %p3777_p6 }
 0x140   : > { %3785 = shalt.err (!%p3782_p9)
}
 0x141   : > { %s3786_s27 = scalar_lea.vmem %s738_s5, 16  ;;  %s3793_s16 = scalar_lea.vmem %s738_s5, 32 }
 0x142   : > { %p3787_p10 = scmp.ne.s32.totalorder %s738_s5, %s3786_s27  ;;  %p3794_p4 = scmp.lt.s32.totalorder %s738_s5, %s738_s5 }
 0x143   : > { %p3795_p7 = scmp.lt.s32.totalorder %s3793_s16, %s3786_s27 }
 0x144   : > { %p3789_p2 = pnand %p3787_p10, %p4139_p0 }
 0x145   : > { %p3796_p8 = por %p3795_p7, %p3794_p4 }
 0x146   : > { %p3790_p3 = pneg %p3789_p2 }
 0x148   : > { %p3797_p11 = pnand %p3796_p8, %p3790_p3 }
 0x14a   : > { %3800 = shalt.err (!%p3797_p11)
}
 0x14b   : > { %3344 = dma.hbm_to_vmem [thread:$0]  (!%p4123_p12), %s4876_s17, 16, %s738_s5, [#allocation18]  }
 0x14c   : > { %p4941_p13 = scmp.ne.s32.totalorder %s4930_s8, 0 }
 0x14d   : > { %p4942_p1 = scmp.eq.s32.totalorder (!%p4941_p13), %s4087_s6, 0 }
 0x14e   : > { %792 = sbr.rel (%p4941_p13) target bundleno = 4711 (0x1267), region = 112 }
 0x155   : > { %3874 = dma.done.wait (%p4942_p1), [#allocation3], 16   ;;  %p4943_p0 = pmov %p4942_p1 }
 0x157   : > { %3876 = vsyncadd (%p4943_p0), [#allocation3], 4294967280  ;;  %p4944_p6 = pmov %p4943_p0 }
 0x158   : > { %p4945_p5 = pmov %p4943_p0 }
 0x159   : > { %3878 = dma.done.wait (%p4944_p6), [#allocation6], 32  }
 0x15a   : > { %3880 = vsyncadd (%p4945_p5), [#allocation6], 4294967264  ;;  %p4946_p9 = pmov %p4943_p0 }
 0x15b   : > { %p4947_p12 = pmov %p4943_p0 }
 0x15c   : > { %3882 = dma.done.wait (%p4946_p9), [#allocation9], 32  }
 0x15d   : > { %3884 = vsyncadd (%p4947_p12), [#allocation9], 4294967264  ;;  %p4948_p10 = pmov %p4943_p0 }
 0x15e   : > { %p4949_p2 = pmov %p4943_p0 }
 0x15f   : > { %3886 = dma.done.wait (%p4948_p10), [#allocation12], 32  }
 0x160   : > { %3888 = vsyncadd (%p4949_p2), [#allocation12], 4294967264  ;;  %p4950_p3 = pmov %p4943_p0 }
 0x161   : > { %p4951_p4 = pmov %p4943_p0 }
 0x162   : > { %3890 = dma.done.wait (%p4950_p3), [#allocation15], 32  }
 0x163   : > { %3892 = vsyncadd (%p4951_p4), [#allocation15], 4294967264  ;;  %p4952_p7 = pmov %p4943_p0 }
 0x164   : > { %p4953_p8 = pmov %p4943_p0 }
 0x165   : > { %3894 = dma.done.wait (%p4952_p7), [#allocation18], 32  }
 0x166   : > { %3896 = vsyncadd (%p4953_p8), [#allocation18], 4294967264  ;;  %s2933_s8 = sshll.u32 %s4087_s6, 1  ;;  %s4954_s22 = sld [smem:[#allocation38_spill]]  ;;  %vm948_vm0 = vcmask 261120   ;;  %v3425_v35 = vld [vmem:[%s4868_s9] sm:$0xff]  }
 0x167   : > { %p914_p11 = scmp.lt.s32.totalorder %s2933_s8, 3  ;;  %s4955_s25 = sld [smem:[#allocation39_spill]]  ;;  %v3932_v36 = vmov 0.0   ;;  %v3426_v37 = vld [vmem:[%s4868_s9 + $0x8] sm:$0xff]   ;;  %vm3933_vm1 = vmmov 0   ;;  %vm1302_vm2 = vcmask 64512  }
 0x168   : > { %s4956_s27 = sld [smem:[#allocation40_spill]]  ;;  %3091 = vmatprep.subr.bf16.mxu1 %v3932_v36  ;;  %3121 = vmatprep.subr.bf16.mxu0 %v3932_v36  ;;  %v2939_v61 = vld [vmem:[#allocation2] ss:$0 sm:$0xff]  ;;  %vm1424_vm3 = vcmask 1043456   ;;  %s3934_s20 = smov 120  }
 0x169   : > { %s4973_s8 = smov (!%p914_p11, %s2933_s8), 3  ;;  %3092 = vmatpush3.bf16.msra.mxu1 %v3425_v35  ;;  %3095 = vmatprep.mubr.msk.bf16.mxu1 %vm3933_vm1, %v3932_v36  ;;  %s3935_s29 = smov 112  }
 0x16a   : > { %s4374_s7 = sshll.u32 %s4973_s8, 2  ;;  %3093 = vmatprep.subr.bf16.mxu1 %v3932_v36  ;;  %3123 = vmatprep.mubr.msk.bf16.mxu0 %vm3933_vm1, %v3932_v36  ;;  %s3936_s8 = smov 104  }
 0x16b   : > { %s4665_s5 = sand.u32 1, %s3911_s26   ;;  %s4957_s4 = sld [smem:[#allocation49_spill]] }
 0x16c   : > { %s917_s28 = scalar_lea.vmem %s4954_s22, %s4374_s7  ;;  %s2931_s22 = sshll.u32 %s4665_s5, 4 }
 0x16d   : > { %s923_s1 = scalar_lea.vmem %s4955_s25, %s4374_s7  ;;  %v3019_v0 = vld [vmem:[%s917_s28] sm:$0xff]   ;;  %3094 = vmatpush3.bf16.msra.mxu1 %v3426_v37  ;;  %v2944_v37 = vld [vmem:[#allocation11] ss:$0 sm:$0xff]  ;;  %s4670_s28 = scalar_lea.vmem [#allocation21], %s2931_s22 }
 0x16e   : > { %v3023_v1 = vld [vmem:[%s923_s1] sm:$0xff]   ;;  %v4384_v2 = vunpack.c.l.bf16 %v3019_v0  ;;  %v4386_v4 = vunpack.c.h.bf16 %v3019_v0  ;;  %s929_s16 = scalar_lea.vmem %s4956_s27, %s4374_s7  ;;  %3099 = vmatprep.subr.bf16.mxu1 %v3932_v36  ;;  %s4958_s30 = sld [smem:[#allocation36_spill]] }
 0x16f   : > { %v3024_v3 = vunpack.c.l.bf16 %v3023_v1  ;;  %v3025_v5 = vunpack.c.h.bf16 %v3023_v1  ;;  %v3027_v22 = vld [vmem:[%s929_s16] sm:$0xff]   ;;  %s3016_s25 = sshll.u32 %s4087_s6, 8  ;;  %s2680_s16 = sshll.u32 %s4670_s28, 4  ;;  %s4768_s16 = int_to_ptr.vmem [resolvable:$true] %s2680_s16 }
 0x170   : > { %v949_v6 = vsel %vm948_vm0, %v4384_v2, 0.0  ;;  %v952_v8 = vsel %vm948_vm0, %v4386_v4, 0.0  ;;  %v3028_v28 = vunpack.c.l.bf16 %v3027_v22  ;;  %v3029_v33 = vunpack.c.h.bf16 %v3027_v22  ;;  %v3429_v22 = vld [vmem:[%s4872_s13] sm:$0xff]   ;;  %s2651_s12 = scalar_lea.sflag [#allocation22], %s4665_s5  ;;  %s3801_s3 = scalar_lea.vmem %s4768_s16, 256 }
 0x171   : > { %v994_v7 = vsel %vm948_vm0, %v3024_v3, 0.0  ;;  %v997_v9 = vsel %vm948_vm0, %v3025_v5, 0.0  ;;  %950 = vadd.xlane.f32.xlu0 %v949_v6  ;;  %p3802_p13 = scmp.ne.s32.totalorder %s4768_s16, %s3801_s3 }
 0x172   : > { %995 = vadd.xlane.f32.xlu1 %v994_v7  ;;  %v1038_v31 = vsel %vm948_vm0, %v3028_v28, 0.0  ;;  %v1041_v34 = vsel %vm948_vm0, %v3029_v33, 0.0 }
 0x174   : > { %p4960_p1 = scmp.ne.s32.totalorder %s4958_s30, 0 }
 0x175   : > { %953 = vadd.xlane.f32.xlu0 %v952_v8 }
 0x176   : > { %998 = vadd.xlane.f32.xlu1 %v997_v9  ;;  %p3803_p0 = pnand %p3802_p13, %p4960_p1 }
 0x178   : > { %p3804_p6 = pneg %p3803_p0 }
 0x1fe   : > { %v951_v10 = vpop.xlane.xlu0 %950 }
 0x1ff   : > { %v996_v11 = vpop.xlane.xlu1 %995  ;;  %v956_v12 = vmul.f32 0.03125, %v951_v10 }
 0x200   : > { %v1000_v13 = vmul.f32 0.03125, %v996_v11 }
 0x201   : > { %v4395_v14 = vsub.f32 %v4384_v2, %v956_v12  ;;  %v2941_v12 = vld [vmem:[#allocation7] ss:$0 sm:$0xff] }
 0x202   : > { %v4397_v15 = vsub.f32 %v3024_v3, %v1000_v13  ;;  %v954_v16 = vpop.xlane.xlu0 %953  ;;  %v3427_v13 = vld [vmem:[%s4870_s11] sm:$0xff]  }
 0x203   : > { %v999_v17 = vpop.xlane.xlu1 %998  ;;  %v957_v18 = vmul.f32 0.03125, %v954_v16  ;;  %v960_v20 = vmul.f32 %v4395_v14, %v4395_v14 }
 0x204   : > { %v1001_v19 = vmul.f32 0.03125, %v999_v17  ;;  %v1004_v21 = vmul.f32 %v4397_v15, %v4397_v15 }
 0x205   : > { %v959_v23 = vsub.f32 %v4386_v4, %v957_v18  ;;  %v962_v25 = vsel %vm948_vm0, %v960_v20, 0.0  ;;  %v3428_v18 = vld [vmem:[%s4870_s11 + $0x8] sm:$0xff]  }
 0x206   : > { %v4408_v24 = vsub.f32 %v3025_v5, %v1001_v19  ;;  %963 = vadd.xlane.f32.xlu0 %v962_v25  ;;  %v1006_v26 = vsel %vm948_vm0, %v1004_v21, 0.0  ;;  %v2940_v5 = vld [vmem:[#allocation5] ss:$0 sm:$0xff] }
 0x207   : > { %v961_v27 = vmul.f32 %v959_v23, %v959_v23 }
 0x208   : > { %v1005_v29 = vmul.f32 %v4408_v24, %v4408_v24 }
 0x209   : > { %v965_v30 = vsel %vm948_vm0, %v961_v27, 0.0 }
 0x20a   : > { %1007 = vadd.xlane.f32.xlu0 %v1006_v26  ;;  %966 = vadd.xlane.f32.xlu1 %v965_v30  ;;  %v1009_v32 = vsel %vm948_vm0, %v1005_v29, 0.0 }
 0x20e   : > { %1039 = vadd.xlane.f32.xlu0 %v1038_v31  ;;  %1010 = vadd.xlane.f32.xlu1 %v1009_v32  ;;  %v2943_v32 = vld [vmem:[#allocation10] ss:$0 sm:$0xff] }
 0x212   : > { %1042 = vadd.xlane.f32.xlu1 %v1041_v34 }
 0x293   : > { %v964_v38 = vpop.xlane.xlu0 %963 }
 0x294   : > { %v968_v39 = vmul.f32 0.03125, %v964_v38 }
 0x296   : > { %v970_v40 = vadd.f32 1e-05, %v968_v39 }
 0x297   : > { %v967_v41 = vpop.xlane.xlu1 %966  ;;  %v1008_v42 = vpop.xlane.xlu0 %1007 }
 0x298   : > { %3441 = vrsqrt.f32 %v970_v40  ;;  %v969_v43 = vmul.f32 0.03125, %v967_v41  ;;  %v1012_v44 = vmul.f32 0.03125, %v1008_v42 }
 0x29a   : > { %v971_v45 = vadd.f32 1e-05, %v969_v43  ;;  %v1014_v46 = vadd.f32 1e-05, %v1012_v44 }
 0x29b   : > { %v1011_v47 = vpop.xlane.xlu1 %1010  ;;  %v1040_v48 = vpop.xlane.xlu0 %1039 }
 0x29c   : > { %3443 = vrsqrt.f32 %v971_v45  ;;  %v1013_v49 = vmul.f32 0.03125, %v1011_v47  ;;  %v1044_v50 = vmul.f32 0.03125, %v1040_v48 }
 0x29d   : > { %3445 = vrsqrt.f32 %v1014_v46  ;;  %v2949_v46 = vld [vmem:[#allocation14] ss:$0 sm:$0xff] }
 0x29e   : > { %v1015_v51 = vadd.f32 1e-05, %v1013_v49  ;;  %v1046_v52 = vsub.f32 %v3028_v28, %v1044_v50 }
 0x29f   : > { %v1043_v53 = vpop.xlane.xlu1 %1042 }
 0x2a0   : > { %3447 = vrsqrt.f32 %v1015_v51  ;;  %v1045_v54 = vmul.f32 0.03125, %v1043_v53  ;;  %v1048_v55 = vmul.f32 %v1046_v52, %v1046_v52 }
 0x2a2   : > { %v3442_v56 = vpop.eup %3441  ;;  %v1047_v57 = vsub.f32 %v3029_v33, %v1045_v54  ;;  %v1050_v58 = vsel %vm948_vm0, %v1048_v55, 0.0  ;;  %v2945_v54 = vld [vmem:[#allocation13] ss:$0 sm:$0xff] }
 0x2a3   : > { %v974_v59 = vmul.f32 %v3442_v56, %v4395_v14  ;;  %1051 = vadd.xlane.f32.xlu0 %v1050_v58 }
 0x2a4   : > { %v1049_v60 = vmul.f32 %v1047_v57, %v1047_v57 }
 0x2a5   : > { %v982_v1 = vmul.f32 %v2939_v61, %v974_v59 }
 0x2a6   : > { %v3444_v62 = vpop.eup %3443  ;;  %v1053_v63 = vsel %vm948_vm0, %v1049_v60, 0.0 }
 0x2a7   : > { %v975_v0 = vmul.f32 %v3444_v62, %v959_v23  ;;  %1054 = vadd.xlane.f32.xlu1 %v1053_v63  ;;  %v3446_v3 = vpop.eup %3445  ;;  %v990_v10 = vadd.f32 %v2940_v5, %v982_v1  ;;  %v3430_v23 = vld [vmem:[%s4872_s13 + $0x8] sm:$0xff]   ;;  %v2953_v62 = vld [vmem:[#allocation16] ss:$0 sm:$0xff] }
 0x2a8   : > { %v1018_v8 = vmul.f32 %v3446_v3, %v4397_v15  ;;  %v2942_v15 = vld [vmem:[#allocation8] ss:$0 sm:$0xff] }
 0x2a9   : > { %v983_v6 = vmul.f32 %v2939_v61, %v975_v0 }
 0x2aa   : > { %v3448_v7 = vpop.eup %3447  ;;  %v1026_v17 = vmul.f32 %v2941_v12, %v1018_v8 }
 0x2ab   : > { %v1019_v9 = vmul.f32 %v3448_v7, %v4408_v24  ;;  %v991_v11 = vadd.f32 %v2940_v5, %v983_v6 }
 0x2ac   : > { %v1034_v20 = vadd.f32 %v2942_v15, %v1026_v17 }
 0x2ad   : > { %v1027_v14 = vmul.f32 %v2941_v12, %v1019_v9  ;;  %v1080_v16 = vpack.c.bf16 %v991_v11, %v990_v10 }
 0x2af   : > { %3096 = vmatmul.mubr.msk.bf16.vlgmr.msra.gmra.mrb[0].mxu1 %vm948_vm0, %v1080_v16  ;;  %v1035_v19 = vadd.f32 %v2942_v15, %v1027_v14 }
 0x2b0   : > { %3100 = vmatpush3.bf16.msra.mxu1 %v3427_v13  ;;  %3103 = vmatprep.mubr.msk.bf16.mxu1 %vm3933_vm1, %v3932_v36 }
 0x2b1   : > { %3101 = vmatprep.subr.bf16.mxu1 %v3932_v36  ;;  %v1149_v21 = vpack.c.bf16 %v1035_v19, %v1034_v20 }
 0x2b4   : > { %3102 = vmatpush3.bf16.msra.mxu1 %v3428_v18 }
 0x2b5   : > { %3107 = vmatprep.subr.bf16.mxu1 %v3932_v36 }
 0x2b7   : > { %3104 = vmatmul.mubr.msk.bf16.vlgmr.msra.gmra.mrb[4].mxu1 %vm948_vm0, %v1149_v21 }
 0x2b8   : > { %3111 = vmatprep.mubr.msk.bf16.mxu1 %vm3933_vm1, %v3932_v36  ;;  %3108 = vmatpush3.bf16.msra.mxu1 %v3429_v22 }
 0x2b9   : > { %3109 = vmatprep.subr.bf16.mxu1 %v3932_v36 }
 0x2bc   : > { %3110 = vmatpush3.bf16.msra.mxu1 %v3430_v23 }
 0x2bd   : > { %3115 = vmatprep.subr.bf16.mxu1 %v3932_v36 }
 0x330   : > { %v1052_v24 = vpop.xlane.xlu0 %1051 }
 0x331   : > { %v1056_v25 = vmul.f32 0.03125, %v1052_v24 }
 0x333   : > { %v1058_v26 = vadd.f32 1e-05, %v1056_v25 }
 0x334   : > { %v1055_v27 = vpop.xlane.xlu1 %1054 }
 0x335   : > { %3449 = vrsqrt.f32 %v1058_v26  ;;  %v1057_v28 = vmul.f32 0.03125, %v1055_v27 }
 0x337   : > { %v1059_v29 = vadd.f32 1e-05, %v1057_v28 }
 0x339   : > { %3451 = vrsqrt.f32 %v1059_v29 }
 0x33f   : > { %v3450_v30 = vpop.eup %3449 }
 0x340   : > { %v1062_v31 = vmul.f32 %v3450_v30, %v1046_v52 }
 0x342   : > { %v1070_v34 = vmul.f32 %v2943_v32, %v1062_v31 }
 0x343   : > { %v3452_v33 = vpop.eup %3451 }
 0x344   : > { %v1063_v35 = vmul.f32 %v3452_v33, %v1047_v57  ;;  %v1078_v39 = vadd.f32 %v2944_v37, %v1070_v34 }
 0x346   : > { %v1071_v38 = vmul.f32 %v2943_v32, %v1063_v35 }
 0x348   : > { %v1079_v40 = vadd.f32 %v2944_v37, %v1071_v38 }
 0x34a   : > { %v1218_v41 = vpack.c.bf16 %v1079_v40, %v1078_v39 }
 0x34c   : > { %3112 = vmatmul.mubr.msk.bf16.vlgmr.msra.gmra.mrb[8].mxu1 %vm948_vm0, %v1218_v41 }
 0x34d   : > { %3117 = vmatprep.mubr.msk.bf16.mxu1 %vm3933_vm1, %v3932_v36 }
 0x382   : > { %v1141_v42 = vpop.f32.mrb[0].mxu1 }
 0x383   : > { %v3097_v43 = vpop.f32.mrb[1].mxu1  ;;  %v1142_v57 = vadd.f32 %v2945_v54, %v1141_v42 }
 0x384   : > { %v1144_v44 = vpop.f32.mrb[2].mxu1 }
 0x385   : > { %v3098_v45 = vpop.f32.mrb[3].mxu1  ;;  %v1145_v59 = vadd.f32 %v2945_v54, %v1144_v44  ;;  %v4472_v60 = vpack.c.bf16 %v1142_v57, %v1142_v57 }
 0x387   : > { %v4474_v61 = vpack.c.bf16 %v1145_v59, %v1145_v59 }
 0x38a   : > { %v1210_v47 = vpop.f32.mrb[4].mxu1 }
 0x38b   : > { %v1211_v48 = vadd.f32 %v2949_v46, %v1210_v47  ;;  %v3105_v49 = vpop.f32.mrb[5].mxu1 }
 0x38c   : > { %v1213_v50 = vpop.f32.mrb[6].mxu1 }
 0x38d   : > { %v4462_v51 = vpack.c.bf16 %v1211_v48, %v1211_v48  ;;  %v1214_v52 = vadd.f32 %v2949_v46, %v1213_v50  ;;  %v3106_v53 = vpop.f32.mrb[7].mxu1 }
 0x38f   : > { %v4464_v55 = vpack.c.bf16 %v1214_v52, %v1214_v52  ;;  %v1307_v56 = vsel %vm1302_vm2, %v4462_v51, 0 }
 0x390   : > { %3116 = vmatpush3.bf16.xpose.msra.mxu1 %v1307_v56 }
 0x391   : > { %v1353_v58 = vsel %vm1302_vm2, %v4464_v55, 0  ;;  %3127 = vmatprep.subr.bf16.mxu1 %v3932_v36 }
 0x392   : > { %3122 = vmatpush3.bf16.xpose.msra.mxu0 %v1353_v58 }
 0x393   : > { %3133 = vmatprep.subr.bf16.mxu0 %v3932_v36 }
 0x397   : > { %3118 = vmatmul.mubr.msk.bf16.vlgmr.msra.gmra.mrb[12].mxu1 %vm1302_vm2, %v4472_v60 }
 0x398   : > { %3129 = vmatprep.mubr.msk.bf16.mxu1 %vm3933_vm1, %v3932_v36 }
 0x399   : > { %3124 = vmatmul.mubr.msk.bf16.vlgmr.msra.gmra.mrb[0].mxu0 %vm1302_vm2, %v4474_v61 }
 0x39a   : > { %3135 = vmatprep.mubr.msk.bf16.mxu0 %vm3933_vm1, %v3932_v36 }
 0x41f   : > { %v1279_v63 = vpop.f32.mrb[8].mxu1 }
 0x420   : > { %v1280_v0 = vadd.f32 %v2953_v62, %v1279_v63  ;;  %v3113_v1 = vpop.f32.mrb[9].mxu1 }
 0x421   : > { %v1282_v3 = vpop.f32.mrb[10].mxu1 }
 0x422   : > { %v4484_v5 = vpack.c.bf16 %v1280_v0, %v1280_v0  ;;  %v1283_v6 = vadd.f32 %v2953_v62, %v1282_v3  ;;  %v3114_v7 = vpop.f32.mrb[11].mxu1 }
 0x424   : > { %v4486_v8 = vpack.c.bf16 %v1283_v6, %v1283_v6  ;;  %v1426_v9 = vsel %vm1424_vm3, %v4484_v5, 0 }
 0x425   : > { %3128 = vmatpush3.bf16.msra.mxu1 %v1426_v9 }
 0x426   : > { %v1472_v10 = vsel %vm1424_vm3, %v4486_v8, 0  ;;  %3139 = vmatprep.subr.bf16.mxu1 %v3932_v36 }
 0x427   : > { %3134 = vmatpush3.bf16.msra.mxu0 %v1472_v10 }
 0x428   : > { %3145 = vmatprep.subr.bf16.mxu0 %v3932_v36 }
 0x46a   : > { %v1343_v11 = vpop.f32.mrb[12].mxu1 }
 0x46b   : > { %v3119_v12 = vpop.f32.mrb[13].mxu1  ;;  %v1395_v13 = vsel %vm1302_vm2, %v1343_v11, -inf }
 0x46c   : > { %v1389_v14 = vpop.f32.mrb[0].mxu0  ;;  %1396 = vmax.xlane.f32.xlu0 %v1395_v13  ;;  %v1346_v16 = vpop.f32.mrb[14].mxu1 }
 0x46d   : > { %v3120_v17 = vpop.f32.mrb[15].mxu1  ;;  %v3125_v18 = vpop.f32.mrb[1].mxu0  ;;  %v1398_v15 = vsel %vm1302_vm2, %v1389_v14, -inf }
 0x46e   : > { %1399 = vmax.xlane.f32.xlu1 %v1398_v15  ;;  %v1392_v19 = vpop.f32.mrb[2].mxu0 }
 0x46f   : > { %v3126_v20 = vpop.f32.mrb[3].mxu0 }
 0x47f   : > { %1568 = vrot.lane.b32.xlu1 %v4464_v55, %s3934_s20 }
 0x4f9   : > { %v1397_v21 = vpop.xlane.xlu0 %1396 }
 0x4fa   : > { %v1401_v22 = vsub.f32 %v1343_v11, %v1397_v21 }
 0x4fb   : > { %v1400_v23 = vpop.xlane.xlu1 %1399 }
 0x4fc   : > { %v1403_v24 = vmul.f32 1.442695, %v1401_v22  ;;  %v1402_v25 = vsub.f32 %v1389_v14, %v1400_v23 }
 0x4fe   : > { %3453 = vpow2.f32 %v1403_v24  ;;  %v1405_v26 = vmul.f32 1.442695, %v1402_v25 }
 0x4ff   : > { %v1569_v31 = vpop.permute.xlu1 %1568 }
 0x500   : > { %3455 = vpow2.f32 %v1405_v26  ;;  %v1574_v43 = vsel %vm1302_vm2, %v1569_v31, 0  ;;  %v2971_v26 = vld [vmem:[%s4874_s15 + $0x4] sm:$0xf]  ;;  %v1515_v31 = vld [vmem:[%s4874_s15] sm:$0xf] }
 0x508   : > { %v3454_v27 = vpop.eup %3453 }
 0x509   : > { %v1407_v28 = vsel %vm1302_vm2, %v3454_v27, 0.0 }
 0x50a   : > { %v3456_v29 = vpop.eup %3455  ;;  %1408 = vadd.xlane.f32.xlu0 %v1407_v28 }
 0x50b   : > { %v1410_v30 = vsel %vm1302_vm2, %v3456_v29, 0.0 }
 0x50c   : > { %1411 = vadd.xlane.f32.xlu1 %v1410_v30 }
 0x51d   : > { %1516 = vrot.lane.b32.xlu1 %v4472_v60, %s3934_s20 }
 0x520   : > { %1518 = vrot.lane.b32.xlu0 %v4462_v51, %s3934_s20 }
 0x521   : > { %1566 = vrot.lane.b32.xlu1 %v4474_v61, %s3934_s20 }
 0x597   : > { %v1409_v32 = vpop.xlane.xlu0 %1408 }
 0x598   : > { %3457 = vrcp.f32 %v1409_v32 }
 0x599   : > { %v1412_v33 = vpop.xlane.xlu1 %1411 }
 0x59a   : > { %3459 = vrcp.f32 %v1412_v33 }
 0x59b   : > { %v1519_v38 = vpop.permute.xlu0 %1518 }
 0x59c   : > { %v1524_v41 = vsel %vm1302_vm2, %v1519_v38, 0 }
 0x59d   : > { %v1517_v44 = vpop.permute.xlu1 %1516 }
 0x5a1   : > { %v1567_v45 = vpop.permute.xlu1 %1566 }
 0x5a2   : > { %v3458_v34 = vpop.eup %3457 }
 0x5a3   : > { %v4506_v35 = vmul.f32 %v3458_v34, %v3454_v27  ;;  %v1792_v34 = vsel %vm1424_vm3, %v1515_v31, 0 }
 0x5a4   : > { %v3460_v37 = vpop.eup %3459 }
 0x5a5   : > { %v4508_v39 = vmul.f32 %v3460_v37, %v3456_v29  ;;  %v1419_v40 = vpack.c.bf16 %v4506_v35, %v4506_v35  ;;  %v1745_v29 = vsel %vm1424_vm3, %v2971_v26, 0 }
 0x5a7   : > { %3130 = vmatmul.mubr.msk.bf16.vlgmr.msra.gmra.mrb[16].mxu1 %vm1302_vm2, %v1419_v40  ;;  %v1420_v42 = vpack.c.bf16 %v4508_v39, %v4508_v39 }
 0x5a8   : > { %3140 = vmatpush3.bf16.xpose.msra.mxu1 %v1524_v41  ;;  %3141 = vmatprep.mubr.msk.bf16.mxu1 %vm3933_vm1, %v3932_v36 }
 0x5a9   : > { %3136 = vmatmul.mubr.msk.bf16.vlgmr.msra.gmra.mrb[4].mxu0 %vm1302_vm2, %v1420_v42  ;;  %3151 = vmatprep.subr.bf16.mxu1 %v3932_v36 }
 0x5aa   : > { %3146 = vmatpush3.bf16.xpose.msra.mxu0 %v1574_v43  ;;  %3147 = vmatprep.mubr.msk.bf16.mxu0 %vm3933_vm1, %v3932_v36 }
 0x5ab   : > { %3157 = vmatprep.subr.bf16.mxu0 %v3932_v36 }
 0x5af   : > { %3142 = vmatmul.mubr.msk.bf16.vlgmr.msra.gmra.mrb[20].mxu1 %vm1302_vm2, %v1517_v44 }
 0x5b0   : > { %3153 = vmatprep.mubr.msk.bf16.mxu1 %vm3933_vm1, %v3932_v36 }
 0x5b1   : > { %3148 = vmatmul.mubr.msk.bf16.vlgmr.msra.gmra.mrb[8].mxu0 %vm1302_vm2, %v1567_v45 }
 0x5b2   : > { %3159 = vmatprep.mubr.msk.bf16.mxu0 %vm3933_vm1, %v3932_v36 }
 0x67a   : > { %v4530_v46 = vpop.f32.mrb[16].mxu1 }
 0x67b   : > { %v3131_v47 = vpop.f32.mrb[17].mxu1 }
 0x67c   : > { %v1465_v48 = vpop.f32.mrb[18].mxu1  ;;  %v4532_v49 = vpop.f32.mrb[4].mxu0 }
 0x67d   : > { %v1514_v50 = vpack.c.bf16 %v4532_v49, %v4530_v46  ;;  %v3132_v52 = vpop.f32.mrb[19].mxu1  ;;  %v3137_v53 = vpop.f32.mrb[5].mxu0 }
 0x67e   : > { %v1511_v54 = vpop.f32.mrb[6].mxu0 }
 0x67f   : > { %v3138_v56 = vpop.f32.mrb[7].mxu0 }
 0x682   : > { %v1560_v57 = vpop.f32.mrb[20].mxu1 }
 0x683   : > { %v3143_v58 = vpop.f32.mrb[21].mxu1  ;;  %v1616_v59 = vsel %vm1302_vm2, %v1560_v57, -inf }
 0x684   : > { %v1610_v62 = vpop.f32.mrb[8].mxu0  ;;  %1617 = vmax.xlane.f32.xlu0 %v1616_v59  ;;  %v1563_v63 = vpop.f32.mrb[22].mxu1 }
 0x685   : > { %v3144_v0 = vpop.f32.mrb[23].mxu1  ;;  %v3149_v1 = vpop.f32.mrb[9].mxu0  ;;  %v1619_v3 = vsel %vm1302_vm2, %v1610_v62, -inf }
 0x686   : > { %1620 = vmax.xlane.f32.xlu1 %v1619_v3  ;;  %v1613_v6 = vpop.f32.mrb[10].mxu0 }
 0x687   : > { %v3150_v7 = vpop.f32.mrb[11].mxu0 }
 0x697   : > { %1690 = vrot.lane.b32.xlu1 %v4486_v8, %s3934_s20 }
 0x69b   : > { %1837 = vrot.lane.b32.xlu1 %v4462_v51, %s3935_s29 }
 0x69f   : > { %1887 = vrot.lane.b32.xlu1 %v4464_v55, %s3935_s29 }
 0x6a3   : > { %1885 = vrot.lane.b32.xlu1 %v4474_v61, %s3935_s29 }
 0x711   : > { %v1618_v9 = vpop.xlane.xlu0 %1617 }
 0x712   : > { %v1622_v10 = vsub.f32 %v1560_v57, %v1618_v9 }
 0x713   : > { %v1621_v11 = vpop.xlane.xlu1 %1620 }
 0x714   : > { %v1624_v12 = vmul.f32 1.442695, %v1622_v10  ;;  %v1623_v13 = vsub.f32 %v1610_v62, %v1621_v11 }
 0x716   : > { %3461 = vpow2.f32 %v1624_v12  ;;  %v1626_v14 = vmul.f32 1.442695, %v1623_v13 }
 0x717   : > { %v1691_v16 = vpop.permute.xlu1 %1690 }
 0x718   : > { %3463 = vpow2.f32 %v1626_v14  ;;  %v1696_v17 = vsel %vm1424_vm3, %v1691_v16, 0 }
 0x719   : > { %3158 = vmatpush3.bf16.msra.mxu0 %v1696_v17 }
 0x71a   : > { %3169 = vmatprep.subr.bf16.mxu0 %v3932_v36 }
 0x71b   : > { %v1838_v37 = vpop.permute.xlu1 %1837 }
 0x71f   : > { %v1888_v38 = vpop.permute.xlu1 %1887 }
 0x720   : > { %v3462_v18 = vpop.eup %3461  ;;  %v1893_v40 = vsel %vm1302_vm2, %v1888_v38, 0 }
 0x721   : > { %v1628_v15 = vsel %vm1302_vm2, %v3462_v18, 0.0 }
 0x722   : > { %v3464_v19 = vpop.eup %3463  ;;  %1629 = vadd.xlane.f32.xlu0 %v1628_v15 }
 0x723   : > { %v1631_v20 = vsel %vm1302_vm2, %v3464_v19, 0.0  ;;  %v1886_v41 = vpop.permute.xlu1 %1885 }
 0x726   : > { %1632 = vadd.xlane.f32.xlu0 %v1631_v20 }
 0x73c   : > { %1642 = vrot.lane.b32.xlu0 %v4484_v5, %s3934_s20 }
 0x740   : > { %1835 = vrot.lane.b32.xlu0 %v4472_v60, %s3935_s29 }
 0x7af   : > { %v1630_v21 = vpop.xlane.xlu0 %1629 }
 0x7b0   : > { %3465 = vrcp.f32 %v1630_v21 }
 0x7b3   : > { %v1633_v22 = vpop.xlane.xlu0 %1632 }
 0x7b4   : > { %3467 = vrcp.f32 %v1633_v22 }
 0x7b7   : > { %v1643_v23 = vpop.permute.xlu0 %1642 }
 0x7b8   : > { %v1648_v24 = vsel %vm1424_vm3, %v1643_v23, 0 }
 0x7b9   : > { %3152 = vmatpush3.bf16.msra.mxu1 %v1648_v24 }
 0x7ba   : > { %v3466_v25 = vpop.eup %3465  ;;  %3163 = vmatprep.subr.bf16.mxu1 %v3932_v36 }
 0x7bb   : > { %v4559_v27 = vmul.f32 %v3466_v25, %v3462_v18  ;;  %v1836_v56 = vpop.permute.xlu0 %1835 }
 0x7bd   : > { %v1640_v28 = vpack.c.bf16 %v4559_v27, %v4559_v27 }
 0x7be   : > { %v3468_v30 = vpop.eup %3467 }
 0x7bf   : > { %v4567_v32 = vmul.f32 %v3468_v30, %v3464_v19  ;;  %3154 = vmatmul.mubr.msk.bf16.vlgmr.msra.gmra.mrb[24].mxu1 %vm1302_vm2, %v1640_v28 }
 0x7c0   : > { %3164 = vmatpush3.bf16.msra.mxu1 %v1745_v29  ;;  %3165 = vmatprep.mubr.msk.bf16.mxu1 %vm3933_vm1, %v3932_v36 }
 0x7c1   : > { %v1641_v33 = vpack.c.bf16 %v4567_v32, %v4567_v32  ;;  %3175 = vmatprep.subr.bf16.mxu1 %v3932_v36  ;;  %v1639_v29 = vadd.f32 %v4567_v32, %v4508_v39 }
 0x7c3   : > { %3160 = vmatmul.mubr.msk.bf16.vlgmr.msra.gmra.mrb[12].mxu0 %vm1302_vm2, %v1641_v33 }
 0x7c4   : > { %3170 = vmatpush3.bf16.msra.mxu0 %v1792_v34  ;;  %3171 = vmatprep.mubr.msk.bf16.mxu0 %vm3933_vm1, %v3932_v36 }
 0x7c5   : > { %3181 = vmatprep.subr.bf16.mxu0 %v3932_v36 }
 0x7cb   : > { %3172 = vmatmul.mubr.msk.bf16.vlgmr.msra.gmra.mrb[16].mxu0 %vm1302_vm2, %v1514_v50  ;;  %v1843_v50 = vsel %vm1302_vm2, %v1838_v37, 0 }
 0x7cc   : > { %3183 = vmatprep.mubr.msk.bf16.mxu0 %vm3933_vm1, %v3932_v36 }
 0x7cd   : > { %3182 = vmatpush3.bf16.xpose.msra.mxu0 %v1893_v40 }
 0x7ce   : > { %3193 = vmatprep.subr.bf16.mxu0 %v3932_v36 }
 0x7d4   : > { %3184 = vmatmul.mubr.msk.bf16.vlgmr.msra.gmra.mrb[20].mxu0 %vm1302_vm2, %v1886_v41 }
 0x7d5   : > { %3195 = vmatprep.mubr.msk.bf16.mxu0 %vm3933_vm1, %v3932_v36 }
 0x892   : > { %v1684_v42 = vpop.f32.mrb[24].mxu1 }
 0x893   : > { %v3155_v43 = vpop.f32.mrb[25].mxu1 }
 0x894   : > { %v1687_v44 = vpop.f32.mrb[26].mxu1 }
 0x895   : > { %v3156_v45 = vpop.f32.mrb[27].mxu1 }
 0x896   : > { %v1732_v46 = vpop.f32.mrb[12].mxu0 }
 0x897   : > { %v1738_v47 = vpack.c.bf16 %v1732_v46, %v1684_v42  ;;  %v3161_v48 = vpop.f32.mrb[13].mxu0  ;;  %v1638_v42 = vadd.f32 %v4559_v27, %v4506_v35 }
 0x898   : > { %v1735_v49 = vpop.f32.mrb[14].mxu0 }
 0x899   : > { %v3162_v52 = vpop.f32.mrb[15].mxu0  ;;  %3166 = vmatmul.mubr.msk.bf16.vlgmr.msra.gmra.mrb[28].mxu1 %vm1302_vm2, %v1738_v47  ;;  %v2978_v49 = vld [vmem:[%s4874_s15 + $0x8] sm:$0xf] }
 0x89a   : > { %3176 = vmatpush3.bf16.xpose.msra.mxu1 %v1843_v50  ;;  %3177 = vmatprep.mubr.msk.bf16.mxu1 %vm3933_vm1, %v3932_v36  ;;  %v2064_v50 = vsel %vm1424_vm3, %v2978_v49, 0 }
 0x89b   : > { %3187 = vmatprep.subr.bf16.mxu1 %v3932_v36 }
 0x89e   : > { %v1828_v53 = vpop.f32.mrb[16].mxu0 }
 0x89f   : > { %v3173_v54 = vpop.f32.mrb[17].mxu0 }
 0x8a0   : > { %v1831_v57 = vpop.f32.mrb[18].mxu0 }
 0x8a1   : > { %v3174_v58 = vpop.f32.mrb[19].mxu0  ;;  %3178 = vmatmul.mubr.msk.bf16.vlgmr.msra.gmra.mrb[32].mxu1 %vm1302_vm2, %v1836_v56 }
 0x8a2   : > { %3189 = vmatprep.mubr.msk.bf16.mxu1 %vm3933_vm1, %v3932_v36 }
 0x8a7   : > { %v1929_v59 = vpop.f32.mrb[20].mxu0 }
 0x8a8   : > { %v3185_v62 = vpop.f32.mrb[21].mxu0  ;;  %v1938_v63 = vsel %vm1302_vm2, %v1929_v59, -inf }
 0x8a9   : > { %1939 = vmax.xlane.f32.xlu1 %v1938_v63  ;;  %v1932_v0 = vpop.f32.mrb[22].mxu0 }
 0x8aa   : > { %v3186_v1 = vpop.f32.mrb[23].mxu0 }
 0x8ba   : > { %2009 = vrot.lane.b32.xlu1 %v4486_v8, %s3935_s29 }
 0x8be   : > { %2111 = vrot.lane.b32.xlu1 %v4462_v51, %s3936_s8 }
 0x8c2   : > { %2161 = vrot.lane.b32.xlu1 %v4464_v55, %s3936_s8 }
 0x8c6   : > { %2159 = vrot.lane.b32.xlu1 %v4474_v61, %s3936_s8 }
 0x936   : > { %v1940_v3 = vpop.xlane.xlu1 %1939 }
 0x937   : > { %v1942_v9 = vsub.f32 %v1929_v59, %v1940_v3 }
 0x939   : > { %v1945_v10 = vmul.f32 1.442695, %v1942_v9 }
 0x93a   : > { %v2010_v6 = vpop.permute.xlu1 %2009 }
 0x93b   : > { %v2015_v7 = vsel %vm1424_vm3, %v2010_v6, 0  ;;  %3469 = vpow2.f32 %v1945_v10 }
 0x93c   : > { %3194 = vmatpush3.bf16.msra.mxu0 %v2015_v7 }
 0x93d   : > { %3205 = vmatprep.subr.bf16.mxu0 %v3932_v36 }
 0x93e   : > { %v2112_v31 = vpop.permute.xlu1 %2111 }
 0x93f   : > { %v2117_v37 = vsel %vm1302_vm2, %v2112_v31, 0 }
 0x942   : > { %v2162_v56 = vpop.permute.xlu1 %2161 }
 0x943   : > { %v2167_v63 = vsel %vm1302_vm2, %v2162_v56, 0 }
 0x945   : > { %v3470_v18 = vpop.eup %3469 }
 0x946   : > { %v1950_v20 = vsel %vm1302_vm2, %v3470_v18, 0.0  ;;  %v2160_v1 = vpop.permute.xlu1 %2159 }
 0x96c   : > { %v1781_v11 = vpop.f32.mrb[28].mxu1 }
 0x96d   : > { %v4610_v12 = vadd.f32 %v1828_v53, %v1781_v11  ;;  %v3167_v51 = vpop.f32.mrb[29].mxu1 }
 0x96e   : > { %v1784_v13 = vpop.f32.mrb[30].mxu1 }
 0x96f   : > { %v4612_v14 = vadd.f32 %v1831_v57, %v1784_v13  ;;  %v3168_v55 = vpop.f32.mrb[31].mxu1 }
 0x974   : > { %v1879_v16 = vpop.f32.mrb[32].mxu1 }
 0x975   : > { %v3179_v61 = vpop.f32.mrb[33].mxu1  ;;  %v1935_v17 = vsel %vm1302_vm2, %v1879_v16, -inf }
 0x976   : > { %1936 = vmax.xlane.f32.xlu0 %v1935_v17  ;;  %v1882_v15 = vpop.f32.mrb[34].mxu1 }
 0x977   : > { %v3180_v19 = vpop.f32.mrb[35].mxu1 }
 0x97a   : > { %1951 = vadd.xlane.f32.xlu0 %v1950_v20 }
 0xa03   : > { %v1937_v21 = vpop.xlane.xlu0 %1936 }
 0xa04   : > { %v1941_v22 = vsub.f32 %v1879_v16, %v1937_v21 }
 0xa06   : > { %v1943_v23 = vmul.f32 1.442695, %v1941_v22 }
 0xa07   : > { %v1952_v24 = vpop.xlane.xlu0 %1951 }
 0xa08   : > { %3471 = vpow2.f32 %v1943_v23 }
 0xa09   : > { %3473 = vrcp.f32 %v1952_v24 }
 0xa12   : > { %v3472_v25 = vpop.eup %3471 }
 0xa13   : > { %v3474_v26 = vpop.eup %3473  ;;  %v1947_v28 = vsel %vm1302_vm2, %v3472_v25, 0.0 }
 0xa14   : > { %v1956_v30 = vmul.f32 %v3474_v26, %v3470_v18  ;;  %1948 = vadd.xlane.f32.xlu0 %v1947_v28 }
 0xa16   : > { %v4619_v33 = vadd.f32 %v1956_v30, %v1639_v29  ;;  %v1960_v34 = vpack.c.bf16 %v1956_v30, %v1956_v30 }
 0xa18   : > { %3196 = vmatmul.mubr.msk.bf16.vlgmr.msra.gmra.mrb[24].mxu0 %vm1302_vm2, %v1960_v34 }
 0xa19   : > { %3206 = vmatpush3.bf16.xpose.msra.mxu0 %v2117_v37  ;;  %3207 = vmatprep.mubr.msk.bf16.mxu0 %vm3933_vm1, %v3932_v36 }
 0xa1a   : > { %3217 = vmatprep.subr.bf16.mxu0 %v3932_v36 }
 0xa2a   : > { %1961 = vrot.lane.b32.xlu0 %v4484_v5, %s3935_s29  ;;  %s4959_s29 = sld [smem:[#allocation52_spill]] }
 0xa2e   : > { %2109 = vrot.lane.b32.xlu0 %v4472_v60, %s3936_s8 }
 0xa30   : > { %s4765_s27 = scalar_lea.hbm %s4959_s29, %s3016_s25 }
 0xaa1   : > { %v1949_v39 = vpop.xlane.xlu0 %1948 }
 0xaa2   : > { %3475 = vrcp.f32 %v1949_v39 }
 0xaa5   : > { %v1962_v32 = vpop.permute.xlu0 %1961 }
 0xaa6   : > { %v1967_v38 = vsel %vm1424_vm3, %v1962_v32, 0 }
 0xaa7   : > { %3188 = vmatpush3.bf16.msra.mxu1 %v1967_v38 }
 0xaa8   : > { %3199 = vmatprep.subr.bf16.mxu1 %v3932_v36 }
 0xaa9   : > { %v2110_v40 = vpop.permute.xlu0 %2109 }
 0xaaa   : > { %3208 = vmatmul.mubr.msk.bf16.vlgmr.msra.gmra.mrb[28].mxu0 %vm1302_vm2, %v2110_v40 }
 0xaab   : > { %3219 = vmatprep.mubr.msk.bf16.mxu0 %vm3933_vm1, %v3932_v36 }
 0xaac   : > { %v3476_v41 = vpop.eup %3475 }
 0xaad   : > { %v1955_v43 = vmul.f32 %v3476_v41, %v3472_v25 }
 0xaaf   : > { %v1957_v60 = vadd.f32 %v1955_v43, %v1638_v42  ;;  %v1959_v44 = vpack.c.bf16 %v1955_v43, %v1955_v43  ;;  %v2984_v42 = vld [vmem:[%s4874_s15 + $0xc] sm:$0xf] }
 0xab0   : > { %v2338_v43 = vsel %vm1424_vm3, %v2984_v42, 0 }
 0xab1   : > { %3190 = vmatmul.mubr.msk.bf16.vlgmr.msra.gmra.mrb[36].mxu1 %vm1302_vm2, %v1959_v44 }
 0xab2   : > { %3201 = vmatprep.mubr.msk.bf16.mxu1 %vm3933_vm1, %v3932_v36  ;;  %3200 = vmatpush3.bf16.msra.mxu1 %v2064_v50 }
 0xab3   : > { %3211 = vmatprep.subr.bf16.mxu1 %v3932_v36 }
 0xaeb   : > { %v2051_v45 = vpop.f32.mrb[24].mxu0 }
 0xaec   : > { %v3197_v46 = vpop.f32.mrb[25].mxu0 }
 0xaed   : > { %v2054_v47 = vpop.f32.mrb[26].mxu0 }
 0xaee   : > { %v3198_v48 = vpop.f32.mrb[27].mxu0 }
 0xb7d   : > { %v2153_v35 = vpop.f32.mrb[28].mxu0 }
 0xb7e   : > { %v3209_v27 = vpop.f32.mrb[29].mxu0  ;;  %v2209_v52 = vsel %vm1302_vm2, %v2153_v35, -inf }
 0xb7f   : > { %2210 = vmax.xlane.f32.xlu0 %v2209_v52  ;;  %v2156_v53 = vpop.f32.mrb[30].mxu0  ;;  %v2986_v27 = vld [vmem:[#allocation17] ss:$0 sm:$0xff] }
 0xb80   : > { %v3210_v54 = vpop.f32.mrb[31].mxu0 }
 0xb84   : > { %v2003_v57 = vpop.f32.mrb[36].mxu1 }
 0xb85   : > { %v2057_v58 = vpack.c.bf16 %v2051_v45, %v2003_v57  ;;  %v3191_v59 = vpop.f32.mrb[37].mxu1 }
 0xb86   : > { %v2006_v62 = vpop.f32.mrb[38].mxu1 }
 0xb87   : > { %v3192_v0 = vpop.f32.mrb[39].mxu1  ;;  %3202 = vmatmul.mubr.msk.bf16.vlgmr.msra.gmra.mrb[40].mxu1 %vm1302_vm2, %v2057_v58 }
 0xb88   : > { %3212 = vmatpush3.bf16.xpose.msra.mxu1 %v2167_v63  ;;  %3213 = vmatprep.mubr.msk.bf16.mxu1 %vm3933_vm1, %v3932_v36 }
 0xb89   : > { %3223 = vmatprep.subr.bf16.mxu1 %v3932_v36 }
 0xb8f   : > { %3214 = vmatmul.mubr.msk.bf16.vlgmr.msra.gmra.mrb[44].mxu1 %vm1302_vm2, %v2160_v1 }
 0xb90   : > { %3225 = vmatprep.mubr.msk.bf16.mxu1 %vm3933_vm1, %v3932_v36 }
 0xc0c   : > { %v2211_v3 = vpop.xlane.xlu0 %2210 }
 0xc0d   : > { %v2215_v6 = vsub.f32 %v2153_v35, %v2211_v3 }
 0xc0f   : > { %v2217_v7 = vmul.f32 1.442695, %v2215_v6 }
 0xc11   : > { %3477 = vpow2.f32 %v2217_v7 }
 0xc1b   : > { %v3478_v9 = vpop.eup %3477 }
 0xc1c   : > { %v2221_v10 = vsel %vm1302_vm2, %v3478_v9, 0.0 }
 0xc1d   : > { %2222 = vadd.xlane.f32.xlu0 %v2221_v10 }
 0xc5a   : > { %v2100_v11 = vpop.f32.mrb[40].mxu1 }
 0xc5b   : > { %v4656_v51 = vadd.f32 %v2100_v11, %v4610_v12  ;;  %v3203_v13 = vpop.f32.mrb[41].mxu1 }
 0xc5c   : > { %v2103_v55 = vpop.f32.mrb[42].mxu1 }
 0xc5d   : > { %v4659_v16 = vadd.f32 %v2103_v55, %v4612_v14  ;;  %v3204_v61 = vpop.f32.mrb[43].mxu1  ;;  %v3431_v55 = vld [vmem:[%s4878_s19] sm:$0xff]  }
 0xc62   : > { %v2203_v17 = vpop.f32.mrb[44].mxu1 }
 0xc63   : > { %v3215_v18 = vpop.f32.mrb[45].mxu1  ;;  %v2212_v15 = vsel %vm1302_vm2, %v2203_v17, -inf }
 0xc64   : > { %2213 = vmax.xlane.f32.xlu1 %v2212_v15  ;;  %v2206_v19 = vpop.f32.mrb[46].mxu1 }
 0xc65   : > { %v3216_v20 = vpop.f32.mrb[47].mxu1 }
 0xc75   : > { %2283 = vrot.lane.b32.xlu1 %v4486_v8, %s3936_s8 }
 0xcaa   : > { %v2223_v21 = vpop.xlane.xlu0 %2222 }
 0xcab   : > { %3479 = vrcp.f32 %v2223_v21 }
 0xcb5   : > { %v3480_v12 = vpop.eup %3479 }
 0xcb6   : > { %v2229_v14 = vmul.f32 %v3480_v12, %v3478_v9  ;;  %v2987_v12 = vld [vmem:[#allocation19] ss:$0 sm:$0xff] }
 0xcb8   : > { %v2231_v22 = vadd.f32 %v2229_v14, %v1957_v60  ;;  %v2233_v39 = vpack.c.bf16 %v2229_v14, %v2229_v14 }
 0xcba   : > { %v2383_v23 = vmul.f32 0.25, %v2231_v22 }
 0xcbc   : > { %2385 = vst.msk [vmem:[%s4670_s28] sm:$0xff] %vm1302_vm2, %v2383_v23 }
 0xcf1   : > { %v2214_v24 = vpop.xlane.xlu1 %2213 }
 0xcf2   : > { %v2216_v25 = vsub.f32 %v2203_v17, %v2214_v24 }
 0xcf4   : > { %v2219_v8 = vmul.f32 1.442695, %v2216_v25  ;;  %v2988_v25 = vld [vmem:[%s4877_s18] ss:$0 sm:$0xff] }
 0xcf5   : > { %v2284_v26 = vpop.permute.xlu1 %2283 }
 0xcf6   : > { %3481 = vpow2.f32 %v2219_v8  ;;  %v2289_v28 = vsel %vm1424_vm3, %v2284_v26, 0 }
 0xcf7   : > { %3224 = vmatpush3.bf16.msra.mxu1 %v2289_v28 }
 0xcf8   : > { %3235 = vmatprep.subr.bf16.mxu1 %v3932_v36 }
 0xd00   : > { %v3482_v29 = vpop.eup %3481 }
 0xd01   : > { %v2224_v30 = vsel %vm1302_vm2, %v3482_v29, 0.0 }
 0xd02   : > { %2225 = vadd.xlane.f32.xlu0 %v2224_v30  ;;  %v3433_v30 = vld [vmem:[%s4880_s21] sm:$0xff]  }
 0xd18   : > { %2235 = vrot.lane.b32.xlu0 %v4484_v5, %s3936_s8  ;;  %s3937_s8 = smov [#allocation21]  }
 0xd19   : > { %s3805_s7 = sshll.u32 %s3937_s8, 4  ;;  %s3806_s7 = int_to_ptr.vmem [resolvable:$false] %s3805_s7 }
 0xd1a   : > { %s3807_s2 = scalar_lea.vmem %s3806_s7, 512  ;;  %p3808_p5 = scmp.lt.s32.totalorder %s4768_s16, %s3806_s7 }
 0xd1b   : > { %p3809_p9 = scmp.lt.s32.totalorder %s3807_s2, %s3801_s3 }
 0xd1d   : > { %p3810_p12 = por %p3809_p9, %p3808_p5 }
 0xd1f   : > { %p3811_p10 = pnand %p3810_p12, %p3804_p6 }
 0xd8f   : > { %v2226_v31 = vpop.xlane.xlu0 %2225 }
 0xd90   : > { %3483 = vrcp.f32 %v2226_v31  ;;  %v3434_v31 = vld [vmem:[%s4880_s21 + $0x8] sm:$0xff]  }
 0xd93   : > { %v2236_v34 = vpop.permute.xlu0 %2235 }
 0xd94   : > { %v2241_v37 = vsel %vm1424_vm3, %v2236_v34, 0  ;;  %v3435_v34 = vld [vmem:[%s4880_s21 + $0x10] sm:$0xff]  }
 0xd95   : > { %3218 = vmatpush3.bf16.msra.mxu0 %v2241_v37  ;;  %v3436_v37 = vld [vmem:[%s4880_s21 + $0x18] sm:$0xff]  }
 0xd96   : > { %3229 = vmatprep.subr.bf16.mxu0 %v3932_v36 }
 0xd98   : > { %3220 = vmatmul.mubr.msk.bf16.vlgmr.msra.gmra.mrb[32].mxu0 %vm1302_vm2, %v2233_v39  ;;  %v3437_v39 = vld [vmem:[%s4880_s21 + $0x20] sm:$0xff]  }
 0xd99   : > { %3231 = vmatprep.mubr.msk.bf16.mxu0 %vm3933_vm1, %v3932_v36  ;;  %3230 = vmatpush3.bf16.msra.mxu0 %v2338_v43 }
 0xd9a   : > { %v3484_v32 = vpop.eup %3483  ;;  %3243 = vmatprep.subr.bf16.mxu0 %v3932_v36 }
 0xd9b   : > { %v2230_v38 = vmul.f32 %v3484_v32, %v3482_v29  ;;  %v3438_v32 = vld [vmem:[%s4880_s21 + $0x28] sm:$0xff]  }
 0xd9d   : > { %v2232_v40 = vadd.f32 %v2230_v38, %v4619_v33  ;;  %v2234_v5 = vpack.c.bf16 %v2230_v38, %v2230_v38  ;;  %v3439_v38 = vld [vmem:[%s4880_s21 + $0x30] sm:$0xff]  }
 0xd9f   : > { %v2384_v41 = vmul.f32 0.25, %v2232_v40  ;;  %3226 = vmatmul.mubr.msk.bf16.vlgmr.msra.gmra.mrb[48].mxu1 %vm1302_vm2, %v2234_v5  ;;  %v3440_v40 = vld [vmem:[%s4880_s21 + $0x38] sm:$0xff]   ;;  %v2989_v5 = vld [vmem:[%s4957_s4] ss:$0 sm:$0xff] }
 0xda0   : > { %3239 = vmatprep.mubr.msk.bf16.mxu1 %vm3933_vm1, %v3932_v36  ;;  %3236 = vmatpush3.bf16.msra.mxu1 %v3431_v55 }
 0xda1   : > { %2386 = vst.msk [vmem:[%s4670_s28 + $0x8] sm:$0xff] %vm1302_vm2, %v2384_v41  ;;  %3237 = vmatprep.subr.bf16.mxu1 %v3932_v36 }
 0xe6b   : > { %v2277_v60 = vpop.f32.mrb[32].mxu0 }
 0xe6c   : > { %v3221_v33 = vpop.f32.mrb[33].mxu0 }
 0xe6d   : > { %v2280_v44 = vpop.f32.mrb[34].mxu0 }
 0xe6e   : > { %v3222_v45 = vpop.f32.mrb[35].mxu0 }
 0xe72   : > { %v2325_v46 = vpop.f32.mrb[48].mxu1 }
 0xe73   : > { %v2331_v47 = vpack.c.bf16 %v2325_v46, %v2277_v60  ;;  %v3227_v48 = vpop.f32.mrb[49].mxu1 }
 0xe74   : > { %v2328_v49 = vpop.f32.mrb[50].mxu1 }
 0xe75   : > { %v3228_v50 = vpop.f32.mrb[51].mxu1  ;;  %3232 = vmatmul.mubr.msk.bf16.vlgmr.msra.gmra.mrb[36].mxu0 %vm1302_vm2, %v2331_v47 }
 0xe76   : > { %3259 = vmatprep.mubr.msk.bf16.mxu0 %vm3933_vm1, %v3932_v36  ;;  %3244 = vmatpush3.bf16.msra.mxu0 %v3433_v30 }
 0xe77   : > { %3245 = vmatprep.subr.bf16.mxu0 %v3932_v36 }
 0xe7a   : > { %3246 = vmatpush3.bf16.msra.mxu0 %v3434_v31 }
 0xe7b   : > { %3247 = vmatprep.subr.bf16.mxu0 %v3932_v36 }
 0xe7e   : > { %3248 = vmatpush3.bf16.msra.mxu0 %v3435_v34 }
 0xe7f   : > { %3249 = vmatprep.subr.bf16.mxu0 %v3932_v36 }
 0xe82   : > { %3250 = vmatpush3.bf16.msra.mxu0 %v3436_v37 }
 0xe83   : > { %3251 = vmatprep.subr.bf16.mxu0 %v3932_v36 }
 0xe86   : > { %3252 = vmatpush3.bf16.msra.mxu0 %v3437_v39 }
 0xe87   : > { %3253 = vmatprep.subr.bf16.mxu0 %v3932_v36 }
 0xe8a   : > { %3254 = vmatpush3.bf16.msra.mxu0 %v3438_v32 }
 0xe8b   : > { %3255 = vmatprep.subr.bf16.mxu0 %v3932_v36 }
 0xe8e   : > { %3256 = vmatpush3.bf16.msra.mxu0 %v3439_v38 }
 0xe8f   : > { %3257 = vmatprep.subr.bf16.mxu0 %v3932_v36 }
 0xe92   : > { %3258 = vmatpush3.bf16.msra.mxu0 %v3440_v40 }
 0xf48   : > { %v2374_v35 = vpop.f32.mrb[36].mxu0 }
 0xf49   : > { %v2381_v52 = vadd.f32 %v2374_v35, %v4656_v51  ;;  %v3233_v53 = vpop.f32.mrb[37].mxu0 }
 0xf4a   : > { %v2377_v54 = vpop.f32.mrb[38].mxu0 }
 0xf4b   : > { %v2394_v56 = vadd.f32 %v2986_v27, %v2381_v52  ;;  %v2382_v57 = vadd.f32 %v2377_v54, %v4659_v16  ;;  %v3234_v58 = vpop.f32.mrb[39].mxu0  ;;  %v3432_v16 = vld [vmem:[%s4878_s19 + $0x8] sm:$0xff]  }
 0xf4c   : > { %3238 = vmatpush3.bf16.msra.mxu1 %v3432_v16 }
 0xf4d   : > { %v4701_v59 = vadd.f32 %v4384_v2, %v2394_v56  ;;  %v2395_v62 = vadd.f32 %v2986_v27, %v2382_v57 }
 0xf4f   : > { %v4704_v63 = vadd.f32 %v4386_v4, %v2395_v62  ;;  %v2400_v0 = vsel %vm948_vm0, %v4701_v59, 0.0 }
 0xf50   : > { %2401 = vadd.xlane.f32.xlu1 %v2400_v0 }
 0xf51   : > { %v2403_v1 = vsel %vm948_vm0, %v4704_v63, 0.0 }
 0xf52   : > { %2404 = vadd.xlane.f32.xlu0 %v2403_v1 }
 0xfdd   : > { %v2402_v3 = vpop.xlane.xlu1 %2401 }
 0xfde   : > { %v2406_v6 = vmul.f32 0.03125, %v2402_v3 }
 0xfdf   : > { %v2405_v7 = vpop.xlane.xlu0 %2404 }
 0xfe0   : > { %v2408_v9 = vsub.f32 %v4701_v59, %v2406_v6  ;;  %v2407_v10 = vmul.f32 0.03125, %v2405_v7 }
 0xfe2   : > { %v2409_v2 = vsub.f32 %v4704_v63, %v2407_v10  ;;  %v2410_v11 = vmul.f32 %v2408_v9, %v2408_v9 }
 0xfe4   : > { %v2412_v4 = vsel %vm948_vm0, %v2410_v11, 0.0  ;;  %v2411_v51 = vmul.f32 %v2409_v2, %v2409_v2 }
 0xfe5   : > { %2413 = vadd.xlane.f32.xlu0 %v2412_v4 }
 0xfe6   : > { %v2415_v13 = vsel %vm948_vm0, %v2411_v51, 0.0 }
 0xfe7   : > { %2416 = vadd.xlane.f32.xlu1 %v2415_v13 }
0x1072   : > { %v2414_v61 = vpop.xlane.xlu0 %2413 }
0x1073   : > { %v2418_v17 = vmul.f32 0.03125, %v2414_v61 }
0x1074   : > { %v2417_v18 = vpop.xlane.xlu1 %2416 }
0x1075   : > { %v2420_v15 = vadd.f32 1e-05, %v2418_v17  ;;  %v2419_v19 = vmul.f32 0.03125, %v2417_v18 }
0x1077   : > { %3485 = vrsqrt.f32 %v2420_v15  ;;  %v2421_v20 = vadd.f32 1e-05, %v2419_v19 }
0x1079   : > { %3487 = vrsqrt.f32 %v2421_v20 }
0x1081   : > { %v3486_v21 = vpop.eup %3485 }
0x1082   : > { %v2424_v14 = vmul.f32 %v3486_v21, %v2408_v9 }
0x1083   : > { %v3488_v22 = vpop.eup %3487 }
0x1084   : > { %v2432_v23 = vmul.f32 %v2987_v12, %v2424_v14  ;;  %v2425_v24 = vmul.f32 %v3488_v22, %v2409_v2 }
0x1086   : > { %v2433_v8 = vmul.f32 %v2987_v12, %v2425_v24  ;;  %v2440_v26 = vadd.f32 %v2988_v25, %v2432_v23 }
0x1088   : > { %v2441_v28 = vadd.f32 %v2988_v25, %v2433_v8 }
0x108a   : > { %v2442_v29 = vpack.c.bf16 %v2441_v28, %v2440_v26 }
0x108c   : > { %3240 = vmatmul.mubr.msk.bf16.vlgmr.msra.gmra.mrb[52].mxu1 %vm948_vm0, %v2442_v29 }
0x115f   : > { %v2503_v41 = vpop.f32.mrb[52].mxu1 }
0x1160   : > { %v2504_v42 = vadd.f32 %v2989_v5, %v2503_v41  ;;  %v3241_v43 = vpop.f32.mrb[53].mxu1 }
0x1161   : > { %v2506_v60 = vpop.f32.mrb[54].mxu1 }
0x1162   : > { %v2512_v33 = vmul.f32 %v2504_v42, %v2504_v42  ;;  %v2507_v44 = vadd.f32 %v2989_v5, %v2506_v60  ;;  %v3242_v45 = vpop.f32.mrb[55].mxu1  ;;  %v2510_v57 = vmul.f32 0.5, %v2504_v42 }
0x1164   : > { %v2514_v46 = vmul.f32 %v2512_v33, %v2504_v42  ;;  %v2513_v47 = vmul.f32 %v2507_v44, %v2507_v44  ;;  %v2511_v58 = vmul.f32 0.5, %v2507_v44 }
0x1166   : > { %v2516_v48 = vmul.f32 0.044715, %v2514_v46  ;;  %v2515_v49 = vmul.f32 %v2513_v47, %v2507_v44 }
0x1168   : > { %v2518_v50 = vadd.f32 %v2516_v48, %v2504_v42  ;;  %v2517_v35 = vmul.f32 0.044715, %v2515_v49 }
0x116a   : > { %v2520_v36 = vmul.f32 0.7978846, %v2518_v50  ;;  %v2519_v27 = vadd.f32 %v2517_v35, %v2507_v44 }
0x116c   : > { %3489 = vtanh.f32 %v2520_v36  ;;  %v2521_v52 = vmul.f32 0.7978846, %v2519_v27 }
0x116e   : > { %3491 = vtanh.f32 %v2521_v52 }
0x1176   : > { %v3490_v53 = vpop.eup %3489 }
0x1177   : > { %v2524_v54 = vadd.f32 1.0, %v3490_v53 }
0x1178   : > { %v3492_v56 = vpop.eup %3491 }
0x1179   : > { %v2525_v62 = vadd.f32 1.0, %v3492_v56  ;;  %v2526_v0 = vmul.f32 %v2524_v54, %v2510_v57 }
0x117b   : > { %v2527_v1 = vmul.f32 %v2525_v62, %v2511_v58 }
0x117d   : > { %v2528_v3 = vpack.c.bf16 %v2527_v1, %v2526_v0 }
0x117f   : > { %3260 = vmatmul.mubr.bf16.vlgmr.msra.gmra.mrb[40].mxu0 %v2528_v3 }
0x1180   : > { %3814 = shalt.err (!%p3811_p10)
}
0x1181   : > { %s3815_s28 = scalar_lea.hbm %s4765_s27, 256  ;;  %s3819_s20 = scalar_lea.hbm %s4959_s29, 512 }
0x1182   : > { %p3816_p2 = scmp.ne.s32.totalorder %s4765_s27, %s3815_s28  ;;  %p3820_p7 = scmp.lt.u32.totalorder %s4765_s27, %s4959_s29 }
0x1183   : > { %p3821_p8 = scmp.lt.u32.totalorder %s3819_s20, %s3815_s28  ;;  %p3823_p13 = scmp.lt.u32.totalorder %s3815_s28, %s4765_s27 }
0x1184   : > { %p3817_p3 = pnand %p3816_p2, %p4960_p1 }
0x1185   : > { %p3822_p11 = por %p3821_p8, %p3820_p7 }
0x1186   : > { %p3818_p4 = pneg %p3817_p3 }
0x1187   : > { %p3824_p0 = por %p3823_p13, %p3822_p11 }
0x1189   : > { %p3825_p6 = pnand %p3824_p0, %p3818_p4 }
0x118b   : > { %3828 = shalt.err (!%p3825_p6)
}
0x118c   : > { %s3938_s3 = smov 128   ;;  %s3939_s2 = smov 8  }
0x118d   : > { %3308 = dma.vmem_to_hbm [thread:$0]  (%p4960_p1), %s4768_s16, 256, %s4765_s27, %s2651_s12, %s3938_s3, %s3938_s3, %s3939_s2  }
0x118e   : > { %s4961_s28 = sld [smem:[#allocation50_spill]]  ;;  %s905_s20 = scalar_lea.vmem [#allocation20], %s2931_s22 }
0x118f   : > { %s2664_s8 = sshll.u32 %s905_s20, 4  ;;  %s4962_s12 = sld [smem:[#allocation51_spill]]  ;;  %s4812_s8 = int_to_ptr.vmem [resolvable:$true] %s2664_s8 }
0x1190   : > { %s2646_s22 = scalar_lea.sflag [#allocation4], %s4665_s5  ;;  %s3829_s4 = scalar_lea.vmem %s4812_s8, 256 }
0x1191   : > { %p3830_p5 = scmp.ne.s32.totalorder %s4812_s8, %s3829_s4  ;;  %s3940_s1 = smov [#allocation20]  }
0x1192   : > { %s3833_s6 = sshll.u32 %s3940_s1, 4  ;;  %s3834_s6 = int_to_ptr.vmem [resolvable:$false] %s3833_s6 }
0x1193   : > { %p3831_p9 = pnand %p3830_p5, %p4960_p1  ;;  %p3836_p10 = scmp.lt.s32.totalorder %s4812_s8, %s3834_s6 }
0x1194   : > { %v2993_v6 = vld [vmem:[%s4961_s28] ss:$0 sm:$0xff]  ;;  %s3835_s28 = scalar_lea.vmem %s3834_s6, 512 }
0x1195   : > { %s4810_s7 = scalar_lea.hbm %s4962_s12, %s3016_s25  ;;  %p3832_p12 = pneg %p3831_p9 }
0x1196   : > { %p3837_p2 = scmp.lt.s32.totalorder %s3835_s28, %s3829_s4 }
0x1198   : > { %p3838_p3 = por %p3837_p2, %p3836_p10 }
0x119a   : > { %p3839_p4 = pnand %p3838_p3, %p3832_p12 }
0x1252   : > { %v2634_v7 = vpop.f32.mrb[40].mxu0 }
0x1253   : > { %v2635_v9 = vadd.f32 %v2993_v6, %v2634_v7  ;;  %v3261_v10 = vpop.f32.mrb[41].mxu0 }
0x1254   : > { %v2637_v2 = vpop.f32.mrb[42].mxu0 }
0x1255   : > { %v2641_v11 = vadd.f32 %v2635_v9, %v4701_v59  ;;  %v2638_v4 = vadd.f32 %v2993_v6, %v2637_v2  ;;  %v3262_v51 = vpop.f32.mrb[43].mxu0 }
0x1257   : > { %2643 = vst.msk [vmem:[%s905_s20] sm:$0xff] %vm948_vm0, %v2641_v11  ;;  %v2642_v13 = vadd.f32 %v2638_v4, %v4704_v63 }
0x1259   : > { %2644 = vst.msk [vmem:[%s905_s20 + $0x8] sm:$0xff] %vm948_vm0, %v2642_v13 }
0x125a   : > { %3842 = shalt.err (!%p3839_p4)
}
0x125b   : > { %s3843_s25 = scalar_lea.hbm %s4810_s7, 256  ;;  %s3847_s16 = scalar_lea.hbm %s4962_s12, 512 }
0x125c   : > { %p3844_p7 = scmp.ne.s32.totalorder %s4810_s7, %s3843_s25  ;;  %p3848_p13 = scmp.lt.u32.totalorder %s4810_s7, %s4962_s12 }
0x125d   : > { %p3849_p0 = scmp.lt.u32.totalorder %s3847_s16, %s3843_s25  ;;  %p3851_p5 = scmp.lt.u32.totalorder %s3843_s25, %s4810_s7 }
0x125e   : > { %p3845_p8 = pnand %p3844_p7, %p4960_p1 }
0x125f   : > { %p3850_p6 = por %p3849_p0, %p3848_p13 }
0x1260   : > { %p3846_p11 = pneg %p3845_p8 }
0x1261   : > { %p3852_p9 = por %p3851_p5, %p3850_p6 }
0x1263   : > { %p3853_p12 = pnand %p3852_p9, %p3846_p11 }
0x1265   : > { %3856 = shalt.err (!%p3853_p12)
}
0x1266   : > { %3307 = dma.vmem_to_hbm [thread:$0]  (%p4960_p1), %s4812_s8, 256, %s4810_s7, %s2646_s22, %s3938_s3, %s3938_s3, %s3939_s2  }
0x1267 PF: > { %s4963_s4 = sld [smem:[#allocation33_spill]]  ;;  %s4964_s28 = sld [smem:[#allocation31_spill]] }
0x1268   : > { %s4965_s20 = sld [smem:[#allocation37_spill]] }
0x126d   : > { %p3374_p10 = scmp.ge.s32.totalorder %s4963_s4, 2  ;;  %s2695_s27 = sand.u32 1, %s4964_s28  }
0x126e   : > { %p4966_p2 = scmp.ne.s32.totalorder %s4965_s20, 0  ;;  %s2696_s25 = scalar_lea.sflag [#allocation4], %s2695_s27 }
0x1270   : > { %p3346_p3 = pnand %p3374_p10, %p4966_p2 }
0x1272   : > { %3898 = dma.done.wait (!%p3346_p3), %s2696_s25, 256  }
0x1273   : > { %3900 = vsyncadd (!%p3346_p3), %s2696_s25, 4294967040  ;;  %s2705_s30 = scalar_lea.sflag [#allocation22], %s2695_s27 }
0x1274   : > { %3902 = dma.done.wait (!%p3346_p3), %s2705_s30, 256  }
0x1275   : > { %3904 = vsyncadd (!%p3346_p3), %s2705_s30, 4294967040  ;;  %s4967_s28 = sld [smem:[#allocation34_spill]]  ;;  %s4968_s16 = sld [smem:[#allocation32_spill]] }
0x1276   : > { %s4969_s27 = sld [smem:[#allocation35_spill]]  ;;  %s4970_s5 = smov %s3911_s26 }
0x127b   : > { %p44_p1 = scmp.ge.s32.totalorder %s4967_s28, 4   ;;  %s4971_s26 = smov %s4968_s16 }
0x127d   :  { %46 = sbr.rel (!%p44_p1) target bundleno = 27 (0x1b), region = 218 }
0x1284   :  { %2710 = vsyncpa [#allocation3], 1 }
0x1285   :  { %2712 = vsyncpa [#allocation3 + $0x1], 1 }
0x1286   :  { %2713 = vsyncpa [#allocation6], 1 }
0x1287   :  { %2714 = vsyncpa [#allocation9], 1 }
0x1288   :  { %2715 = vsyncpa [#allocation12], 1 }
0x1289   :  { %2716 = vsyncpa [#allocation15], 1 }
0x128a   :  { %2717 = vsyncpa [#allocation18], 1 }
0x128b   :  { %2718 = vsyncpa [#allocation4], 1 }
0x128c   :  { %2720 = vsyncpa [#allocation4 + $0x1], 1 }
0x128d   :  { %2721 = vsyncpa [#allocation22], 1 }
0x128e   :  { %2723 = vsyncpa [#allocation22 + $0x1], 1 }

</bundles_post_ra>
